<compile_context>
chip_gen: v6e
topology: v6e:2x2x1
jax: 0.10.0
libtpu: 0.0.40
codegen_flags: <defaults>
</compile_context>

<pallas_src>
import jax
import jax.numpy as jnp
from jax.experimental import pallas as pl
from jax.experimental.pallas import tpu as pltpu

SPIKE_THRESH = 0.5   # heaviside spike threshold of the SNN candidate ops
K = 3                # both conv candidates are 3x3 (b3/b5 differ only in backward)
LANE = 128           # TPU lane width; channel axis is padded to a multiple of this


def _mixedop_kernel(alpha_ref,   # SMEM (3,) f32   architecture weights (only [0] used here)
                    xpad_ref,    # VMEM (1, H+2, W+2, Cp) bf16  padded input, resident over rows
                    w_ref,       # VMEM (9, Cp, 2*Cp) bf16      per-tap fused [conv1 | conv2] weights
                    p_ref,       # VMEM (3, 2*Cp) f32           rows: BN scale, BN shift, alpha lane vec
                    out_ref):    # VMEM (1, TH, W, Cp) bf16     one output row tile
    TH = out_ref.shape[1]
    W = out_ref.shape[2]
    Cp = out_ref.shape[3]

    # Halo window for this row tile: rows [r*TH, r*TH + TH + 2) of the padded
    # image.  H is the untiled major axis, so the dynamic slice is cheap.
    row0 = pl.multiple_of(pl.program_id(1) * TH, TH)
    x = xpad_ref[0, pl.ds(row0, TH + 2), :, :]          # (TH+2, W+2, Cp) bf16

    # Hoist the sublane(W)-unaligned shifts: 3 shared W-shifted views reused by
    # all 9 taps and the skip path (2 relayout copies total, not one per tap).
    xw = [x[:, kw:kw + W, :] for kw in range(K)]        # each (TH+2, W, Cp)

    # 9 accumulating MXU dots (bf16 in, f32 accumulate) -- no materialized
    # im2col buffer, no concat store traffic.  Both candidate convs share the
    # contraction: result lanes [:Cp] are conv1 (snn_b3), [Cp:] are conv2.
    acc = None
    for kh in range(K):
        for kw in range(K):
            patch = xw[kw][kh:kh + TH].reshape(TH * W, Cp)       # free major-axis slice
            part = jnp.dot(patch, w_ref[kh * K + kw],
                           preferred_element_type=jnp.float32)   # (TH*W, 2*Cp)
            acc = part if acc is None else acc + part

    mem = acc * p_ref[0] + p_ref[1]                     # folded BatchNorm (f32)

    # Spike + architecture-weight mix fused into one select: lanes [:Cp] carry
    # a1 (snn_b3), lanes [Cp:] carry a2 (snn_b5).
    mix2 = jnp.where(mem > SPIKE_THRESH, p_ref[2], jnp.float32(0.0))
    mix = (mix2[:, :Cp] + mix2[:, Cp:]).reshape(TH, W, Cp)

    # op 0: skip_connect (identity) -- padded-center view, upcast to f32.
    # TODO(synk): stride-2 cells (FactorizedReduce skip) are not handled.
    center = xw[1][1:1 + TH].astype(jnp.float32)        # (TH, W, Cp)

    out_ref[0] = (alpha_ref[0] * center + mix).astype(out_ref.dtype)


def _round_up(v, m):
    return (v + m - 1) // m * m


def _pick_row_tile(H, W, Cp):
    """Largest divisor of H whose (TH*W, 2*Cp) f32 epilogue temporaries stay
    around <= 2 MiB (small per-step VMEM on v7x, several pipeline steps), but
    with TH*W >= 256 when H allows so the MXU M dimension stays reasonable."""
    bytes_per_row = W * (2 * Cp) * 4 * 4                # ~4 (row, 2*Cp) f32 temporaries
    th = max(1, min(H, (2 << 20) // max(1, bytes_per_row)))
    th = max(th, min(H, -(-256 // W)))                  # prefer TH*W >= 256
    while H % th:                                       # exact tiling -> no masked stores
        th -= 1
    return th


def _vmem_limit_bytes(H, W, TH, Cp):
    """Size the VMEM limit from the actual block bytes, capped per generation."""
    in_blk = (H + 2) * (W + 2) * Cp * 2                 # bf16 padded image (resident)
    out_blk = TH * W * Cp * 2                           # bf16 output row tile
    const_blk = 9 * Cp * 2 * Cp * 2 + 3 * 2 * Cp * 4    # weights + BN/alpha rows
    tmps = 4 * TH * W * 2 * Cp * 4                      # f32 acc / mem / select temporaries
    est = 2 * in_blk + 2 * out_blk + const_blk + tmps   # double-buffered I/O blocks
    try:
        cap = pltpu.get_tpu_info().vmem_capacity_bytes  # 64 MiB v7x, 128 MiB v5e/v6e
    except Exception:
        cap = 64 << 20
    return int(min(max(2 * est, 32 << 20), 0.75 * cap))


@jax.jit
def mixed_op_forward(x_nchw, weights, left_or_right, params):
    """MixedOp.forward(x, weights, left_or_right)."""
    # TODO(synk): left_or_right and the b3/b5 surrogate width only affect the
    # *backward* surrogate gradient in SpikeDHS; they are accepted but unused
    # forward (guard before reusing this kernel for training gradients).
    del left_or_right

    N, C, H, W = x_nchw.shape
    Cp = _round_up(C, LANE)                             # lane-dense channel axis
    TH = _pick_row_tile(H, W, Cp)
    nH = H // TH
    # Layout note: W should be a multiple of 8 (ideally 16 for bf16) so the
    # (TH, W, Cp) <-> (TH*W, Cp) reshapes stay layout-preserving.

    # Fused NCHW->NHWC + bf16 cast + (spatial halo, channel) pad: one HBM pass.
    # TODO(synk): if producer/consumer can use NHWC bf16 directly, drop the
    # transposes/casts around the kernel entirely.
    x = jnp.transpose(x_nchw, (0, 2, 3, 1)).astype(jnp.bfloat16)
    xpad = jnp.pad(x, ((0, 0), (1, 1), (1, 1), (0, Cp - C)))

    # Per-tap fused weights: (K, K, Cp, 2*Cp) -> (9, Cp, 2*Cp); conv1 -> lanes
    # [:Cp], conv2 -> lanes [Cp:].  Tap order (kh, kw) matches the kernel loop.
    # TODO(synk): with C=4 -> Cp=128 most of the DMA/MXU work is zero padding;
    # if production C stays far below 128, a channels-on-lanes layout is the
    # wrong design (put W / H*W on lanes instead).  For C >= 128 it is right.
    def pad_io(w):                                      # (K, K, C, C) HWIO
        return jnp.pad(w, ((0, 0), (0, 0), (0, Cp - C), (0, Cp - C)))
    wcat = jnp.concatenate([pad_io(params["w1"]), pad_io(params["w2"])], axis=-1)
    wcat = wcat.reshape(K * K, Cp, 2 * Cp).astype(jnp.bfloat16)

    def pad_c(v):
        return jnp.pad(v.reshape(-1).astype(jnp.float32), (0, Cp - C))
    a = weights.astype(jnp.float32)
    scale = jnp.concatenate([pad_c(params["s1"]), pad_c(params["s2"])])
    shift = jnp.concatenate([pad_c(params["b1"]), pad_c(params["b2"])])
    alpha_vec = jnp.concatenate([jnp.broadcast_to(a[1], (Cp,)),
                                 jnp.broadcast_to(a[2], (Cp,))])
    p_cat = jnp.stack([scale, shift, alpha_vec])        # (3, 2*Cp) f32

    invariant = dict(pipeline_mode=pl.Buffered(1))      # grid-invariant operands
    out_nhwc = pl.pallas_call(
        _mixedop_kernel,
        out_shape=jax.ShapeDtypeStruct((N, H, W, Cp), jnp.bfloat16),
        grid=(N, nH),
        in_specs=[
            pl.BlockSpec(memory_space=pltpu.MemorySpace.SMEM),                  # alphas (3,)
            # Full padded image, resident in VMEM across the row axis; the
            # kernel slices the (TH+2)-row halo window with pl.ds.
            # TODO(synk): for very large H on v7x switch to an element-indexed
            # (pl.Element) halo block so the input is row-tiled in HBM too.
            pl.BlockSpec((1, H + 2, W + 2, Cp), lambda n, r: (n, 0, 0, 0)),
            pl.BlockSpec((K * K, Cp, 2 * Cp), lambda n, r: (0, 0, 0), **invariant),
            pl.BlockSpec((3, 2 * Cp), lambda n, r: (0, 0), **invariant),
        ],
        out_specs=pl.BlockSpec((1, TH, W, Cp), lambda n, r: (n, r, 0, 0)),
        compiler_params=pltpu.CompilerParams(
            dimension_semantics=("parallel", "parallel"),
            vmem_limit_bytes=_vmem_limit_bytes(H, W, TH, Cp),
        ),
    )(a, xpad, wcat, p_cat)

    # Drop channel padding, upcast, back to NCHW (one fused XLA pass).
    return jnp.transpose(out_nhwc[..., :C].astype(jnp.float32), (0, 3, 1, 2))


def _reference_forward(x_nchw, weights, params):
    """Pure-JAX reference mirroring the kernel's precision contract
    (bf16 conv operands, f32 accumulate / BN / spike / skip / alpha mix)."""
    x_bf = jnp.transpose(x_nchw, (0, 2, 3, 1)).astype(jnp.bfloat16)
    xf = x_bf.astype(jnp.float32)
    N, H, W, C = xf.shape
    xpad = jnp.pad(x_bf, ((0, 0), (1, 1), (1, 1), (0, 0)))

    def conv(w_hwio):
        wb = w_hwio.astype(jnp.bfloat16)
        mem = jnp.zeros((N, H, W, C), jnp.float32)
        for kh in range(K):
            for kw in range(K):
                xs = xpad[:, kh:kh + H, kw:kw + W, :]
                mem = mem + jnp.einsum("nhwc,cd->nhwd", xs, wb[kh, kw],
                                       preferred_element_type=jnp.float32)
        return mem

    mem1 = conv(params["w1"]) * params["s1"] + params["b1"]
    mem2 = conv(params["w2"]) * params["s2"] + params["b2"]
    spk1 = (mem1 > SPIKE_THRESH).astype(jnp.float32)
    spk2 = (mem2 > SPIKE_THRESH).astype(jnp.float32)
    out = weights[0] * xf + weights[1] * spk1 + weights[2] * spk2
    to_nchw = lambda t: jnp.transpose(t, (0, 3, 1, 2))
    return to_nchw(out), to_nchw(mem1), to_nchw(mem2)


def _init_params(key, C):
    """Deterministic synthetic parameters (conv weights in HWIO, folded BN)."""
    k = jax.random.split(key, 6)
    eps = 1e-5
    w1 = jax.random.normal(k[0], (K, K, C, C), jnp.float32) * 0.3
    w2 = jax.random.normal(k[1], (K, K, C, C), jnp.float32) * 0.3
    gamma1 = 1.0 + 0.1 * jax.random.normal(k[2], (C,), jnp.float32)
    beta1 = 0.1 * jax.random.normal(k[3], (C,), jnp.float32)
    gamma2 = 1.0 + 0.1 * jax.random.normal(k[4], (C,), jnp.float32)
    beta2 = 0.1 * jax.random.normal(k[5], (C,), jnp.float32)
    mean = jnp.zeros((C,), jnp.float32)
    var = jnp.ones((C,), jnp.float32)
    s1 = gamma1 / jnp.sqrt(var + eps)
    b1 = beta1 - mean * s1
    s2 = gamma2 / jnp.sqrt(var + eps)
    b2 = beta2 - mean * s2
    return {"w1": w1, "w2": w2, "s1": s1, "b1": b1, "s2": s2, "b2": b2}


def _run_case(key, N, C, H, W):
    kx, kwt, kp = jax.random.split(key, 3)
    x = jax.random.normal(kx, (N, C, H, W), jnp.float32)
    weights = jax.nn.softmax(jax.random.normal(kwt, (3,), jnp.float32))  # arch weights
    params = _init_params(kp, C)

    out = jax.block_until_ready(mixed_op_forward(x, weights, 0, params))
    ref, mem1, mem2 = _reference_forward(x, weights, params)
    ref = jax.block_until_ready(ref)

    # Tolerance covers the kernel's bf16 writeback; elements whose conv
    # membrane sits within 1e-3 of the spike threshold are exempt (different
    # f32 accumulation orders could legally flip a 0/1 spike there).
    close = jnp.abs(out - ref) <= (1e-2 + 1e-2 * jnp.abs(ref))
    near_thr = (jnp.abs(mem1 - SPIKE_THRESH) < 1e-3) | (jnp.abs(mem2 - SPIKE_THRESH) < 1e-3)
    if not bool(jnp.all(close | near_thr)):
        bad = int(jnp.sum(jnp.logical_not(close | near_thr)))
        raise AssertionError(
            f"MixedOp Pallas kernel mismatch at {bad} elements for shape {(N, C, H, W)}")


if __name__ == "__main__":
    key = jax.random.PRNGKey(0)
    _run_case(jax.random.fold_in(key, 0), 2, 4, 16, 16)   # canonical small shape (single row tile)
    _run_case(jax.random.fold_in(key, 1), 1, 4, 64, 16)   # exercises the multi-row-tile grid path
    print("KERNEL_OK")
</pallas_src>

<mosaic_0001>
module attributes {stable_mosaic.version = 11 : i64} {
  func.func @_mixedop_kernel(%arg0: i32, %arg1: i32, %arg2: memref<3xf32, #tpu.memory_space<smem>>, %arg3: memref<1x18x18x128xbf16, #tpu.memory_space<vmem>>, %arg4: memref<9x128x256xbf16, #tpu.memory_space<vmem>>, %arg5: memref<3x256xf32, #tpu.memory_space<vmem>>, %arg6: memref<1x16x16x128xbf16, #tpu.memory_space<vmem>>) attributes {dimension_semantics = [#tpu.dimension_semantics<parallel>, #tpu.dimension_semantics<parallel>], iteration_bounds = array<i64: 2, 1>, scalar_prefetch = 0 : i64, scratch_operands = 0 : i64, tpu.core_type = #tpu.core_type<tc>, window_params = [{transform_indices = @transform_0, window_bounds = array<i64: 3>}, {transform_indices = @transform_1, window_bounds = array<i64: 1, 18, 18, 128>}, {pipeline_mode = #tpu.pipeline_mode<synchronous>, transform_indices = @transform_2, window_bounds = array<i64: 9, 128, 256>}, {pipeline_mode = #tpu.pipeline_mode<synchronous>, transform_indices = @transform_3, window_bounds = array<i64: 3, 256>}, {transform_indices = @transform_4, window_bounds = array<i64: 1, 16, 16, 128>}]} {
    %c16_i32 = arith.constant 16 : i32
    %0 = arith.muli %arg1, %c16_i32 : i32
    %1 = tpu.assume_multiple %0, 16 : i32
    %c0 = arith.constant 0 : index
    %2 = arith.index_cast %1 : i32 to index
    %c0_0 = arith.constant 0 : index
    %c0_1 = arith.constant 0 : index
    %3 = vector.load %arg3[%c0, %2, %c0_0, %c0_1] : memref<1x18x18x128xbf16, #tpu.memory_space<vmem>>, vector<1x18x18x128xbf16>
    %4 = vector.shape_cast %3 : vector<1x18x18x128xbf16> to vector<18x18x128xbf16>
    %5 = vector.extract_strided_slice %4 {offsets = [0, 0, 0], sizes = [18, 16, 128], strides = [1, 1, 1]} : vector<18x18x128xbf16> to vector<18x16x128xbf16>
    %6 = vector.extract_strided_slice %4 {offsets = [0, 1, 0], sizes = [18, 16, 128], strides = [1, 1, 1]} : vector<18x18x128xbf16> to vector<18x16x128xbf16>
    %7 = vector.extract_strided_slice %4 {offsets = [0, 2, 0], sizes = [18, 16, 128], strides = [1, 1, 1]} : vector<18x18x128xbf16> to vector<18x16x128xbf16>
    %8 = vector.extract_strided_slice %5 {offsets = [0, 0, 0], sizes = [16, 16, 128], strides = [1, 1, 1]} : vector<18x16x128xbf16> to vector<16x16x128xbf16>
    %9 = vector.shape_cast %8 : vector<16x16x128xbf16> to vector<256x128xbf16>
    %c0_2 = arith.constant 0 : index
    %c0_3 = arith.constant 0 : index
    %c0_4 = arith.constant 0 : index
    %10 = vector.load %arg4[%c0_2, %c0_3, %c0_4] : memref<9x128x256xbf16, #tpu.memory_space<vmem>>, vector<1x128x256xbf16>
    %11 = vector.shape_cast %10 : vector<1x128x256xbf16> to vector<128x256xbf16>
    %cst = arith.constant dense<0.000000e+00> : vector<256x256xf32>
    %12 = tpu.matmul %9, %11, %cst {dimension_numbers = #tpu.dot_dimension_numbers<[1], [0], [0], [1], [0, 0, 1, 1], [], []>} : vector<256x128xbf16>, vector<128x256xbf16>, vector<256x256xf32> -> vector<256x256xf32>
    %13 = vector.extract_strided_slice %6 {offsets = [0, 0, 0], sizes = [16, 16, 128], strides = [1, 1, 1]} : vector<18x16x128xbf16> to vector<16x16x128xbf16>
    %14 = vector.shape_cast %13 : vector<16x16x128xbf16> to vector<256x128xbf16>
    %c1 = arith.constant 1 : index
    %c0_5 = arith.constant 0 : index
    %c0_6 = arith.constant 0 : index
    %15 = vector.load %arg4[%c1, %c0_5, %c0_6] : memref<9x128x256xbf16, #tpu.memory_space<vmem>>, vector<1x128x256xbf16>
    %16 = vector.shape_cast %15 : vector<1x128x256xbf16> to vector<128x256xbf16>
    %cst_7 = arith.constant dense<0.000000e+00> : vector<256x256xf32>
    %17 = tpu.matmul %14, %16, %cst_7 {dimension_numbers = #tpu.dot_dimension_numbers<[1], [0], [0], [1], [0, 0, 1, 1], [], []>} : vector<256x128xbf16>, vector<128x256xbf16>, vector<256x256xf32> -> vector<256x256xf32>
    %18 = arith.addf %12, %17 : vector<256x256xf32>
    %19 = vector.extract_strided_slice %7 {offsets = [0, 0, 0], sizes = [16, 16, 128], strides = [1, 1, 1]} : vector<18x16x128xbf16> to vector<16x16x128xbf16>
    %20 = vector.shape_cast %19 : vector<16x16x128xbf16> to vector<256x128xbf16>
    %c2 = arith.constant 2 : index
    %c0_8 = arith.constant 0 : index
    %c0_9 = arith.constant 0 : index
    %21 = vector.load %arg4[%c2, %c0_8, %c0_9] : memref<9x128x256xbf16, #tpu.memory_space<vmem>>, vector<1x128x256xbf16>
    %22 = vector.shape_cast %21 : vector<1x128x256xbf16> to vector<128x256xbf16>
    %cst_10 = arith.constant dense<0.000000e+00> : vector<256x256xf32>
    %23 = tpu.matmul %20, %22, %cst_10 {dimension_numbers = #tpu.dot_dimension_numbers<[1], [0], [0], [1], [0, 0, 1, 1], [], []>} : vector<256x128xbf16>, vector<128x256xbf16>, vector<256x256xf32> -> vector<256x256xf32>
    %24 = arith.addf %18, %23 : vector<256x256xf32>
    %25 = vector.extract_strided_slice %5 {offsets = [1, 0, 0], sizes = [16, 16, 128], strides = [1, 1, 1]} : vector<18x16x128xbf16> to vector<16x16x128xbf16>
    %26 = vector.shape_cast %25 : vector<16x16x128xbf16> to vector<256x128xbf16>
    %c3 = arith.constant 3 : index
    %c0_11 = arith.constant 0 : index
    %c0_12 = arith.constant 0 : index
    %27 = vector.load %arg4[%c3, %c0_11, %c0_12] : memref<9x128x256xbf16, #tpu.memory_space<vmem>>, vector<1x128x256xbf16>
    %28 = vector.shape_cast %27 : vector<1x128x256xbf16> to vector<128x256xbf16>
    %cst_13 = arith.constant dense<0.000000e+00> : vector<256x256xf32>
    %29 = tpu.matmul %26, %28, %cst_13 {dimension_numbers = #tpu.dot_dimension_numbers<[1], [0], [0], [1], [0, 0, 1, 1], [], []>} : vector<256x128xbf16>, vector<128x256xbf16>, vector<256x256xf32> -> vector<256x256xf32>
    %30 = arith.addf %24, %29 : vector<256x256xf32>
    %31 = vector.extract_strided_slice %6 {offsets = [1, 0, 0], sizes = [16, 16, 128], strides = [1, 1, 1]} : vector<18x16x128xbf16> to vector<16x16x128xbf16>
    %32 = vector.shape_cast %31 : vector<16x16x128xbf16> to vector<256x128xbf16>
    %c4 = arith.constant 4 : index
    %c0_14 = arith.constant 0 : index
    %c0_15 = arith.constant 0 : index
    %33 = vector.load %arg4[%c4, %c0_14, %c0_15] : memref<9x128x256xbf16, #tpu.memory_space<vmem>>, vector<1x128x256xbf16>
    %34 = vector.shape_cast %33 : vector<1x128x256xbf16> to vector<128x256xbf16>
    %cst_16 = arith.constant dense<0.000000e+00> : vector<256x256xf32>
    %35 = tpu.matmul %32, %34, %cst_16 {dimension_numbers = #tpu.dot_dimension_numbers<[1], [0], [0], [1], [0, 0, 1, 1], [], []>} : vector<256x128xbf16>, vector<128x256xbf16>, vector<256x256xf32> -> vector<256x256xf32>
    %36 = arith.addf %30, %35 : vector<256x256xf32>
    %37 = vector.extract_strided_slice %7 {offsets = [1, 0, 0], sizes = [16, 16, 128], strides = [1, 1, 1]} : vector<18x16x128xbf16> to vector<16x16x128xbf16>
    %38 = vector.shape_cast %37 : vector<16x16x128xbf16> to vector<256x128xbf16>
    %c5 = arith.constant 5 : index
    %c0_17 = arith.constant 0 : index
    %c0_18 = arith.constant 0 : index
    %39 = vector.load %arg4[%c5, %c0_17, %c0_18] : memref<9x128x256xbf16, #tpu.memory_space<vmem>>, vector<1x128x256xbf16>
    %40 = vector.shape_cast %39 : vector<1x128x256xbf16> to vector<128x256xbf16>
    %cst_19 = arith.constant dense<0.000000e+00> : vector<256x256xf32>
    %41 = tpu.matmul %38, %40, %cst_19 {dimension_numbers = #tpu.dot_dimension_numbers<[1], [0], [0], [1], [0, 0, 1, 1], [], []>} : vector<256x128xbf16>, vector<128x256xbf16>, vector<256x256xf32> -> vector<256x256xf32>
    %42 = arith.addf %36, %41 : vector<256x256xf32>
    %43 = vector.extract_strided_slice %5 {offsets = [2, 0, 0], sizes = [16, 16, 128], strides = [1, 1, 1]} : vector<18x16x128xbf16> to vector<16x16x128xbf16>
    %44 = vector.shape_cast %43 : vector<16x16x128xbf16> to vector<256x128xbf16>
    %c6 = arith.constant 6 : index
    %c0_20 = arith.constant 0 : index
    %c0_21 = arith.constant 0 : index
    %45 = vector.load %arg4[%c6, %c0_20, %c0_21] : memref<9x128x256xbf16, #tpu.memory_space<vmem>>, vector<1x128x256xbf16>
    %46 = vector.shape_cast %45 : vector<1x128x256xbf16> to vector<128x256xbf16>
    %cst_22 = arith.constant dense<0.000000e+00> : vector<256x256xf32>
    %47 = tpu.matmul %44, %46, %cst_22 {dimension_numbers = #tpu.dot_dimension_numbers<[1], [0], [0], [1], [0, 0, 1, 1], [], []>} : vector<256x128xbf16>, vector<128x256xbf16>, vector<256x256xf32> -> vector<256x256xf32>
    %48 = arith.addf %42, %47 : vector<256x256xf32>
    %49 = vector.extract_strided_slice %6 {offsets = [2, 0, 0], sizes = [16, 16, 128], strides = [1, 1, 1]} : vector<18x16x128xbf16> to vector<16x16x128xbf16>
    %50 = vector.shape_cast %49 : vector<16x16x128xbf16> to vector<256x128xbf16>
    %c7 = arith.constant 7 : index
    %c0_23 = arith.constant 0 : index
    %c0_24 = arith.constant 0 : index
    %51 = vector.load %arg4[%c7, %c0_23, %c0_24] : memref<9x128x256xbf16, #tpu.memory_space<vmem>>, vector<1x128x256xbf16>
    %52 = vector.shape_cast %51 : vector<1x128x256xbf16> to vector<128x256xbf16>
    %cst_25 = arith.constant dense<0.000000e+00> : vector<256x256xf32>
    %53 = tpu.matmul %50, %52, %cst_25 {dimension_numbers = #tpu.dot_dimension_numbers<[1], [0], [0], [1], [0, 0, 1, 1], [], []>} : vector<256x128xbf16>, vector<128x256xbf16>, vector<256x256xf32> -> vector<256x256xf32>
    %54 = arith.addf %48, %53 : vector<256x256xf32>
    %55 = vector.extract_strided_slice %7 {offsets = [2, 0, 0], sizes = [16, 16, 128], strides = [1, 1, 1]} : vector<18x16x128xbf16> to vector<16x16x128xbf16>
    %56 = vector.shape_cast %55 : vector<16x16x128xbf16> to vector<256x128xbf16>
    %c8 = arith.constant 8 : index
    %c0_26 = arith.constant 0 : index
    %c0_27 = arith.constant 0 : index
    %57 = vector.load %arg4[%c8, %c0_26, %c0_27] : memref<9x128x256xbf16, #tpu.memory_space<vmem>>, vector<1x128x256xbf16>
    %58 = vector.shape_cast %57 : vector<1x128x256xbf16> to vector<128x256xbf16>
    %cst_28 = arith.constant dense<0.000000e+00> : vector<256x256xf32>
    %59 = tpu.matmul %56, %58, %cst_28 {dimension_numbers = #tpu.dot_dimension_numbers<[1], [0], [0], [1], [0, 0, 1, 1], [], []>} : vector<256x128xbf16>, vector<128x256xbf16>, vector<256x256xf32> -> vector<256x256xf32>
    %60 = arith.addf %54, %59 : vector<256x256xf32>
    %c0_29 = arith.constant 0 : index
    %c0_30 = arith.constant 0 : index
    %61 = vector.load %arg5[%c0_29, %c0_30] : memref<3x256xf32, #tpu.memory_space<vmem>>, vector<1x256xf32>
    %62 = vector.shape_cast %61 : vector<1x256xf32> to vector<256xf32>
    %63 = vector.shape_cast %62 : vector<256xf32> to vector<1x256xf32>
    %64 = vector.broadcast %63 : vector<1x256xf32> to vector<256x256xf32>
    %65 = arith.mulf %60, %64 : vector<256x256xf32>
    %c1_31 = arith.constant 1 : index
    %c0_32 = arith.constant 0 : index
    %66 = vector.load %arg5[%c1_31, %c0_32] : memref<3x256xf32, #tpu.memory_space<vmem>>, vector<1x256xf32>
    %67 = vector.shape_cast %66 : vector<1x256xf32> to vector<256xf32>
    %68 = vector.shape_cast %67 : vector<256xf32> to vector<1x256xf32>
    %69 = vector.broadcast %68 : vector<1x256xf32> to vector<256x256xf32>
    %70 = arith.addf %65, %69 : vector<256x256xf32>
    %cst_33 = arith.constant 5.000000e-01 : f32
    %71 = vector.broadcast %cst_33 : f32 to vector<256x256xf32>
    %72 = arith.cmpf ogt, %70, %71 : vector<256x256xf32>
    %c2_34 = arith.constant 2 : index
    %c0_35 = arith.constant 0 : index
    %73 = vector.load %arg5[%c2_34, %c0_35] : memref<3x256xf32, #tpu.memory_space<vmem>>, vector<1x256xf32>
    %74 = vector.shape_cast %73 : vector<1x256xf32> to vector<256xf32>
    %cst_36 = arith.constant 0.000000e+00 : f32
    %75 = vector.shape_cast %74 : vector<256xf32> to vector<1x256xf32>
    %76 = vector.broadcast %75 : vector<1x256xf32> to vector<256x256xf32>
    %77 = vector.broadcast %cst_36 : f32 to vector<256x256xf32>
    %78 = arith.select %72, %76, %77 : vector<256x256xi1>, vector<256x256xf32>
    %79 = vector.extract_strided_slice %78 {offsets = [0, 0], sizes = [256, 128], strides = [1, 1]} : vector<256x256xf32> to vector<256x128xf32>
    %80 = vector.extract_strided_slice %78 {offsets = [0, 128], sizes = [256, 128], strides = [1, 1]} : vector<256x256xf32> to vector<256x128xf32>
    %81 = arith.addf %79, %80 : vector<256x128xf32>
    %82 = vector.shape_cast %81 : vector<256x128xf32> to vector<16x16x128xf32>
    %83 = vector.extract_strided_slice %6 {offsets = [1, 0, 0], sizes = [16, 16, 128], strides = [1, 1, 1]} : vector<18x16x128xbf16> to vector<16x16x128xbf16>
    %84 = arith.extf %83 : vector<16x16x128xbf16> to vector<16x16x128xf32>
    %c0_37 = arith.constant 0 : index
    %85 = memref.load %arg2[%c0_37] : memref<3xf32, #tpu.memory_space<smem>>
    %86 = vector.broadcast %85 : f32 to vector<16x16x128xf32>
    %87 = arith.mulf %86, %84 : vector<16x16x128xf32>
    %88 = arith.addf %87, %82 : vector<16x16x128xf32>
    %89 = arith.truncf %88 : vector<16x16x128xf32> to vector<16x16x128xbf16>
    %c0_38 = arith.constant 0 : index
    %c0_39 = arith.constant 0 : index
    %c0_40 = arith.constant 0 : index
    %c0_41 = arith.constant 0 : index
    %90 = vector.load %arg6[%c0_38, %c0_39, %c0_40, %c0_41] : memref<1x16x16x128xbf16, #tpu.memory_space<vmem>>, vector<1x16x16x128xbf16>
    %91 = vector.shape_cast %90 : vector<1x16x16x128xbf16> to vector<16x16x128xbf16>
    %92 = vector.shape_cast %89 : vector<16x16x128xbf16> to vector<1x16x16x128xbf16>
    tpu.vector_store %arg6[%c0_38, %c0_39, %c0_40, %c0_41], %92 {strides = array<i32>} : memref<1x16x16x128xbf16, #tpu.memory_space<vmem>>, vector<1x16x16x128xbf16>,
    return
  }
  func.func @transform_0(%arg0: i32, %arg1: i32) -> i32 {
    %c0_i32 = arith.constant 0 : i32
    %c0_i32_0 = arith.constant 0 : i32
    return %c0_i32 : i32
  }
  func.func @transform_1(%arg0: i32, %arg1: i32) -> (i32, i32, i32, i32) {
    %c0_i32 = arith.constant 0 : i32
    %c0_i32_0 = arith.constant 0 : i32
    %c0_i32_1 = arith.constant 0 : i32
    %c0_i32_2 = arith.constant 0 : i32
    return %arg0, %c0_i32, %c0_i32_0, %c0_i32_1 : i32, i32, i32, i32
  }
  func.func @transform_2(%arg0: i32, %arg1: i32) -> (i32, i32, i32) {
    %c0_i32 = arith.constant 0 : i32
    %c0_i32_0 = arith.constant 0 : i32
    %c0_i32_1 = arith.constant 0 : i32
    %c0_i32_2 = arith.constant 0 : i32
    return %c0_i32, %c0_i32_0, %c0_i32_1 : i32, i32, i32
  }
  func.func @transform_3(%arg0: i32, %arg1: i32) -> (i32, i32) {
    %c0_i32 = arith.constant 0 : i32
    %c0_i32_0 = arith.constant 0 : i32
    %c0_i32_1 = arith.constant 0 : i32
    return %c0_i32, %c0_i32_0 : i32, i32
  }
  func.func @transform_4(%arg0: i32, %arg1: i32) -> (i32, i32, i32, i32) {
    %c0_i32 = arith.constant 0 : i32
    %c0_i32_0 = arith.constant 0 : i32
    %c0_i32_1 = arith.constant 0 : i32
    return %arg0, %arg1, %c0_i32, %c0_i32_0 : i32, i32, i32, i32
  }
}

</mosaic_0001>

<bundles_post_ra>
// kernel: mixed_op_forward.1
= control target key start
LH: loop header
LB: loop body
LE: loop exit
PB: predicated region body
PF: predicated region fallthrough
CT: control target
= control target key end

     0   :  { %9 = vsyncpa [#allocation3], 0  ;;  %s6376_s15 = smov 0   ;;  %s6378_s16 = smov 0   ;;  %s9148_s0 = inlined_call_operand.vmem [shape: f32[3], index: 0, kind: input, shape index: {}]   ;;  %s9149_s1 = inlined_call_operand.vmem [shape: bf16[2,18,18,128], index: 1, kind: input, shape index: {}]   ;;  %s9150_s2 = inlined_call_operand.vmem [shape: bf16[9,128,256], index: 2, kind: input, shape index: {}]   ;;  %s9151_s3 = inlined_call_operand.vmem [shape: f32[3,256], index: 3, kind: input, shape index: {}]   ;;  %s9152_s4 = inlined_call_operand.vmem [shape: bf16[2,16,16,128], index: 4, kind: output, shape index: {}]  }
   0x1   :  { %s6380_s17 = smov 0  }
   0x2 LB: > { %s5497_s18 = sadd.s32 4294967295, %s6347_s17   ;;  %s27_s19 = sadd.s32 1, %s6343_s16  ;;  %s6347_s17 = sphi %s6380_s17, %s15_s17   ;;  %s6343_s16 = sphi %s6378_s16, %s9607_s16   ;;  %s6339_s15 = sphi %s6376_s15, %s9606_s15  }
   0x3   : > { %p29_p0 = scmp.ge.s32.totalorder %s27_s19, 2  ;;  %p5499_p1 = scmp.ge.s32.totalorder %s6347_s17, 1 }
   0x4   : > { %p149_p2 = scmp.lt.s32.totalorder %s6347_s17, 3  ;;  %p6401_p4 = scmp.eq.s32.totalorder %s5497_s18, 0 }
   0x5   : > { %s9609_s19 = smov (%p29_p0, %s27_s19), 0  ;;  %s162_s24 = sshll.u32 %s9148_s0, 4  ;;  %s163_s24 = int_to_ptr.vmem [resolvable:$true] %s162_s24 }
   0x6   : > { %p6397_p3 = pnand %p5499_p1, %p149_p2  ;;  %s6306_s25 = scalar_lea.vmem %s163_s24, 16 }
   0x7   : > { %p6307_p7 = scmp.ne.s32.totalorder %s163_s24, %s6306_s25  ;;  %p6314_p11 = scmp.lt.s32.totalorder %s163_s24, %s163_s24 }
   0x8   : > { %p5973_p5 = pneg %p6397_p3  ;;  %p6315_p12 = scmp.lt.s32.totalorder %s6306_s25, %s6306_s25 }
   0xa   : > { %p5974_p6 = pnand %p6401_p4, %p5973_p5  ;;  %p6316_p13 = por %p6315_p12, %p6314_p11 }
   0xc   : > { %p6308_p8 = pneg %p5974_p6 }
   0xe   : > { %p6309_p9 = pnand %p6308_p8, %p6307_p7 }
  0x10   : > { %p6310_p10 = pneg %p6309_p9 }
  0x12   : > { %p6317_p0 = pnand %p6316_p13, %p6310_p10 }
  0x14   : > { %6320 = shalt.err (!%p6317_p0)
}
  0x15   : > { %s6349_s26 = smov [#allocation2]   ;;  %189 = sbr.rel (%p6397_p3) target bundleno = 936 (0x3a8), region = 36 }
  0x16   : > { %5976 = dma.vmem_to_smem (!%p5974_p6), %s163_s24, 16, %s6349_s26, [#allocation3]  }
  0x1a   : > { %6334 = dma.done.wait (%p6401_p4), [#allocation3], 16  }
  0x1b   : > { %6336 = vsyncadd (%p6401_p4), [#allocation3], 4294967280 }
  0x1c   : > { %195 = sfence }
  0x1d   : > { %v6005_v0 = vld [vmem:[%s9150_s2 + $0xf4] ss:$8 sps:$4 sm:$0xff]   ;;  %p221_p1 = scmp.lt.s32.totalorder %s6339_s15, 1  ;;  %v6007_v1 = vld [vmem:[%s9150_s2 + $0xf0] ss:$8 sps:$4 sm:$0xff]   ;;  %v9153_v2 = vmov 0  }
  0x1e   : > { %892 = vmatprep.mubr.bf16.mxu0 %v9153_v2  ;;  %972 = vmatprep.mubr.bf16.mxu1 %v9153_v2  ;;  %v6008_v3 = vld [vmem:[%s9150_s2 + $0xe4] ss:$8 sps:$4 sm:$0xff]   ;;  %v6010_v4 = vld [vmem:[%s9150_s2 + $0xe0] ss:$8 sps:$4 sm:$0xff]   ;;  %v6011_v5 = vld [vmem:[%s9150_s2 + $0xd4] ss:$8 sps:$4 sm:$0xff]  }
  0x1f   : > { %860 = vmatprep.subr.bf16.mxu0 %v6005_v0  ;;  %5952 = vmatprep.subr.bf16.mxu1 %v6005_v0  ;;  %s9611_s15 = smov (!%p221_p1, %s6339_s15), 1  ;;  %v6013_v6 = vld [vmem:[%s9150_s2 + $0xd0] ss:$8 sps:$4 sm:$0xff]   ;;  %v6014_v7 = vld [vmem:[%s9150_s2 + $0xc4] ss:$8 sps:$4 sm:$0xff]   ;;  %v9222_v32 = vmov 0 }
  0x20   : > { %861 = vmatpush1.bf16.msra.mxu0 %v6007_v1  ;;  %5960 = vmatpush1.bf16.msra.mxu1 %v6007_v1  ;;  %s5968_s11 = smul.u32 216, %s9611_s15  ;;  %v6016_v8 = vld [vmem:[%s9150_s2 + $0xc0] ss:$8 sps:$4 sm:$0xff]   ;;  %vm312_vm0 = vsmask.f32 3328  ;;  %vm1438_vm3 = vcmask 1042432  }
  0x21   : > { %862 = vmatprep.subr.bf16.mxu0 %v6008_v3  ;;  %5953 = vmatprep.subr.bf16.mxu1 %v6008_v3  ;;  %v6017_v9 = vld [vmem:[%s9150_s2 + $0xb4] ss:$8 sps:$4 sm:$0xff]   ;;  %vm313_vm1 = vsmask.f32 7440  ;;  %v6019_v19 = vld [vmem:[%s9150_s2 + $0xb0] ss:$8 sps:$4 sm:$0xff]  }
  0x22   : > { %s6446_s20 = scalar_lea.vmem %s9149_s1, %s5968_s11  ;;  %v6020_v27 = vld [vmem:[%s9150_s2 + $0xa4] ss:$8 sps:$4 sm:$0xff]   ;;  %vm6482_vm2 = vmor %vm312_vm0, %vm313_vm1  ;;  %v6022_v37 = vld [vmem:[%s9150_s2 + $0xa0] ss:$8 sps:$4 sm:$0xff]   ;;  %vm1439_vm4 = vcmask 1046532   ;;  %s4561_s24 = sld [smem:[#allocation2]] }
  0x23   : > { %v6458_v10 = vld [vmem:[%s6446_s20] sm:$0xf]  ;;  %v6461_v11 = vld [vmem:[%s6446_s20 + $0x4] sm:$0xf]  ;;  %v6464_v12 = vld [vmem:[%s6446_s20 + $0x8] sm:$0x1] }
  0x24   : > { %863 = vmatpush1.bf16.msra.mxu0 %v6010_v4  ;;  %5961 = vmatpush1.bf16.msra.mxu1 %v6010_v4  ;;  %v316_v13 = vshrl.u32 %v6458_v10, 16  ;;  %v319_v14 = vshll.u32 %v6458_v10, 16  ;;  %v325_v15 = vshll.u32 %v6461_v11, 16  ;;  %v329_v16 = vshrl.u32 %v6461_v11, 16  ;;  %v266_v18 = vld [vmem:[%s6446_s20 + $0x60] sm:$0xf]  ;;  %vm6889_vm5 = vmor %vm1438_vm3, %vm1439_vm4 }
  0x25   : > { %864 = vmatprep.subr.bf16.mxu0 %v6011_v5  ;;  %5954 = vmatprep.subr.bf16.mxu1 %v6011_v5  ;;  %v335_v17 = vshll.u32 %v6464_v12, 16  ;;  %v267_v22 = vld [vmem:[%s6446_s20 + $0x64] sm:$0xf]  ;;  %v268_v23 = vld [vmem:[%s6446_s20 + $0x68] sm:$0x1]  ;;  %v508_v26 = vshrl.u32 %v266_v18, 16 }
  0x26   : > { %v318_v20 = vrot.slane %v316_v13, 4  ;;  %v321_v21 = vrot.slane %v319_v14, 5  ;;  %v327_v24 = vrot.slane %v325_v15, 5  ;;  %v331_v25 = vrot.slane %v329_v16, 4  ;;  %v6023_v42 = vld [vmem:[%s9150_s2 + $0x94] ss:$8 sps:$4 sm:$0xff]  }
  0x27   : > { %v511_v29 = vshll.u32 %v266_v18, 16  ;;  %v517_v30 = vshll.u32 %v267_v22, 16  ;;  %v521_v31 = vshrl.u32 %v267_v22, 16  ;;  %v9223_v32 = vsel %vm6482_vm2, 4294967295, %v9222_v32  ;;  %v6493_v45 = vld [vmem:[%s6446_s20 + $0xc] sm:$0xf] }
  0x28   : > { %865 = vmatpush1.bf16.msra.mxu0 %v6013_v6  ;;  %5962 = vmatpush1.bf16.msra.mxu1 %v6013_v6  ;;  %v322_v28 = vor.u32 %v321_v21, %v318_v20  ;;  %9224 = vst [vmem:[#allocation5_spill] sm:$0xff] %v9223_v32  ;;  %v332_v33 = vor.u32 %v331_v25, %v327_v24  ;;  %v337_v34 = vrot.slane %v335_v17, 5  ;;  %v510_v35 = vrot.slane %v508_v26, 4  ;;  %v6498_v49 = vld [vmem:[%s6446_s20 + $0x10] sm:$0xf]  ;;  %s5903_s5 = sshll.u32 %s9611_s15, 7 }
  0x29   : > { %866 = vmatprep.subr.bf16.mxu0 %v6014_v7  ;;  %5955 = vmatprep.subr.bf16.mxu1 %v6014_v7  ;;  %v527_v36 = vshll.u32 %v268_v23, 16  ;;  %v513_v39 = vrot.slane %v511_v29, 5  ;;  %v519_v40 = vrot.slane %v517_v30, 5  ;;  %v523_v41 = vrot.slane %v521_v31, 4  ;;  %v6501_v50 = vld [vmem:[%s6446_s20 + $0x14] sm:$0x1]  ;;  %s8580_s7 = scalar_lea.vmem %s9152_s4, %s5903_s5 }
  0x2a   : > { %v323_v38 = vrot.slane %v322_v28, 4  ;;  %v333_v43 = vrot.slane %v332_v33, 4  ;;  %v340_v51 = vshrl.u32 %v6493_v45, 16  ;;  %v343_v53 = vshll.u32 %v6493_v45, 16  ;;  %v269_v56 = vld [vmem:[%s6446_s20 + $0x6c] sm:$0xf] }
  0x2b   : > { %v529_v44 = vrot.slane %v527_v36, 5  ;;  %v514_v47 = vor.u32 %v513_v39, %v510_v35  ;;  %v524_v48 = vor.u32 %v523_v41, %v519_v40  ;;  %v349_v54 = vshll.u32 %v6498_v49, 16  ;;  %v270_v1 = vld [vmem:[%s6446_s20 + $0x70] sm:$0xf]  ;;  %v271_v6 = vld [vmem:[%s6446_s20 + $0x74] sm:$0x1] }
  0x2c   : > { %867 = vmatpush1.bf16.msra.mxu0 %v6016_v8  ;;  %5963 = vmatpush1.bf16.msra.mxu1 %v6016_v8  ;;  %v328_v46 = vsel %vm6482_vm2, %v323_v38, %v327_v24  ;;  %v338_v52 = vsel %vm6482_vm2, %v333_v43, %v337_v34  ;;  %v353_v55 = vshrl.u32 %v6498_v49, 16  ;;  %v342_v60 = vrot.slane %v340_v51, 4  ;;  %v6025_v3 = vld [vmem:[%s9150_s2 + $0x90] ss:$8 sps:$4 sm:$0xff]   ;;  %v6028_v17 = vld [vmem:[%s9150_s2 + $0x80] ss:$8 sps:$4 sm:$0xff]  }
  0x2d   : > { %868 = vmatprep.subr.bf16.mxu0 %v6017_v9  ;;  %5956 = vmatprep.subr.bf16.mxu1 %v6017_v9  ;;  %v6510_v57 = vcombine.low %v328_v46, %v338_v52  ;;  %v515_v58 = vrot.slane %v514_v47, 4  ;;  %v525_v59 = vrot.slane %v524_v48, 4  ;;  %v345_v61 = vrot.slane %v343_v53, 5  ;;  %v6026_v9 = vld [vmem:[%s9150_s2 + $0x84] ss:$8 sps:$4 sm:$0xff]  }
  0x2e   : > { %v351_v62 = vrot.slane %v349_v54, 5  ;;  %v355_v63 = vrot.slane %v353_v55, 4  ;;  %v359_v0 = vshll.u32 %v6501_v50, 16  ;;  %v532_v7 = vshrl.u32 %v269_v56, 16  ;;  %v6531_v22 = vld [vmem:[%s6446_s20 + $0x18] sm:$0xf] }
  0x2f   : > { %v520_v4 = vsel %vm6482_vm2, %v515_v58, %v519_v40  ;;  %v530_v5 = vsel %vm6482_vm2, %v525_v59, %v529_v44  ;;  %v535_v8 = vshll.u32 %v269_v56, 16  ;;  %v346_v14 = vor.u32 %v345_v61, %v342_v60  ;;  %v6031_v23 = vld [vmem:[%s9150_s2 + $0x74] ss:$8 sps:$4 sm:$0xff]   ;;  %v6541_v33 = vld [vmem:[%s6446_s20 + $0x20] sm:$0x1] }
  0x30   : > { %869 = vmatpush1.bf16.msra.mxu0 %v6019_v19  ;;  %5964 = vmatpush1.bf16.msra.mxu1 %v6019_v19  ;;  %v6525_v13 = vcombine.low %v520_v4, %v530_v5  ;;  %v356_v15 = vor.u32 %v355_v63, %v351_v62  ;;  %v361_v16 = vrot.slane %v359_v0, 5  ;;  %v534_v18 = vrot.slane %v532_v7, 4  ;;  %v6034_v35 = vld [vmem:[%s9150_s2 + $0x174] ss:$8 sps:$4 sm:$0xff]   ;;  %v272_v40 = vld [vmem:[%s6446_s20 + $0x78] sm:$0xf] }
  0x31   : > { %870 = vmatprep.subr.bf16.mxu0 %v6020_v27  ;;  %5957 = vmatprep.subr.bf16.mxu1 %v6020_v27  ;;  %v537_v19 = vrot.slane %v535_v8, 5  ;;  %v541_v20 = vshll.u32 %v270_v1, 16  ;;  %v545_v21 = vshrl.u32 %v270_v1, 16  ;;  %v347_v24 = vrot.slane %v346_v14, 4  ;;  %v6537_v27 = vld [vmem:[%s6446_s20 + $0x1c] sm:$0xf] }
  0x32   : > { %9225 = vst [vmem:[#allocation6_spill] sm:$0xff] %v6525_v13  ;;  %v357_v25 = vrot.slane %v356_v15, 4  ;;  %v551_v26 = vshll.u32 %v271_v6, 16  ;;  %v364_v28 = vshrl.u32 %v6531_v22, 16  ;;  %v367_v34 = vshll.u32 %v6531_v22, 16 }
  0x33   : > { %v538_v29 = vor.u32 %v537_v19, %v534_v18  ;;  %v543_v30 = vrot.slane %v541_v20, 5  ;;  %v547_v31 = vrot.slane %v545_v21, 4  ;;  %v352_v36 = vsel %vm6482_vm2, %v347_v24, %v351_v62  ;;  %v6029_v41 = vld [vmem:[%s9150_s2 + $0x70] ss:$8 sps:$4 sm:$0xff]   ;;  %v273_v53 = vld [vmem:[%s6446_s20 + $0x7c] sm:$0xf] }
  0x34   : > { %871 = vmatpush1.bf16.msra.mxu0 %v6022_v37  ;;  %5965 = vmatpush1.bf16.msra.mxu1 %v6022_v37  ;;  %v362_v37 = vsel %vm6482_vm2, %v357_v25, %v361_v16  ;;  %v553_v38 = vrot.slane %v551_v26, 5  ;;  %v366_v39 = vrot.slane %v364_v28, 4  ;;  %v369_v47 = vrot.slane %v367_v34, 5  ;;  %v6037_v58 = vld [vmem:[%s9150_s2 + $0x64] ss:$8 sps:$4 sm:$0xff]  }
  0x35   : > { %872 = vmatprep.subr.bf16.mxu0 %v6023_v42  ;;  %5958 = vmatprep.subr.bf16.mxu1 %v6023_v42  ;;  %v6032_v42 = vld [vmem:[%s9150_s2 + $0x170] ss:$8 sps:$4 sm:$0xff]   ;;  %v6558_v43 = vcombine.low %v352_v36, %v362_v37  ;;  %v539_v44 = vrot.slane %v538_v29, 4  ;;  %v548_v46 = vor.u32 %v547_v31, %v543_v30  ;;  %v373_v48 = vshll.u32 %v6537_v27, 16  ;;  %v274_v60 = vld [vmem:[%s6446_s20 + $0x80] sm:$0x1] }
  0x36   : > { %v377_v51 = vshrl.u32 %v6537_v27, 16  ;;  %v383_v52 = vshll.u32 %v6541_v33, 16  ;;  %v556_v54 = vshrl.u32 %v272_v40, 16  ;;  %v370_v59 = vor.u32 %v369_v47, %v366_v39  ;;  %v6040_v62 = vld [vmem:[%s9150_s2 + $0x164] ss:$8 sps:$4 sm:$0xff]  }
  0x37   : > { %v544_v55 = vsel %vm6482_vm2, %v539_v44, %v543_v30  ;;  %v549_v56 = vrot.slane %v548_v46, 4  ;;  %v559_v61 = vshll.u32 %v272_v40, 16  ;;  %v375_v63 = vrot.slane %v373_v48, 5  ;;  %v6035_v5 = vld [vmem:[%s9150_s2 + $0x60] ss:$8 sps:$4 sm:$0xff]  }
  0x38   : > { %873 = vmatpush1.bf16.msra.mxu0 %v6025_v3  ;;  %5966 = vmatpush1.bf16.msra.mxu1 %v6025_v3  ;;  %v379_v0 = vrot.slane %v377_v51, 4  ;;  %v385_v1 = vrot.slane %v383_v52, 5  ;;  %v558_v3 = vrot.slane %v556_v54, 4  ;;  %v6038_v6 = vld [vmem:[%s9150_s2 + $0x160] ss:$8 sps:$4 sm:$0xff]   ;;  %v371_v7 = vrot.slane %v370_v59, 4 }
  0x39   : > { %874 = vmatprep.subr.bf16.mxu0 %v6026_v9  ;;  %5959 = vmatprep.subr.bf16.mxu1 %v6026_v9  ;;  %v554_v4 = vsel %vm6482_vm2, %v549_v56, %v553_v38  ;;  %v561_v8 = vrot.slane %v559_v61, 5  ;;  %v565_v9 = vshll.u32 %v273_v53, 16  ;;  %v6582_v14 = vld [vmem:[%s6446_s20 + $0x24] sm:$0xf]  ;;  %v575_v18 = vshll.u32 %v274_v60, 16 }
  0x3a   : > { %v6586_v15 = vcombine.low %v544_v55, %v554_v4  ;;  %v380_v16 = vor.u32 %v379_v0, %v375_v63  ;;  %v6043_v19 = vld [vmem:[%s9150_s2 + $0x54] ss:$8 sps:$4 sm:$0xff]   ;;  %v6592_v20 = vld [vmem:[%s6446_s20 + $0x28] sm:$0xf]  ;;  %v376_v21 = vsel %vm6482_vm2, %v371_v7, %v375_v63  ;;  %v6600_v25 = vld [vmem:[%s6446_s20 + $0x2c] sm:$0x1] }
  0x3b   : > { %v6046_v24 = vld [vmem:[%s9150_s2 + $0x154] ss:$8 sps:$4 sm:$0xff]   ;;  %v388_v26 = vshrl.u32 %v6582_v14, 16  ;;  %v577_v30 = vrot.slane %v575_v18, 5  ;;  %v391_v31 = vshll.u32 %v6582_v14, 16  ;;  %v397_v37 = vshll.u32 %v6592_v20, 16 }
  0x3c   : > { %875 = vmatpush1.bf16.msra.mxu0 %v6028_v17  ;;  %5967 = vmatpush1.bf16.msra.mxu1 %v6028_v17  ;;  %9226 = vst [vmem:[#allocation7_spill] sm:$0xff] %v6586_v15  ;;  %v569_v17 = vshrl.u32 %v273_v53, 16  ;;  %v381_v28 = vrot.slane %v380_v16, 4  ;;  %v275_v34 = vld [vmem:[%s6446_s20 + $0x84] sm:$0xf]  ;;  %v401_v38 = vshrl.u32 %v6592_v20, 16 }
  0x3d   : > { %1229 = vmatprep.subr.bf16.mxu1 %v6031_v23  ;;  %1714 = vmatprep.subr.bf16.mxu0 %v6034_v35  ;;  %v567_v23 = vrot.slane %v565_v9, 5  ;;  %v390_v36 = vrot.slane %v388_v26, 4  ;;  %v393_v44 = vrot.slane %v391_v31, 5  ;;  %v407_v46 = vshll.u32 %v6600_v25, 16  ;;  %v276_v47 = vld [vmem:[%s6446_s20 + $0x88] sm:$0xf] }
  0x3e   : > { %v571_v29 = vrot.slane %v569_v17, 4  ;;  %v386_v39 = vsel %vm6482_vm2, %v381_v28, %v385_v1  ;;  %v277_v48 = vld [vmem:[%s6446_s20 + $0x8c] sm:$0x1]  ;;  %v399_v53 = vrot.slane %v397_v37, 5  ;;  %v403_v54 = vrot.slane %v401_v38, 4 }
  0x3f   : > { %893 = vmatmul.mubr.bf16.vlgmr.msra.gmra.mxu0 %v6510_v57  ;;  %973 = vmatmul.mubr.bf16.vlgmr.msra.gmra.mxu1 %v6525_v13  ;;  %v562_v57 = vor.u32 %v561_v8, %v558_v3  ;;  %v6620_v51 = vcombine.low %v376_v21, %v386_v39  ;;  %v6049_v55 = vld [vmem:[%s9150_s2 + $0x44] ss:$8 sps:$4 sm:$0xff]   ;;  %v409_v59 = vrot.slane %v407_v46, 5  ;;  %v580_v60 = vshrl.u32 %v275_v34, 16  ;;  %v6631_v3 = vld [vmem:[%s6446_s20 + $0x30] sm:$0xf] }
  0x40   : > { %1230 = vmatpush1.bf16.msra.mxu1 %v6029_v41  ;;  %1715 = vmatpush1.bf16.msra.mxu0 %v6032_v42  ;;  %v572_v40 = vor.u32 %v571_v29, %v567_v23  ;;  %v6041_v41 = vld [vmem:[%s9150_s2 + $0x50] ss:$8 sps:$4 sm:$0xff]   ;;  %v6052_v61 = vld [vmem:[%s9150_s2 + $0x144] ss:$8 sps:$4 sm:$0xff]   ;;  %v583_v63 = vshll.u32 %v275_v34, 16  ;;  %v589_v0 = vshll.u32 %v276_v47, 16 }
  0x41   : > { %902 = vmatprep.mubr.bf16.mxu0 %v9153_v2  ;;  %982 = vmatprep.mubr.bf16.mxu1 %v9153_v2  ;;  %v563_v35 = vrot.slane %v562_v57, 4  ;;  %v6044_v42 = vld [vmem:[%s9150_s2 + $0x150] ss:$8 sps:$4 sm:$0xff]   ;;  %9227 = vst [vmem:[#allocation8_spill] sm:$0xff] %v6620_v51  ;;  %v593_v1 = vshrl.u32 %v276_v47, 16  ;;  %v599_v7 = vshll.u32 %v277_v48, 16 }
  0x42   : > { %1231 = vmatprep.subr.bf16.mxu1 %v6037_v58  ;;  %1716 = vmatprep.subr.bf16.mxu0 %v6040_v62  ;;  %v573_v56 = vrot.slane %v572_v40, 4  ;;  %v394_v58 = vor.u32 %v393_v44, %v390_v36  ;;  %v404_v62 = vor.u32 %v403_v54, %v399_v53  ;;  %v6047_v8 = vld [vmem:[%s9150_s2 + $0x40] ss:$8 sps:$4 sm:$0xff]   ;;  %v6641_v9 = vld [vmem:[%s6446_s20 + $0x34] sm:$0xf]  ;;  %v585_v18 = vrot.slane %v583_v63, 5 }
  0x43   : > { %v568_v52 = vsel %vm6482_vm2, %v563_v35, %v567_v23  ;;  %v6050_v21 = vld [vmem:[%s9150_s2 + $0x140] ss:$8 sps:$4 sm:$0xff]   ;;  %v595_v23 = vrot.slane %v593_v1, 4  ;;  %v6653_v26 = vld [vmem:[%s6446_s20 + $0x38] sm:$0x1]  ;;  %v412_v28 = vshrl.u32 %v6631_v3, 16 }
  0x44   : > { %1232 = vmatpush1.bf16.msra.mxu1 %v6035_v5  ;;  %1717 = vmatpush1.bf16.msra.mxu0 %v6038_v6  ;;  %v578_v4 = vsel %vm6482_vm2, %v573_v56, %v577_v30  ;;  %v395_v5 = vrot.slane %v394_v58, 4  ;;  %v582_v6 = vrot.slane %v580_v60, 4  ;;  %v405_v17 = vrot.slane %v404_v62, 4  ;;  %v278_v35 = vld [vmem:[%s6446_s20 + $0x90] sm:$0xf] }
  0x45   : > { %1233 = vmatprep.subr.bf16.mxu1 %v6043_v19  ;;  %1718 = vmatprep.subr.bf16.mxu0 %v6046_v24  ;;  %v6645_v16 = vcombine.low %v568_v52, %v578_v4  ;;  %v591_v19 = vrot.slane %v589_v0, 5  ;;  %v601_v24 = vrot.slane %v599_v7, 5  ;;  %v415_v31 = vshll.u32 %v6631_v3, 16  ;;  %v279_v40 = vld [vmem:[%s6446_s20 + $0x94] sm:$0xf] }
  0x46   : > { %v400_v57 = vsel %vm6482_vm2, %v395_v5, %v399_v53  ;;  %v410_v29 = vsel %vm6482_vm2, %v405_v17, %v409_v59  ;;  %v586_v30 = vor.u32 %v585_v18, %v582_v6  ;;  %v421_v34 = vshll.u32 %v6641_v9, 16  ;;  %v280_v48 = vld [vmem:[%s6446_s20 + $0x98] sm:$0x1]  ;;  %v6058_v58 = vld [vmem:[%s9150_s2 + $0x134] ss:$8 sps:$4 sm:$0xff]  }
  0x47   : > { %903 = vmatmul.mubr.bf16.gmra.mxu0 %v6558_v43  ;;  %983 = vmatmul.mubr.bf16.gmra.mxu1 %v6586_v15  ;;  %9228 = vst [vmem:[#allocation9_spill] sm:$0xff] %v6645_v16  ;;  %v6661_v36 = vcombine.low %v400_v57, %v410_v29  ;;  %v596_v37 = vor.u32 %v595_v23, %v591_v19  ;;  %v414_v38 = vrot.slane %v412_v28, 4  ;;  %v425_v39 = vshrl.u32 %v6641_v9, 16  ;;  %v6053_v52 = vld [vmem:[%s9150_s2 + $0x30] ss:$8 sps:$4 sm:$0xff]  }
  0x48   : > { %912 = vmatprep.mubr.bf16.mxu0 %v9153_v2  ;;  %992 = vmatprep.mubr.bf16.mxu1 %v9153_v2  ;;  %v417_v44 = vrot.slane %v415_v31, 5  ;;  %v423_v46 = vrot.slane %v421_v34, 5  ;;  %v431_v47 = vshll.u32 %v6653_v26, 16  ;;  %v607_v56 = vshll.u32 %v278_v35, 16  ;;  %v6056_v63 = vld [vmem:[%s9150_s2 + $0x130] ss:$8 sps:$4 sm:$0xff]  }
  0x49   : > { %1234 = vmatpush1.bf16.msra.mxu1 %v6041_v41  ;;  %1719 = vmatpush1.bf16.msra.mxu0 %v6044_v42  ;;  %9229 = vst [vmem:[#allocation10_spill] sm:$0xff] %v6661_v36  ;;  %v6055_v41 = vld [vmem:[%s9150_s2 + $0x34] ss:$8 sps:$4 sm:$0xff]   ;;  %v587_v42 = vrot.slane %v586_v30, 4  ;;  %v597_v53 = vrot.slane %v596_v37, 4  ;;  %v427_v54 = vrot.slane %v425_v39, 4 }
  0x4a   : > { %1235 = vmatprep.subr.bf16.mxu1 %v6049_v55  ;;  %1720 = vmatprep.subr.bf16.mxu0 %v6052_v61  ;;  %v604_v55 = vshrl.u32 %v278_v35, 16  ;;  %v418_v60 = vor.u32 %v417_v44, %v414_v38  ;;  %v433_v61 = vrot.slane %v431_v47, 5  ;;  %v613_v62 = vshll.u32 %v279_v40, 16  ;;  %v6682_v0 = vld [vmem:[%s6446_s20 + $0x3c] sm:$0xf] }
  0x4b   : > { %v592_v59 = vsel %vm6482_vm2, %v587_v42, %v591_v19  ;;  %v602_v1 = vsel %vm6482_vm2, %v597_v53, %v601_v24  ;;  %v428_v4 = vor.u32 %v427_v54, %v423_v46  ;;  %v609_v6 = vrot.slane %v607_v56, 5  ;;  %v6689_v7 = vld [vmem:[%s6446_s20 + $0x40] sm:$0xf]  ;;  %v6699_v57 = vld [vmem:[%s6446_s20 + $0x9c] sm:$0xf] }
  0x4c   : > { %v606_v5 = vrot.slane %v604_v55, 4  ;;  %v419_v17 = vrot.slane %v418_v60, 4  ;;  %v615_v18 = vrot.slane %v613_v62, 5  ;;  %v617_v19 = vshrl.u32 %v279_v40, 16  ;;  %v6703_v30 = vld [vmem:[%s6446_s20 + $0xa0] sm:$0xf] }
  0x4d   : > { %1236 = vmatpush1.bf16.msra.mxu1 %v6047_v8  ;;  %1721 = vmatpush1.bf16.msra.mxu0 %v6050_v21  ;;  %v6693_v8 = vcombine.low %v592_v59, %v602_v1  ;;  %v6696_v21 = vld [vmem:[%s6446_s20 + $0x44] sm:$0x1]  ;;  %v429_v23 = vrot.slane %v428_v4, 4  ;;  %v623_v28 = vshll.u32 %v280_v48, 16  ;;  %v436_v29 = vshrl.u32 %v6682_v0, 16 }
  0x4e   : > { %1237 = vmatprep.subr.bf16.mxu1 %v6055_v41  ;;  %v610_v24 = vor.u32 %v609_v6, %v606_v5  ;;  %1722 = vmatprep.subr.bf16.mxu0 %v6058_v58  ;;  %v424_v31 = vsel %vm6482_vm2, %v419_v17, %v423_v46  ;;  %v619_v34 = vrot.slane %v617_v19, 4  ;;  %v439_v35 = vshll.u32 %v6682_v0, 16  ;;  %v6059_v38 = vld [vmem:[%s9150_s2 + $0x20] ss:$8 sps:$4 sm:$0xff]   ;;  %v6061_v44 = vld [vmem:[%s9150_s2 + $0x24] ss:$8 sps:$4 sm:$0xff]  }
  0x4f   : > { %913 = vmatmul.mubr.bf16.gmra.mxu0 %v6620_v51  ;;  %993 = vmatmul.mubr.bf16.gmra.mxu1 %v6645_v16  ;;  %9230 = vst [vmem:[#allocation11_spill] sm:$0xff] %v6693_v8  ;;  %v445_v37 = vshll.u32 %v6689_v7, 16  ;;  %v434_v39 = vsel %vm6482_vm2, %v429_v23, %v433_v61  ;;  %v625_v41 = vrot.slane %v623_v28, 5  ;;  %v438_v42 = vrot.slane %v436_v29, 4  ;;  %v6064_v53 = vld [vmem:[%s9150_s2 + $0x124] ss:$8 sps:$4 sm:$0xff]  }
  0x50   : > { %922 = vmatprep.mubr.bf16.mxu0 %v9153_v2  ;;  %1002 = vmatprep.mubr.bf16.mxu1 %v9153_v2  ;;  %v611_v40 = vrot.slane %v610_v24, 4  ;;  %v6717_v46 = vcombine.low %v424_v31, %v434_v39  ;;  %v620_v47 = vor.u32 %v619_v34, %v615_v18  ;;  %v441_v48 = vrot.slane %v439_v35, 5  ;;  %v6062_v59 = vld [vmem:[%s9150_s2 + $0x120] ss:$8 sps:$4 sm:$0xff]   ;;  %v6731_v62 = vld [vmem:[%s6446_s20 + $0xa4] sm:$0x1] }
  0x51   : > { %1238 = vmatpush1.bf16.msra.mxu1 %v6053_v52  ;;  %1723 = vmatpush1.bf16.msra.mxu0 %v6056_v63  ;;  %v447_v52 = vrot.slane %v445_v37, 5  ;;  %v449_v55 = vshrl.u32 %v6689_v7, 16  ;;  %v455_v56 = vshll.u32 %v6696_v21, 16  ;;  %v628_v58 = vshrl.u32 %v6699_v57, 16  ;;  %v6746_v29 = vld [vmem:[%s6446_s20 + $0x4c] sm:$0xf] }
  0x52   : > { %9231 = vst [vmem:[#allocation12_spill] sm:$0xff] %v6717_v46  ;;  %v616_v54 = vsel %vm6482_vm2, %v611_v40, %v615_v18  ;;  %1239 = vmatprep.subr.bf16.mxu1 %v6061_v44  ;;  %v621_v60 = vrot.slane %v620_v47, 4  ;;  %v442_v61 = vor.u32 %v441_v48, %v438_v42  ;;  %v631_v63 = vshll.u32 %v6699_v57, 16  ;;  %1724 = vmatprep.subr.bf16.mxu0 %v6064_v53  ;;  %v6739_v18 = vld [vmem:[%s6446_s20 + $0x48] sm:$0xf] }
  0x53   : > { %v637_v1 = vshll.u32 %v6703_v30, 16  ;;  %v451_v4 = vrot.slane %v449_v55, 4  ;;  %v457_v5 = vrot.slane %v455_v56, 5  ;;  %v630_v6 = vrot.slane %v628_v58, 4  ;;  %v6759_v44 = vld [vmem:[%s6446_s20 + $0xa8] sm:$0xf] }
  0x54   : > { %v641_v17 = vshrl.u32 %v6703_v30, 16  ;;  %v626_v19 = vsel %vm6482_vm2, %v621_v60, %v625_v41  ;;  %v443_v23 = vrot.slane %v442_v61, 4  ;;  %v633_v24 = vrot.slane %v631_v63, 5  ;;  %v6065_v47 = vld [vmem:[%s9150_s2 + $0x10] ss:$8 sps:$4 sm:$0xff]  }
  0x55   : > { %1240 = vmatpush1.bf16.msra.mxu1 %v6059_v38  ;;  %v639_v28 = vrot.slane %v637_v1, 5  ;;  %v6748_v31 = vcombine.low %v616_v54, %v626_v19  ;;  %v452_v34 = vor.u32 %v451_v4, %v447_v52  ;;  %v647_v37 = vshll.u32 %v6731_v62, 16  ;;  %1725 = vmatpush1.bf16.msra.mxu0 %v6062_v59  ;;  %v6752_v38 = vld [vmem:[%s6446_s20 + $0x50] sm:$0x1]  ;;  %v6067_v48 = vld [vmem:[%s9150_s2 + $0x14] ss:$8 sps:$4 sm:$0xff]  }
  0x56   : > { %v643_v35 = vrot.slane %v641_v17, 4  ;;  %v448_v39 = vsel %vm6482_vm2, %v443_v23, %v447_v52  ;;  %v634_v40 = vor.u32 %v633_v24, %v630_v6  ;;  %v460_v41 = vshrl.u32 %v6739_v18, 16  ;;  %v6769_v56 = vld [vmem:[%s6446_s20 + $0xac] sm:$0xf]  ;;  %1241 = vmatprep.subr.bf16.mxu1 %v6067_v48  ;;  %v6070_v63 = vld [vmem:[%s9150_s2 + $0x114] ss:$8 sps:$4 sm:$0xff]  }
  0x57   : > { %923 = vmatmul.mubr.bf16.gmra.mxu0 %v6661_v36  ;;  %1003 = vmatmul.mubr.bf16.gmra.mxu1 %v6693_v8  ;;  %9232 = vst [vmem:[#allocation13_spill] sm:$0xff] %v6748_v31  ;;  %v463_v42 = vshll.u32 %v6739_v18, 16  ;;  %v453_v53 = vrot.slane %v452_v34, 4  ;;  %v649_v55 = vrot.slane %v647_v37, 5  ;;  %v469_v52 = vshll.u32 %v6746_v29, 16 }
  0x58   : > { %932 = vmatprep.mubr.bf16.mxu0 %v9153_v2  ;;  %1012 = vmatprep.mubr.bf16.mxu1 %v9153_v2  ;;  %v644_v54 = vor.u32 %v643_v35, %v639_v28  ;;  %v635_v58 = vrot.slane %v634_v40, 4  ;;  %v462_v59 = vrot.slane %v460_v41, 4  ;;  %v473_v61 = vshrl.u32 %v6746_v29, 16  ;;  %v6068_v19 = vld [vmem:[%s9150_s2 + $0x110] ss:$8 sps:$4 sm:$0xff]  }
  0x59   : > { %v465_v60 = vrot.slane %v463_v42, 5  ;;  %v458_v1 = vsel %vm6482_vm2, %v453_v53, %v457_v5  ;;  %v6777_v6 = vrot.slane %v469_v52, 5  ;;  %v479_v17 = vshll.u32 %v6752_v38, 16  ;;  %1242 = vmatpush1.bf16.msra.mxu1 %v6065_v47  ;;  %v6786_v35 = vld [vmem:[%s6446_s20 + $0xb0] sm:$0x1]  ;;  %1726 = vmatprep.subr.bf16.mxu0 %v6070_v63 }
  0x5a   : > { %v645_v4 = vrot.slane %v644_v54, 4  ;;  %v6783_v23 = vcombine.low %v448_v39, %v458_v1  ;;  %v475_v34 = vrot.slane %v473_v61, 4  ;;  %v640_v5 = vsel %vm6482_vm2, %v635_v58, %v639_v28  ;;  %v6797_v41 = vld [vmem:[%s6446_s20 + $0x54] sm:$0xf]  ;;  %v6806_v53 = vld [vmem:[%s6446_s20 + $0x58] sm:$0xf]  ;;  %1727 = vmatpush1.bf16.msra.mxu0 %v6068_v19 }
  0x5b   : > { %v466_v24 = vor.u32 %v465_v60, %v462_v59  ;;  %v652_v39 = vshrl.u32 %v6759_v44, 16  ;;  %v655_v40 = vshll.u32 %v6759_v44, 16  ;;  %v481_v28 = vrot.slane %v479_v17, 5  ;;  %v6811_v59 = vld [vmem:[%s6446_s20 + $0x5c] sm:$0x1] }
  0x5c   : > { %9233 = vst [vmem:[#allocation14_spill] sm:$0xff] %v6783_v23  ;;  %v650_v37 = vsel %vm6482_vm2, %v645_v4, %v649_v55  ;;  %v476_v47 = vor.u32 %v475_v34, %v6777_v6  ;;  %v661_v48 = vshll.u32 %v6769_v56, 16  ;;  %v665_v52 = vshrl.u32 %v6769_v56, 16  ;;  %v6814_v60 = vld [vmem:[%s6446_s20 + $0xb4] sm:$0xf] }
  0x5d   : > { %v6801_v42 = vrot.slane %v466_v24, 4  ;;  %v654_v54 = vrot.slane %v652_v39, 4  ;;  %v657_v55 = vrot.slane %v655_v40, 5  ;;  %v671_v58 = vshll.u32 %v6786_v35, 16  ;;  %v6071_v61 = vld [vmem:[%s9150_s2] ss:$8 sps:$4 sm:$0xff]  }
  0x5e   : > { %v6819_v63 = vcombine.low %v640_v5, %v650_v37  ;;  %v477_v1 = vrot.slane %v476_v47, 4  ;;  %v663_v4 = vrot.slane %v661_v48, 5  ;;  %v484_v17 = vshrl.u32 %v6797_v41, 16  ;;  %v6073_v24 = vld [vmem:[%s9150_s2 + $0x4] ss:$8 sps:$4 sm:$0xff]  }
  0x5f   : > { %933 = vmatmul.mubr.bf16.gmra.mxu0 %v6717_v46  ;;  %1013 = vmatmul.mubr.bf16.gmra.mxu1 %v6748_v31  ;;  %v658_v34 = vor.u32 %v657_v55, %v654_v54  ;;  %v667_v19 = vrot.slane %v665_v52, 4  ;;  %v673_v39 = vrot.slane %v671_v58, 5  ;;  %v487_v40 = vshll.u32 %v6797_v41, 16  ;;  %v6076_v47 = vld [vmem:[%s9150_s2 + $0x104] ss:$8 sps:$4 sm:$0xff]  }
  0x60   : > { %942 = vmatprep.mubr.bf16.mxu0 %v9153_v2  ;;  %1022 = vmatprep.mubr.bf16.mxu1 %v9153_v2  ;;  %9234 = vst [vmem:[#allocation15_spill] sm:$0xff] %v6819_v63  ;;  %v6827_v2 = vld [vmem:[%s6446_s20 + $0xb8] sm:$0xf]  ;;  %v486_v31 = vrot.slane %v484_v17, 4  ;;  %v493_v5 = vshll.u32 %v6806_v53, 16  ;;  %v497_v37 = vshrl.u32 %v6806_v53, 16  ;;  %v472_v48 = vsel %vm6482_vm2, %v6801_v42, %v6777_v6 }
  0x61   : > { %1243 = vmatprep.subr.bf16.mxu1 %v6073_v24  ;;  %v659_v54 = vrot.slane %v658_v34, 4  ;;  %v668_v55 = vor.u32 %v667_v19, %v663_v4  ;;  %v489_v52 = vrot.slane %v487_v40, 5  ;;  %v6074_v58 = vld [vmem:[%s9150_s2 + $0x100] ss:$8 sps:$4 sm:$0xff]   ;;  %v6080_v17 = vld [vmem:[%s9150_s2 + $0x1f4] ss:$8 sps:$4 sm:$0xff]   ;;  %1728 = vmatprep.subr.bf16.mxu0 %v6076_v47  ;;  %v482_v42 = vsel %vm6482_vm2, %v477_v1, %v481_v28 }
  0x62   : > { %1244 = vmatpush1.bf16.msra.mxu1 %v6071_v61  ;;  %v495_v24 = vrot.slane %v493_v5, 5  ;;  %v499_v8 = vrot.slane %v497_v37, 4  ;;  %v503_v16 = vshll.u32 %v6811_v59, 16  ;;  %v6846_v15 = vld [vmem:[%s6446_s20 + $0xbc] sm:$0x1]  ;;  %v676_v6 = vshrl.u32 %v6814_v60, 16  ;;  %1729 = vmatpush1.bf16.msra.mxu0 %v6074_v58 }
  0x63   : > { %v664_v61 = vsel %vm6482_vm2, %v659_v54, %v663_v4  ;;  %v669_v34 = vrot.slane %v668_v55, 4  ;;  %v679_v19 = vshll.u32 %v6814_v60, 16  ;;  %v6083_v40 = vld [vmem:[%s9150_s2 + $0x274] ss:$8 sps:$4 sm:$0xff]   ;;  %v9235_v5 = vmov 0   ;;  %2074 = vmatprep.subr.bf16.mxu1 %v6080_v17 }
  0x64   : > { %v490_v37 = vor.u32 %v489_v52, %v486_v31  ;;  %v500_v47 = vor.u32 %v499_v8, %v495_v24  ;;  %v685_v13 = vshll.u32 %v6827_v2, 16  ;;  %v689_v4 = vshrl.u32 %v6827_v2, 16  ;;  %2456 = vmatprep.subr.bf16.mxu0 %v6083_v40  ;;  %v6239_v40 = vld [vmem:[%s6446_s20] sm:$0xf] }
  0x65   : > { %v674_v28 = vsel %vm6482_vm2, %v669_v34, %v673_v39  ;;  %v681_v1 = vrot.slane %v679_v19, 5  ;;  %v695_v55 = vshll.u32 %v6846_v15, 16  ;;  %v505_v36 = vrot.slane %v503_v16, 5 }
  0x66   : > { %v687_v54 = vrot.slane %v685_v13, 5  ;;  %v6868_v46 = vcombine.low %v664_v61, %v674_v28  ;;  %v691_v31 = vrot.slane %v689_v4, 4  ;;  %v491_v52 = vrot.slane %v490_v37, 4  ;;  %v6240_v37 = vld [vmem:[%s6446_s20 + $0x4] sm:$0xf] }
  0x67   : > { %943 = vmatmul.mubr.bf16.gmra.mxu0 %v6783_v23  ;;  %1023 = vmatmul.mubr.bf16.gmra.mxu1 %v6819_v63  ;;  %v678_v63 = vrot.slane %v676_v6, 4  ;;  %v6866_v23 = vcombine.low %v472_v48, %v482_v42  ;;  %v501_v6 = vrot.slane %v500_v47, 4  ;;  %v697_v34 = vrot.slane %v695_v55, 5  ;;  %v6081_v4 = vld [vmem:[%s9150_s2 + $0x270] ss:$8 sps:$4 sm:$0xff]  }
  0x68   : > { %952 = vmatprep.mubr.bf16.mxu0 %v9235_v5  ;;  %1032 = vmatprep.mubr.bf16.mxu1 %v9235_v5  ;;  %9237 = vst [vmem:[#allocation17_spill] sm:$0xff] %v6868_v46  ;;  %v692_v39 = vor.u32 %v691_v31, %v687_v54  ;;  %v496_v48 = vsel %vm6482_vm2, %v491_v52, %v495_v24  ;;  %v1443_v58 = vrot.slane %v6461_v11, 5  ;;  %v1446_v24 = vrot.slane %v6464_v12, 5  ;;  %v6088_v31 = vld [vmem:[%s9150_s2 + $0x1e4] ss:$8 sps:$4 sm:$0xff]  }
  0x69   : > { %9236 = vst [vmem:[#allocation16_spill] sm:$0xff] %v6866_v23  ;;  %v682_v8 = vor.u32 %v681_v1, %v678_v63  ;;  %v506_v63 = vsel %vm6482_vm2, %v501_v6, %v505_v36  ;;  %v5587_v36 = vrot.slane %v6458_v10, 9  ;;  %v1450_v10 = vrot.slane %v6498_v49, 5  ;;  %v6078_v1 = vld [vmem:[%s9150_s2 + $0x1f0] ss:$8 sps:$4 sm:$0xff]  }
  0x6a   : > { %v693_v13 = vrot.slane %v692_v39, 4  ;;  %v6883_v42 = vcombine.low %v496_v48, %v506_v63  ;;  %v1445_v19 = vrot.slane %v1443_v58, 4  ;;  %v5555_v47 = vcombine.low %v6239_v40, %v6240_v37  ;;  %v6091_v52 = vld [vmem:[%s9150_s2 + $0x264] ss:$8 sps:$4 sm:$0xff]   ;;  %v6086_v6 = vld [vmem:[%s9150_s2 + $0x1e0] ss:$8 sps:$4 sm:$0xff]  }
  0x6b   : > { %v683_v51 = vrot.slane %v682_v8, 4  ;;  %v1444_v11 = vsel %vm6889_vm5, %v5587_v36, %v1443_v58  ;;  %v1452_v55 = vrot.slane %v1450_v10, 4  ;;  %v1453_v8 = vrot.slane %v6501_v50, 5  ;;  %v6089_v39 = vld [vmem:[%s9150_s2 + $0x260] ss:$8 sps:$4 sm:$0xff]  }
  0x6c   : > { %v698_v17 = vsel %vm6482_vm2, %v693_v13, %v697_v34  ;;  %9238 = vst [vmem:[#allocation18_spill] sm:$0xff] %v6883_v42  ;;  %v1447_v12 = vsel %vm6889_vm5, %v1445_v19, %v1446_v24  ;;  %v1457_v13 = vrot.slane %v6537_v27, 5  ;;  %v6096_v48 = vld [vmem:[%s9150_s2 + $0x1d4] ss:$8 sps:$4 sm:$0xff]   ;;  %v6097_v24 = vld [vmem:[%s9150_s2 + $0x250] ss:$8 sps:$4 sm:$0xff]  }
  0x6d   : > { %v688_v16 = vsel %vm6482_vm2, %v683_v51, %v687_v54  ;;  %v9240_v51 = vmov 0  ;;  %v5619_v28 = vcombine.low %v1444_v11, %v1447_v12  ;;  %v5588_v54 = vrot.slane %v6493_v45, 9  ;;  %v6099_v63 = vld [vmem:[%s9150_s2 + $0x254] ss:$8 sps:$4 sm:$0xff]  }
  0x6e   : > { %v6885_v61 = vcombine.low %v688_v16, %v698_v17  ;;  %v9241_v51 = vsel %vm6889_vm5, 4294967295, %v9240_v51  ;;  %v1454_v34 = vsel %vm6889_vm5, %v1452_v55, %v1453_v8  ;;  %v6939_v16 = vcombine.low %v6493_v45, %v6498_v49  ;;  %v6094_v17 = vld [vmem:[%s9150_s2 + $0x1d0] ss:$8 sps:$4 sm:$0xff]   ;;  %v6104_v45 = vld [vmem:[%s9150_s2 + $0x1c4] ss:$8 sps:$4 sm:$0xff]  }
  0x6f   : > { %953 = vmatmul.mubr.bf16.gmra.mxu0 %v6866_v23  ;;  %1033 = vmatmul.mubr.bf16.gmra.mxu1 %v6868_v46  ;;  %9242 = vst [vmem:[#allocation20_spill] sm:$0xff] %v9241_v51  ;;  %v1451_v50 = vsel %vm6889_vm5, %v5588_v54, %v1450_v10  ;;  %v5589_v36 = vrot.slane %v6531_v22, 9  ;;  %v1459_v19 = vrot.slane %v1457_v13, 4  ;;  %v1460_v11 = vrot.slane %v6541_v33, 5  ;;  %v6107_v49 = vld [vmem:[%s9150_s2 + $0x244] ss:$8 sps:$4 sm:$0xff]  }
  0x70   : > { %962 = vmatprep.mubr.bf16.mxu0 %v9235_v5  ;;  %1042 = vmatprep.mubr.bf16.mxu1 %v9235_v5  ;;  %9239 = vst [vmem:[#allocation19_spill] sm:$0xff] %v6885_v61  ;;  %v6941_v58 = vcombine.low %v1451_v50, %v1454_v34  ;;  %v6102_v22 = vld [vmem:[%s9150_s2 + $0x1c0] ss:$8 sps:$4 sm:$0xff]   ;;  %v1464_v40 = vrot.slane %v6592_v20, 5  ;;  %v6112_v37 = vld [vmem:[%s9150_s2 + $0x1b4] ss:$8 sps:$4 sm:$0xff]  }
  0x71   : > { %v6105_v33 = vld [vmem:[%s9150_s2 + $0x240] ss:$8 sps:$4 sm:$0xff]   ;;  %v1458_v12 = vsel %vm6889_vm5, %v5589_v36, %v1457_v13  ;;  %v1461_v10 = vsel %vm6889_vm5, %v1459_v19, %v1460_v11  ;;  %v6110_v54 = vld [vmem:[%s9150_s2 + $0x1b0] ss:$8 sps:$4 sm:$0xff]   ;;  %v5590_v8 = vrot.slane %v6582_v14, 9  ;;  %v1471_v13 = vrot.slane %v6641_v9, 5 }
  0x72   : > { %v6113_v55 = vld [vmem:[%s9150_s2 + $0x230] ss:$8 sps:$4 sm:$0xff]   ;;  %v5591_v11 = vrot.slane %v6631_v3, 9  ;;  %vm4643_vm7 = vcmask 1040384  }
  0x73   : > { %v1465_v50 = vsel %vm6889_vm5, %v5590_v8, %v1464_v40  ;;  %v6126_v36 = vld [vmem:[%s9150_s2 + $0x190] ss:$8 sps:$4 sm:$0xff]   ;;  %v1481_v8 = vrot.slane %v6696_v21, 5  ;;  %v1485_v21 = vrot.slane %v6746_v29, 5 }
  0x74   : > { %v6129_v19 = vld [vmem:[%s9150_s2 + $0x210] ss:$8 sps:$4 sm:$0xff]  }
  0x77   : > { %963 = vmatmul.mubr.bf16.gmra.mxu0 %v6883_v42  ;;  %1043 = vmatmul.mubr.bf16.gmra.mxu1 %v6885_v61 }
  0x78   : > { %1261 = vmatprep.mubr.bf16.mxu1 %v9235_v5  ;;  %1746 = vmatprep.mubr.bf16.mxu0 %v9235_v5 }
  0x7f   : > { %1262 = vmatmul.mubr.bf16.vlgmr.msra.gmra.mxu1 %v5555_v47  ;;  %1747 = vmatmul.mubr.bf16.vlgmr.msra.gmra.mxu0 %v5619_v28  ;;  %v6115_v47 = vld [vmem:[%s9150_s2 + $0x234] ss:$8 sps:$4 sm:$0xff]   ;;  %v6241_v28 = vld [vmem:[%s6446_s20 + $0x18] sm:$0xf] }
  0x80   : > { %2075 = vmatpush1.bf16.msra.mxu1 %v6078_v1  ;;  %2457 = vmatpush1.bf16.msra.mxu0 %v6081_v4  ;;  %v6980_v1 = vcombine.low %v6241_v28, %v6537_v27  ;;  %v6982_v4 = vcombine.low %v1458_v12, %v1461_v10  ;;  %v6120_v27 = vld [vmem:[%s9150_s2 + $0x1a4] ss:$8 sps:$4 sm:$0xff]   ;;  %v6134_v12 = vld [vmem:[%s9150_s2 + $0x180] ss:$8 sps:$4 sm:$0xff]  }
  0x81   : > { %1271 = vmatprep.mubr.bf16.mxu1 %v9235_v5  ;;  %1756 = vmatprep.mubr.bf16.mxu0 %v9235_v5  ;;  %v6137_v10 = vld [vmem:[%s9150_s2 + $0x200] ss:$8 sps:$4 sm:$0xff]  }
  0x82   : > { %2076 = vmatprep.subr.bf16.mxu1 %v6088_v31  ;;  %2458 = vmatprep.subr.bf16.mxu0 %v6091_v52  ;;  %v1466_v31 = vrot.slane %v1464_v40, 4  ;;  %v1467_v52 = vrot.slane %v6600_v25, 5  ;;  %v6118_v25 = vld [vmem:[%s9150_s2 + $0x1a0] ss:$8 sps:$4 sm:$0xff]   ;;  %v6143_v40 = vld [vmem:[%s9150_s2 + $0x2f4] ss:$8 sps:$4 sm:$0xff]  }
  0x84   : > { %2077 = vmatpush1.bf16.msra.mxu1 %v6086_v6  ;;  %2459 = vmatpush1.bf16.msra.mxu0 %v6089_v39  ;;  %v6123_v6 = vld [vmem:[%s9150_s2 + $0x224] ss:$8 sps:$4 sm:$0xff]   ;;  %v6121_v39 = vld [vmem:[%s9150_s2 + $0x220] ss:$8 sps:$4 sm:$0xff]   ;;  %v1468_v34 = vsel %vm6889_vm5, %v1466_v31, %v1467_v52  ;;  %v7079_v31 = vcombine.low %v6682_v0, %v6689_v7 }
  0x85   : > { %2078 = vmatprep.subr.bf16.mxu1 %v6096_v48  ;;  %2460 = vmatprep.subr.bf16.mxu0 %v6099_v63  ;;  %v6128_v48 = vld [vmem:[%s9150_s2 + $0x194] ss:$8 sps:$4 sm:$0xff]  }
  0x86   : > { %v6131_v63 = vld [vmem:[%s9150_s2 + $0x214] ss:$8 sps:$4 sm:$0xff]   ;;  %9247 = vst [vmem:[#allocation25_spill] sm:$0xff] %v7079_v31 }
  0x87   : > { %1272 = vmatmul.mubr.bf16.gmra.mxu1 %v6939_v16  ;;  %1757 = vmatmul.mubr.bf16.gmra.mxu0 %v6941_v58 }
  0x88   : > { %1281 = vmatprep.mubr.bf16.mxu1 %v9235_v5  ;;  %1766 = vmatprep.mubr.bf16.mxu0 %v9235_v5 }
  0x89   : > { %2079 = vmatpush1.bf16.msra.mxu1 %v6094_v17  ;;  %2461 = vmatpush1.bf16.msra.mxu0 %v6097_v24  ;;  %v7021_v17 = vcombine.low %v6582_v14, %v6592_v20  ;;  %v7023_v24 = vcombine.low %v1465_v50, %v1468_v34  ;;  %v6136_v14 = vld [vmem:[%s9150_s2 + $0x184] ss:$8 sps:$4 sm:$0xff]   ;;  %v5594_v34 = vrot.slane %v6797_v41, 9 }
  0x8a   : > { %2080 = vmatprep.subr.bf16.mxu1 %v6104_v45  ;;  %2462 = vmatprep.subr.bf16.mxu0 %v6107_v49  ;;  %v1473_v45 = vrot.slane %v1471_v13, 4  ;;  %v1474_v49 = vrot.slane %v6653_v26, 5  ;;  %v6139_v20 = vld [vmem:[%s9150_s2 + $0x204] ss:$8 sps:$4 sm:$0xff]   ;;  %v1472_v26 = vsel %vm6889_vm5, %v5591_v11, %v1471_v13  ;;  %v6243_v11 = vld [vmem:[%s6446_s20 + $0x60] sm:$0xf] }
  0x8b   : > { %9243 = vst [vmem:[#allocation21_spill] sm:$0xff] %v7021_v17  ;;  %9244 = vst [vmem:[#allocation22_spill] sm:$0xff] %v7023_v24 }
  0x8d   : > { %2081 = vmatpush1.bf16.msra.mxu1 %v6102_v22  ;;  %2463 = vmatpush1.bf16.msra.mxu0 %v6105_v33  ;;  %v1475_v22 = vsel %vm6889_vm5, %v1473_v45, %v1474_v49  ;;  %v1478_v33 = vrot.slane %v6689_v7, 5  ;;  %v5595_v45 = vrot.slane %v6243_v11, 9 }
  0x8e   : > { %2082 = vmatprep.subr.bf16.mxu1 %v6112_v37  ;;  %2464 = vmatprep.subr.bf16.mxu0 %v6115_v47  ;;  %v6146_v37 = vld [vmem:[%s9150_s2 + $0x374] ss:$8 sps:$4 sm:$0xff]   ;;  %v7062_v47 = vcombine.low %v6631_v3, %v6641_v9  ;;  %v7064_v28 = vcombine.low %v1472_v26, %v1475_v22  ;;  %v6245_v26 = vld [vmem:[%s6446_s20 + $0x70] sm:$0xf] }
  0x8f   : > { %1282 = vmatmul.mubr.bf16.gmra.mxu1 %v6980_v1  ;;  %1767 = vmatmul.mubr.bf16.gmra.mxu0 %v6982_v4  ;;  %v1506_v22 = vrot.slane %v6245_v26, 5 }
  0x90   : > { %1291 = vmatprep.mubr.bf16.mxu1 %v9235_v5  ;;  %1776 = vmatprep.mubr.bf16.mxu0 %v9235_v5  ;;  %9245 = vst [vmem:[#allocation23_spill] sm:$0xff] %v7062_v47  ;;  %9246 = vst [vmem:[#allocation24_spill] sm:$0xff] %v7064_v28 }
  0x91   : > { %2083 = vmatpush1.bf16.msra.mxu1 %v6110_v54  ;;  %2465 = vmatpush1.bf16.msra.mxu0 %v6113_v55  ;;  %v5592_v54 = vrot.slane %v6682_v0, 9  ;;  %v1480_v55 = vrot.slane %v1478_v33, 4 }
  0x92   : > { %2084 = vmatprep.subr.bf16.mxu1 %v6120_v27  ;;  %2466 = vmatprep.subr.bf16.mxu0 %v6123_v6  ;;  %v5593_v27 = vrot.slane %v6739_v18, 9  ;;  %v1487_v6 = vrot.slane %v1485_v21, 4 }
  0x93   : > { %v1479_v3 = vsel %vm6889_vm5, %v5592_v54, %v1478_v33  ;;  %v1482_v9 = vsel %vm6889_vm5, %v1480_v55, %v1481_v8  ;;  %v6247_v54 = vld [vmem:[%s6446_s20 + $0x74] sm:$0x1] }
  0x94   : > { %v7081_v52 = vcombine.low %v1479_v3, %v1482_v9  ;;  %v1486_v0 = vsel %vm6889_vm5, %v5593_v27, %v1485_v21  ;;  %v1509_v55 = vrot.slane %v6247_v54, 5  ;;  %v6248_v9 = vld [vmem:[%s6446_s20 + $0x7c] sm:$0xf] }
  0x95   : > { %2085 = vmatpush1.bf16.msra.mxu1 %v6118_v25  ;;  %2467 = vmatpush1.bf16.msra.mxu0 %v6121_v39  ;;  %v1488_v25 = vrot.slane %v6752_v38, 5  ;;  %v1492_v39 = vrot.slane %v6806_v53, 5  ;;  %v7096_v38 = vcombine.low %v6739_v18, %v6746_v29  ;;  %v1513_v21 = vrot.slane %v6248_v9, 5 }
  0x96   : > { %2086 = vmatprep.subr.bf16.mxu1 %v6128_v48  ;;  %2468 = vmatprep.subr.bf16.mxu0 %v6131_v63  ;;  %9248 = vst [vmem:[#allocation26_spill] sm:$0xff] %v7081_v52  ;;  %v1495_v48 = vrot.slane %v6811_v59, 5  ;;  %v6242_v63 = vld [vmem:[%s6446_s20 + $0x64] sm:$0xf]  ;;  %v7113_v59 = vcombine.low %v6797_v41, %v6806_v53 }
  0x97   : > { %1292 = vmatmul.mubr.bf16.gmra.mxu1 %v7021_v17  ;;  %1777 = vmatmul.mubr.bf16.gmra.mxu0 %v7023_v24  ;;  %v1489_v7 = vsel %vm6889_vm5, %v1487_v6, %v1488_v25  ;;  %9249 = vst [vmem:[#allocation27_spill] sm:$0xff] %v7096_v38  ;;  %v1494_v13 = vrot.slane %v1492_v39, 4  ;;  %v1493_v18 = vsel %vm6889_vm5, %v5594_v34, %v1492_v39  ;;  %v6249_v25 = vld [vmem:[%s6446_s20 + $0x78] sm:$0xf]  ;;  %v6250_v39 = vld [vmem:[%s6446_s20 + $0x80] sm:$0x1] }
  0x98   : > { %1301 = vmatprep.mubr.bf16.mxu1 %v9235_v5  ;;  %1786 = vmatprep.mubr.bf16.mxu0 %v9235_v5  ;;  %v7098_v50 = vcombine.low %v1486_v0, %v1489_v7  ;;  %9251 = vst [vmem:[#allocation29_spill] sm:$0xff] %v7113_v59  ;;  %v7128_v33 = vcombine.low %v6243_v11, %v6242_v63  ;;  %v5597_v0 = vrot.slane %v6249_v25, 9  ;;  %v1515_v7 = vrot.slane %v1513_v21, 4  ;;  %v6252_v11 = vld [vmem:[%s6446_s20 + $0x84] sm:$0xf] }
  0x99   : > { %2087 = vmatpush1.bf16.msra.mxu1 %v6126_v36  ;;  %2469 = vmatpush1.bf16.msra.mxu0 %v6129_v19  ;;  %v1496_v29 = vsel %vm6889_vm5, %v1494_v13, %v1495_v48  ;;  %v1499_v36 = vrot.slane %v6242_v63, 5  ;;  %v1516_v34 = vrot.slane %v6250_v39, 5  ;;  %v7158_v63 = vcombine.low %v6249_v25, %v6248_v9 }
  0x9a   : > { %2088 = vmatprep.subr.bf16.mxu1 %v6136_v14  ;;  %2470 = vmatprep.subr.bf16.mxu0 %v6139_v20  ;;  %9250 = vst [vmem:[#allocation28_spill] sm:$0xff] %v7098_v50  ;;  %v7115_v19 = vcombine.low %v1493_v18, %v1496_v29  ;;  %v6244_v14 = vld [vmem:[%s6446_s20 + $0x68] sm:$0x1]  ;;  %9253 = vst [vmem:[#allocation31_spill] sm:$0xff] %v7128_v33  ;;  %v1514_v13 = vsel %vm6889_vm5, %v5597_v0, %v1513_v21  ;;  %v1534_v25 = vrot.slane %v6703_v30, 5 }
  0x9b   : > { %v1501_v49 = vrot.slane %v1499_v36, 4  ;;  %v1502_v20 = vrot.slane %v6244_v14, 5  ;;  %v1500_v41 = vsel %vm6889_vm5, %v5595_v45, %v1499_v36  ;;  %v1517_v48 = vsel %vm6889_vm5, %v1515_v7, %v1516_v34  ;;  %v6251_v18 = vld [vmem:[%s6446_s20 + $0x88] sm:$0xf]  ;;  %v6253_v14 = vld [vmem:[%s6446_s20 + $0x8c] sm:$0x1] }
  0x9c   : > { %9252 = vst [vmem:[#allocation30_spill] sm:$0xff] %v7115_v19  ;;  %v1520_v29 = vrot.slane %v6251_v18, 5  ;;  %v7160_v36 = vcombine.low %v1514_v13, %v1517_v48  ;;  %v5598_v45 = vrot.slane %v6252_v11, 9  ;;  %v5600_v39 = vrot.slane %v6699_v57, 9  ;;  %v6257_v57 = vld [vmem:[%s6446_s20 + $0x9c] sm:$0xf] }
  0x9d   : > { %2089 = vmatpush1.bf16.msra.mxu1 %v6134_v12  ;;  %2471 = vmatpush1.bf16.msra.mxu0 %v6137_v10  ;;  %v1503_v53 = vsel %vm6889_vm5, %v1501_v49, %v1502_v20  ;;  %v6246_v10 = vld [vmem:[%s6446_s20 + $0x6c] sm:$0xf]  ;;  %v1523_v20 = vrot.slane %v6253_v14, 5  ;;  %v1536_v34 = vrot.slane %v1534_v25, 4  ;;  %v1537_v13 = vrot.slane %v6731_v62, 5 }
  0x9e   : > { %2822 = vmatprep.subr.bf16.mxu1 %v6143_v40  ;;  %3182 = vmatprep.subr.bf16.mxu0 %v6146_v37  ;;  %v7130_v12 = vcombine.low %v1500_v41, %v1503_v53  ;;  %v5596_v40 = vrot.slane %v6246_v10, 9  ;;  %v1508_v37 = vrot.slane %v1506_v22, 4  ;;  %v7143_v27 = vcombine.low %v6246_v10, %v6245_v26  ;;  %9257 = vst [vmem:[#allocation35_spill] sm:$0xff] %v7160_v36  ;;  %v6254_v26 = vld [vmem:[%s6446_s20 + $0x94] sm:$0xf] }
  0x9f   : > { %1302 = vmatmul.mubr.bf16.gmra.mxu1 %v7062_v47  ;;  %1787 = vmatmul.mubr.bf16.gmra.mxu0 %v7064_v28  ;;  %v1522_v49 = vrot.slane %v1520_v29, 4  ;;  %v1521_v41 = vsel %vm6889_vm5, %v5598_v45, %v1520_v29  ;;  %v7173_v10 = vcombine.low %v6252_v11, %v6251_v18  ;;  %v1535_v48 = vsel %vm6889_vm5, %v5600_v39, %v1534_v25  ;;  %v6150_v25 = vld [vmem:[%s9150_s2 + $0x360] ss:$8 sps:$4 sm:$0xff]  }
  0xa0   : > { %1311 = vmatprep.mubr.bf16.mxu1 %v9235_v5  ;;  %1796 = vmatprep.mubr.bf16.mxu0 %v9235_v5  ;;  %9254 = vst [vmem:[#allocation32_spill] sm:$0xff] %v7130_v12  ;;  %v1507_v8 = vsel %vm6889_vm5, %v5596_v40, %v1506_v22  ;;  %v1510_v3 = vsel %vm6889_vm5, %v1508_v37, %v1509_v55  ;;  %9255 = vst [vmem:[#allocation33_spill] sm:$0xff] %v7143_v27  ;;  %v1527_v22 = vrot.slane %v6254_v26, 5  ;;  %v6255_v37 = vld [vmem:[%s6446_s20 + $0x90] sm:$0xf] }
  0xa1   : > { %v7145_v6 = vcombine.low %v1507_v8, %v1510_v3  ;;  %v1524_v53 = vsel %vm6889_vm5, %v1522_v49, %v1523_v20  ;;  %v5599_v54 = vrot.slane %v6255_v37, 9  ;;  %v6256_v8 = vld [vmem:[%s6446_s20 + $0x98] sm:$0x1]  ;;  %v7188_v0 = vcombine.low %v6255_v37, %v6254_v26 }
  0xa2   : > { %v7175_v40 = vcombine.low %v1521_v41, %v1524_v53  ;;  %v1529_v55 = vrot.slane %v1527_v22, 4  ;;  %v1530_v3 = vrot.slane %v6256_v8, 5  ;;  %v1538_v18 = vsel %vm6889_vm5, %v1536_v34, %v1537_v13  ;;  %v6144_v8 = vld [vmem:[%s9150_s2 + $0x370] ss:$8 sps:$4 sm:$0xff]  }
  0xa3   : > { %9256 = vst [vmem:[#allocation34_spill] sm:$0xff] %v7145_v6  ;;  %v1528_v9 = vsel %vm6889_vm5, %v5599_v54, %v1527_v22  ;;  %v1541_v29 = vrot.slane %v6769_v56, 5  ;;  %v7205_v11 = vcombine.low %v6257_v57, %v6703_v30  ;;  %v7207_v62 = vcombine.low %v1535_v48, %v1538_v18  ;;  %v6153_v57 = vld [vmem:[%s9150_s2 + $0x2d0] ss:$8 sps:$4 sm:$0xff]  }
  0xa4   : > { %9258 = vst [vmem:[#allocation36_spill] sm:$0xff] %v7175_v40  ;;  %v1531_v21 = vsel %vm6889_vm5, %v1529_v55, %v1530_v3  ;;  %v5601_v45 = vrot.slane %v6759_v44, 9  ;;  %v1544_v14 = vrot.slane %v6786_v35, 5  ;;  %v1548_v41 = vrot.slane %v6827_v2, 5 }
  0xa5   : > { %v7190_v7 = vcombine.low %v1528_v9, %v1531_v21  ;;  %9260 = vst [vmem:[#allocation38_spill] sm:$0xff] %v7205_v11  ;;  %9261 = vst [vmem:[#allocation39_spill] sm:$0xff] %v7207_v62  ;;  %v1543_v49 = vrot.slane %v1541_v29, 4  ;;  %v7222_v53 = vcombine.low %v6759_v44, %v6769_v56  ;;  %v5602_v26 = vrot.slane %v6814_v60, 9  ;;  %v6147_v21 = vld [vmem:[%s9150_s2 + $0x2e0] ss:$8 sps:$4 sm:$0xff]  }
  0xa6   : > { %v1542_v20 = vsel %vm6889_vm5, %v5601_v45, %v1541_v29  ;;  %v1550_v22 = vrot.slane %v1548_v41, 4  ;;  %v1551_v37 = vrot.slane %v6846_v15, 5  ;;  %v7238_v56 = vcombine.low %v6814_v60, %v6827_v2  ;;  %v6141_v15 = vld [vmem:[%s9150_s2 + $0x2f0] ss:$8 sps:$4 sm:$0xff]   ;;  %v6149_v2 = vld [vmem:[%s9150_s2 + $0x2e4] ss:$8 sps:$4 sm:$0xff]  }
  0xa7   : > { %1312 = vmatmul.mubr.bf16.gmra.mxu1 %v7079_v31  ;;  %1797 = vmatmul.mubr.bf16.gmra.mxu0 %v7081_v52  ;;  %9259 = vst [vmem:[#allocation37_spill] sm:$0xff] %v7190_v7  ;;  %v1545_v30 = vsel %vm6889_vm5, %v1543_v49, %v1544_v14  ;;  %v1549_v54 = vsel %vm6889_vm5, %v5602_v26, %v1548_v41  ;;  %v6152_v60 = vld [vmem:[%s9150_s2 + $0x364] ss:$8 sps:$4 sm:$0xff]   ;;  %v6156_v45 = vld [vmem:[%s9150_s2 + $0x350] ss:$8 sps:$4 sm:$0xff]  }
  0xa8   : > { %1321 = vmatprep.mubr.bf16.mxu1 %v9235_v5  ;;  %1806 = vmatprep.mubr.bf16.mxu0 %v9235_v5  ;;  %v7224_v35 = vcombine.low %v1542_v20, %v1545_v30  ;;  %v1552_v44 = vsel %vm6889_vm5, %v1550_v22, %v1551_v37  ;;  %v6161_v49 = vld [vmem:[%s9150_s2 + $0x2c4] ss:$8 sps:$4 sm:$0xff]   ;;  %v9265_v41 = vld [vmem:[#allocation8_spill] sm:$0xff]  ;;  %v6159_v37 = vld [vmem:[%s9150_s2 + $0x2c0] ss:$8 sps:$4 sm:$0xff]  }
  0xa9   : > { %v7240_v55 = vcombine.low %v1549_v54, %v1552_v44  ;;  %v6164_v14 = vld [vmem:[%s9150_s2 + $0x344] ss:$8 sps:$4 sm:$0xff]   ;;  %v6162_v54 = vld [vmem:[%s9150_s2 + $0x340] ss:$8 sps:$4 sm:$0xff]   ;;  %v6167_v44 = vld [vmem:[%s9150_s2 + $0x2b4] ss:$8 sps:$4 sm:$0xff]  }
  0xaa   : > { %9262 = vst [vmem:[#allocation40_spill] sm:$0xff] %v7224_v35 }
  0xab   : > { %9263 = vst [vmem:[#allocation41_spill] sm:$0xff] %v7240_v55 }
  0xaf   : > { %1322 = vmatmul.mubr.bf16.gmra.mxu1 %v7096_v38  ;;  %1807 = vmatmul.mubr.bf16.gmra.mxu0 %v7098_v50  ;;  %v9280_v50 = vld [vmem:[#allocation14_spill] sm:$0xff] }
  0xb0   : > { %1331 = vmatprep.mubr.bf16.mxu1 %v9235_v5  ;;  %1816 = vmatprep.mubr.bf16.mxu0 %v9235_v5 }
  0xb7   : > { %1332 = vmatmul.mubr.bf16.gmra.mxu1 %v7113_v59  ;;  %1817 = vmatmul.mubr.bf16.gmra.mxu0 %v7115_v19 }
  0xb8   : > { %1341 = vmatprep.mubr.bf16.mxu1 %v9235_v5  ;;  %1826 = vmatprep.mubr.bf16.mxu0 %v9235_v5 }
  0xbf   : > { %1342 = vmatmul.mubr.bf16.gmra.mxu1 %v7128_v33  ;;  %1827 = vmatmul.mubr.bf16.gmra.mxu0 %v7130_v12 }
  0xc0   : > { %1351 = vmatprep.mubr.bf16.mxu1 %v9235_v5  ;;  %1836 = vmatprep.mubr.bf16.mxu0 %v9235_v5 }
  0xc7   : > { %1352 = vmatmul.mubr.bf16.gmra.mxu1 %v7143_v27  ;;  %1837 = vmatmul.mubr.bf16.gmra.mxu0 %v7145_v6  ;;  %v6195_v6 = vld [vmem:[%s9150_s2 + $0x474] ss:$8 sps:$4 sm:$0xff]  }
  0xc8   : > { %1361 = vmatprep.mubr.bf16.mxu1 %v9235_v5  ;;  %1846 = vmatprep.mubr.bf16.mxu0 %v9235_v5 }
  0xcf   : > { %1362 = vmatmul.mubr.bf16.gmra.mxu1 %v7158_v63  ;;  %1847 = vmatmul.mubr.bf16.gmra.mxu0 %v7160_v36  ;;  %v6186_v36 = vld [vmem:[%s9150_s2 + $0x300] ss:$8 sps:$4 sm:$0xff]  }
  0xd0   : > { %1371 = vmatprep.mubr.bf16.mxu1 %v9235_v5  ;;  %1856 = vmatprep.mubr.bf16.mxu0 %v9235_v5 }
  0xd7   : > { %1372 = vmatmul.mubr.bf16.gmra.mxu1 %v7173_v10  ;;  %1857 = vmatmul.mubr.bf16.gmra.mxu0 %v7175_v40  ;;  %v6183_v40 = vld [vmem:[%s9150_s2 + $0x280] ss:$8 sps:$4 sm:$0xff]  }
  0xd8   : > { %1381 = vmatprep.mubr.bf16.mxu1 %v9235_v5  ;;  %1866 = vmatprep.mubr.bf16.mxu0 %v9235_v5 }
  0xdf   : > { %1382 = vmatmul.mubr.bf16.gmra.mxu1 %v7188_v0  ;;  %1867 = vmatmul.mubr.bf16.gmra.mxu0 %v7190_v7  ;;  %v9275_v7 = vld [vmem:[#allocation12_spill] sm:$0xff] }
  0xe0   : > { %1391 = vmatprep.mubr.bf16.mxu1 %v9235_v5  ;;  %1876 = vmatprep.mubr.bf16.mxu0 %v9235_v5 }
  0xe7   : > { %1392 = vmatmul.mubr.bf16.gmra.mxu1 %v7205_v11  ;;  %1877 = vmatmul.mubr.bf16.gmra.mxu0 %v7207_v62  ;;  %v6188_v62 = vld [vmem:[%s9150_s2 + $0x304] ss:$8 sps:$4 sm:$0xff]  }
  0xe8   : > { %1401 = vmatprep.mubr.bf16.mxu1 %v9235_v5  ;;  %1886 = vmatprep.mubr.bf16.mxu0 %v9235_v5 }
  0xef   : > { %1402 = vmatmul.mubr.bf16.gmra.mxu1 %v7222_v53  ;;  %1887 = vmatmul.mubr.bf16.gmra.mxu0 %v7224_v35  ;;  %v6185_v35 = vld [vmem:[%s9150_s2 + $0x284] ss:$8 sps:$4 sm:$0xff]  }
  0xf0   : > { %1411 = vmatprep.mubr.bf16.mxu1 %v9235_v5  ;;  %1896 = vmatprep.mubr.bf16.mxu0 %v9235_v5 }
  0xf7   : > { %1412 = vmatmul.mubr.bf16.gmra.mxu1 %v7238_v56  ;;  %1897 = vmatmul.mubr.bf16.gmra.mxu0 %v7240_v55 }
  0xf8   : > { %2106 = vmatprep.mubr.bf16.mxu1 %v9235_v5  ;;  %2488 = vmatprep.mubr.bf16.mxu0 %v9235_v5 }
  0xff   : > { %v7258_v3 = vpop.f32.mrf.mxu0  ;;  %v7260_v9 = vpop.f32.mrf.mxu1  ;;  %2107 = vmatmul.mubr.bf16.vlgmr.msra.gmra.mxu1 %v6939_v16  ;;  %2489 = vmatmul.mubr.bf16.vlgmr.msra.gmra.mxu0 %v6558_v43  ;;  %v6155_v43 = vld [vmem:[%s9150_s2 + $0x2d4] ss:$8 sps:$4 sm:$0xff]  }
 0x100   : > { %2823 = vmatpush1.bf16.msra.mxu1 %v6141_v15  ;;  %3183 = vmatpush1.bf16.msra.mxu0 %v6144_v8  ;;  %v6158_v16 = vld [vmem:[%s9150_s2 + $0x354] ss:$8 sps:$4 sm:$0xff]  }
 0x101   : > { %v7270_v39 = vpop.f32.mrf.mxu0  ;;  %v7272_v34 = vpop.f32.mrf.mxu1  ;;  %2116 = vmatprep.mubr.bf16.mxu1 %v9235_v5  ;;  %2498 = vmatprep.mubr.bf16.mxu0 %v9235_v5  ;;  %v6170_v15 = vld [vmem:[%s9150_s2 + $0x334] ss:$8 sps:$4 sm:$0xff]  }
 0x102   : > { %2824 = vmatprep.subr.bf16.mxu1 %v6149_v2  ;;  %3184 = vmatprep.subr.bf16.mxu0 %v6152_v60 }
 0x103   : > { %v7282_v13 = vpop.f32.mrf.mxu0  ;;  %v7284_v48 = vpop.f32.mrf.mxu1 }
 0x104   : > { %2825 = vmatpush1.bf16.msra.mxu1 %v6147_v21  ;;  %3185 = vmatpush1.bf16.msra.mxu0 %v6150_v25  ;;  %v6165_v25 = vld [vmem:[%s9150_s2 + $0x2b0] ss:$8 sps:$4 sm:$0xff]  }
 0x105   : > { %v7286_v18 = vpop.f32.mrf.mxu0  ;;  %v7288_v29 = vpop.f32.mrf.mxu1  ;;  %2826 = vmatprep.subr.bf16.mxu1 %v6155_v43  ;;  %3186 = vmatprep.subr.bf16.mxu0 %v6158_v16  ;;  %v6168_v43 = vld [vmem:[%s9150_s2 + $0x330] ss:$8 sps:$4 sm:$0xff]   ;;  %v6173_v16 = vld [vmem:[%s9150_s2 + $0x2a4] ss:$8 sps:$4 sm:$0xff]  }
 0x107   : > { %v7302_v20 = vpop.f32.mrf.mxu0  ;;  %v7304_v30 = vpop.f32.mrf.mxu1  ;;  %2117 = vmatmul.mubr.bf16.gmra.mxu1 %v6980_v1  ;;  %2499 = vmatmul.mubr.bf16.gmra.mxu0 %v9265_v41  ;;  %v6182_v41 = vld [vmem:[%s9150_s2 + $0x314] ss:$8 sps:$4 sm:$0xff]  }
 0x108   : > { %9264 = vst [vmem:[#allocation42_spill] sm:$0xff] %v7304_v30  ;;  %2126 = vmatprep.mubr.bf16.mxu1 %v9235_v5  ;;  %2508 = vmatprep.mubr.bf16.mxu0 %v9235_v5 }
 0x109   : > { %v7310_v26 = vpop.f32.mrf.mxu0  ;;  %v7312_v22 = vpop.f32.mrf.mxu1  ;;  %2827 = vmatpush1.bf16.msra.mxu1 %v6153_v57  ;;  %3187 = vmatpush1.bf16.msra.mxu0 %v6156_v45  ;;  %v6176_v57 = vld [vmem:[%s9150_s2 + $0x324] ss:$8 sps:$4 sm:$0xff]  }
 0x10a   : > { %9266 = vst [vmem:[#allocation43_spill] sm:$0xff] %v7312_v22  ;;  %2828 = vmatprep.subr.bf16.mxu1 %v6161_v49  ;;  %3188 = vmatprep.subr.bf16.mxu0 %v6164_v14  ;;  %v9270_v14 = vld [vmem:[#allocation10_spill] sm:$0xff] }
 0x10b   : > { %v7326_v8 = vpop.f32.mrf.mxu0  ;;  %v7328_v2 = vpop.f32.mrf.mxu1 }
 0x10c   : > { %9267 = vst [vmem:[#allocation44_spill] sm:$0xff] %v7328_v2 }
 0x10d   : > { %v7330_v60 = vpop.f32.mrf.mxu0  ;;  %v7332_v21 = vpop.f32.mrf.mxu1  ;;  %2829 = vmatpush1.bf16.msra.mxu1 %v6159_v37  ;;  %3189 = vmatpush1.bf16.msra.mxu0 %v6162_v54 }
 0x10e   : > { %9268 = vst [vmem:[#allocation45_spill] sm:$0xff] %v7332_v21  ;;  %2830 = vmatprep.subr.bf16.mxu1 %v6167_v44  ;;  %3190 = vmatprep.subr.bf16.mxu0 %v6170_v15  ;;  %v6171_v44 = vld [vmem:[%s9150_s2 + $0x2a0] ss:$8 sps:$4 sm:$0xff]  }
 0x10f   : > { %v7346_v45 = vpop.f32.mrf.mxu0  ;;  %v7348_v49 = vpop.f32.mrf.mxu1  ;;  %2127 = vmatmul.mubr.bf16.gmra.mxu1 %v7021_v17  ;;  %2509 = vmatmul.mubr.bf16.gmra.mxu0 %v9270_v14  ;;  %v6174_v15 = vld [vmem:[%s9150_s2 + $0x320] ss:$8 sps:$4 sm:$0xff]   ;;  %v6179_v14 = vld [vmem:[%s9150_s2 + $0x294] ss:$8 sps:$4 sm:$0xff]  }
 0x110   : > { %9269 = vst [vmem:[#allocation46_spill] sm:$0xff] %v7348_v49  ;;  %2136 = vmatprep.mubr.bf16.mxu1 %v9235_v5  ;;  %2518 = vmatprep.mubr.bf16.mxu0 %v9235_v5 }
 0x111   : > { %v7354_v37 = vpop.f32.mrf.mxu0  ;;  %v7356_v54 = vpop.f32.mrf.mxu1  ;;  %2831 = vmatpush1.bf16.msra.mxu1 %v6165_v25  ;;  %3191 = vmatpush1.bf16.msra.mxu0 %v6168_v43 }
 0x112   : > { %9271 = vst [vmem:[#allocation47_spill] sm:$0xff] %v7356_v54  ;;  %2832 = vmatprep.subr.bf16.mxu1 %v6173_v16  ;;  %3192 = vmatprep.subr.bf16.mxu0 %v6176_v57  ;;  %v6177_v16 = vld [vmem:[%s9150_s2 + $0x290] ss:$8 sps:$4 sm:$0xff]  }
 0x113   : > { %v7370_v25 = vpop.f32.mrf.mxu0  ;;  %v7372_v43 = vpop.f32.mrf.mxu1  ;;  %v6180_v57 = vld [vmem:[%s9150_s2 + $0x310] ss:$8 sps:$4 sm:$0xff]  }
 0x114   : > { %9272 = vst [vmem:[#allocation48_spill] sm:$0xff] %v7372_v43 }
 0x115   : > { %v7374_v51 = vpop.f32.mrf.mxu0  ;;  %v7376_v55 = vpop.f32.mrf.mxu1  ;;  %2833 = vmatpush1.bf16.msra.mxu1 %v6171_v44  ;;  %3193 = vmatpush1.bf16.msra.mxu0 %v6174_v15 }
 0x116   : > { %9273 = vst [vmem:[#allocation49_spill] sm:$0xff] %v7376_v55  ;;  %2834 = vmatprep.subr.bf16.mxu1 %v6179_v14  ;;  %3194 = vmatprep.subr.bf16.mxu0 %v6182_v41 }
 0x117   : > { %v7390_v44 = vpop.f32.mrf.mxu0  ;;  %v7392_v15 = vpop.f32.mrf.mxu1  ;;  %2137 = vmatmul.mubr.bf16.gmra.mxu1 %v7062_v47  ;;  %2519 = vmatmul.mubr.bf16.gmra.mxu0 %v9275_v7  ;;  %v6192_v7 = vld [vmem:[%s9150_s2 + $0x3f4] ss:$8 sps:$4 sm:$0xff]  }
 0x118   : > { %9274 = vst [vmem:[#allocation50_spill] sm:$0xff] %v7392_v15  ;;  %2146 = vmatprep.mubr.bf16.mxu1 %v9235_v5  ;;  %2528 = vmatprep.mubr.bf16.mxu0 %v9235_v5 }
 0x119   : > { %v7398_v41 = vpop.f32.mrf.mxu0  ;;  %v7400_v14 = vpop.f32.mrf.mxu1  ;;  %2835 = vmatpush1.bf16.msra.mxu1 %v6177_v16  ;;  %3195 = vmatpush1.bf16.msra.mxu0 %v6180_v57 }
 0x11a   : > { %9276 = vst [vmem:[#allocation51_spill] sm:$0xff] %v7400_v14  ;;  %2836 = vmatprep.subr.bf16.mxu1 %v6185_v35  ;;  %3196 = vmatprep.subr.bf16.mxu0 %v6188_v62 }
 0x11b   : > { %v7414_v16 = vpop.f32.mrf.mxu0  ;;  %v7416_v57 = vpop.f32.mrf.mxu1  ;;  %v9323_v32 = vld [vmem:[#allocation48_spill] sm:$0xff] }
 0x11c   : > { %9277 = vst [vmem:[#allocation52_spill] sm:$0xff] %v7416_v57 }
 0x11d   : > { %v7418_v12 = vpop.f32.mrf.mxu0  ;;  %v7420_v19 = vpop.f32.mrf.mxu1  ;;  %2837 = vmatpush1.bf16.msra.mxu1 %v6183_v40  ;;  %3197 = vmatpush1.bf16.msra.mxu0 %v6186_v36 }
 0x11e   : > { %9278 = vst [vmem:[#allocation53_spill] sm:$0xff] %v7420_v19  ;;  %3564 = vmatprep.subr.bf16.mxu1 %v6192_v7  ;;  %3930 = vmatprep.subr.bf16.mxu0 %v6195_v6 }
 0x11f   : > { %v7422_v62 = vpop.f32.mrf.mxu0  ;;  %v7424_v35 = vpop.f32.mrf.mxu1  ;;  %2147 = vmatmul.mubr.bf16.gmra.mxu1 %v7079_v31  ;;  %2529 = vmatmul.mubr.bf16.gmra.mxu0 %v9280_v50 }
 0x120   : > { %9279 = vst [vmem:[#allocation54_spill] sm:$0xff] %v7424_v35  ;;  %2156 = vmatprep.mubr.bf16.mxu1 %v9235_v5  ;;  %2538 = vmatprep.mubr.bf16.mxu0 %v9235_v5 }
 0x121   : > { %v7430_v52 = vpop.f32.mrf.mxu0  ;;  %v7432_v57 = vpop.f32.mrf.mxu1 }
 0x122   : > { %9281 = vst [vmem:[#allocation55_spill] sm:$0xff] %v7432_v57 }
 0x123   : > { %v7434_v40 = vpop.f32.mrf.mxu0  ;;  %v7436_v36 = vpop.f32.mrf.mxu1 }
 0x124   : > { %9282 = vst [vmem:[#allocation56_spill] sm:$0xff] %v7436_v36 }
 0x125   : > { %v7438_v6 = vpop.f32.mrf.mxu0  ;;  %v7440_v7 = vpop.f32.mrf.mxu1 }
 0x126   : > { %9283 = vst [vmem:[#allocation57_spill] sm:$0xff] %v7440_v7 }
 0x127   : > { %v7442_v35 = vpop.f32.mrf.mxu0  ;;  %v7444_v19 = vpop.f32.mrf.mxu1  ;;  %2157 = vmatmul.mubr.bf16.gmra.mxu1 %v7096_v38  ;;  %2539 = vmatmul.mubr.bf16.gmra.mxu0 %v6866_v23 }
 0x128   : > { %9284 = vst [vmem:[#allocation58_spill] sm:$0xff] %v7444_v19  ;;  %2166 = vmatprep.mubr.bf16.mxu1 %v9235_v5  ;;  %2548 = vmatprep.mubr.bf16.mxu0 %v9235_v5 }
 0x129   : > { %v7450_v50 = vpop.f32.mrf.mxu0  ;;  %v7452_v57 = vpop.f32.mrf.mxu1 }
 0x12a   : > { %9285 = vst [vmem:[#allocation59_spill] sm:$0xff] %v7452_v57 }
 0x12b   : > { %v7454_v36 = vpop.f32.mrf.mxu0  ;;  %v7456_v14 = vpop.f32.mrf.mxu1 }
 0x12c   : > { %9286 = vst [vmem:[#allocation60_spill] sm:$0xff] %v7456_v14 }
 0x12d   : > { %v7458_v7 = vpop.f32.mrf.mxu0  ;;  %v7460_v15 = vpop.f32.mrf.mxu1 }
 0x12e   : > { %9287 = vst [vmem:[#allocation61_spill] sm:$0xff] %v7460_v15 }
 0x12f   : > { %v7462_v19 = vpop.f32.mrf.mxu0  ;;  %v7464_v38 = vpop.f32.mrf.mxu1  ;;  %2167 = vmatmul.mubr.bf16.gmra.mxu1 %v7113_v59  ;;  %2549 = vmatmul.mubr.bf16.gmra.mxu0 %v6883_v42  ;;  %v9293_v42 = vld [vmem:[#allocation6_spill] sm:$0xff] }
 0x130   : > { %9288 = vst [vmem:[#allocation62_spill] sm:$0xff] %v7464_v38  ;;  %2176 = vmatprep.mubr.bf16.mxu1 %v9235_v5  ;;  %2558 = vmatprep.mubr.bf16.mxu0 %v9235_v5 }
 0x131   : > { %v7470_v23 = vpop.f32.mrf.mxu0  ;;  %v7472_v57 = vpop.f32.mrf.mxu1 }
 0x132   : > { %9289 = vst [vmem:[#allocation63_spill] sm:$0xff] %v7472_v57 }
 0x133   : > { %v7474_v14 = vpop.f32.mrf.mxu0  ;;  %v7476_v31 = vpop.f32.mrf.mxu1 }
 0x134   : > { %9290 = vst [vmem:[#allocation64_spill] sm:$0xff] %v7476_v31 }
 0x135   : > { %v7478_v15 = vpop.f32.mrf.mxu0  ;;  %v7480_v28 = vpop.f32.mrf.mxu1 }
 0x136   : > { %9291 = vst [vmem:[#allocation65_spill] sm:$0xff] %v7480_v28 }
 0x137   : > { %v7482_v38 = vpop.f32.mrf.mxu0  ;;  %v7484_v59 = vpop.f32.mrf.mxu1  ;;  %2177 = vmatmul.mubr.bf16.gmra.mxu1 %v7128_v33  ;;  %2559 = vmatmul.mubr.bf16.gmra.mxu0 %v9293_v42  ;;  %v9297_v42 = vld [vmem:[#allocation7_spill] sm:$0xff] }
 0x138   : > { %9292 = vst [vmem:[#allocation66_spill] sm:$0xff] %v7484_v59  ;;  %2186 = vmatprep.mubr.bf16.mxu1 %v9235_v5  ;;  %2568 = vmatprep.mubr.bf16.mxu0 %v9235_v5 }
 0x139   : > { %v7490_v57 = vpop.f32.mrf.mxu0  ;;  %v7492_v55 = vpop.f32.mrf.mxu1 }
 0x13a   : > { %9294 = vst [vmem:[#allocation67_spill] sm:$0xff] %v7492_v55 }
 0x13b   : > { %v7494_v31 = vpop.f32.mrf.mxu0  ;;  %v7496_v43 = vpop.f32.mrf.mxu1 }
 0x13c   : > { %9295 = vst [vmem:[#allocation68_spill] sm:$0xff] %v7496_v43 }
 0x13d   : > { %v7498_v28 = vpop.f32.mrf.mxu0  ;;  %v7500_v54 = vpop.f32.mrf.mxu1 }
 0x13e   : > { %9296 = vst [vmem:[#allocation69_spill] sm:$0xff] %v7500_v54 }
 0x13f   : > { %v1263_v59 = vpop.f32.mrf.mxu1  ;;  %v1748_v33 = vpop.f32.mrf.mxu0  ;;  %2187 = vmatmul.mubr.bf16.gmra.mxu1 %v7143_v27  ;;  %2569 = vmatmul.mubr.bf16.gmra.mxu0 %v9297_v42 }
 0x140   : > { %v1264_v49 = vadd.f32 %v1263_v59, %v7258_v3  ;;  %2196 = vmatprep.mubr.bf16.mxu1 %v9235_v5  ;;  %2578 = vmatprep.mubr.bf16.mxu0 %v9235_v5 }
 0x141   : > { %v1265_v55 = vpop.f32.mrf.mxu1  ;;  %v1750_v47 = vpop.f32.mrf.mxu0 }
 0x142   : > { %v7507_v24 = vadd.f32 %v1748_v33, %v1264_v49  ;;  %v1266_v43 = vadd.f32 %v1265_v55, %v7270_v39  ;;  %v9298_v33 = vld [vmem:[#allocation9_spill] sm:$0xff] }
 0x143   : > { %v1267_v21 = vpop.f32.mrf.mxu1  ;;  %v1752_v54 = vpop.f32.mrf.mxu0 }
 0x144   : > { %v7510_v2 = vadd.f32 %v1750_v47, %v1266_v43  ;;  %v1268_v27 = vadd.f32 %v1267_v21, %v7282_v13 }
 0x145   : > { %v1269_v22 = vpop.f32.mrf.mxu1  ;;  %v1754_v42 = vpop.f32.mrf.mxu0 }
 0x146   : > { %v7513_v30 = vadd.f32 %v1752_v54, %v1268_v27  ;;  %v1270_v59 = vadd.f32 %v1269_v22, %v7286_v18 }
 0x147   : > { %v1273_v3 = vpop.f32.mrf.mxu1  ;;  %v1758_v17 = vpop.f32.mrf.mxu0  ;;  %2197 = vmatmul.mubr.bf16.gmra.mxu1 %v7158_v63  ;;  %2579 = vmatmul.mubr.bf16.gmra.mxu0 %v9298_v33 }
 0x148   : > { %v7518_v49 = vadd.f32 %v1754_v42, %v1270_v59  ;;  %v1274_v55 = vadd.f32 %v1273_v3, %v7302_v20  ;;  %2206 = vmatprep.mubr.bf16.mxu1 %v9235_v5  ;;  %2588 = vmatprep.mubr.bf16.mxu0 %v9235_v5 }
 0x149   : > { %v1275_v47 = vpop.f32.mrf.mxu1  ;;  %v1760_v39 = vpop.f32.mrf.mxu0 }
 0x14a   : > { %v7523_v27 = vadd.f32 %v1758_v17, %v1274_v55  ;;  %v1276_v13 = vadd.f32 %v1275_v47, %v7310_v26  ;;  %v9299_v17 = vld [vmem:[#allocation11_spill] sm:$0xff] }
 0x14b   : > { %v1277_v18 = vpop.f32.mrf.mxu1  ;;  %v1762_v22 = vpop.f32.mrf.mxu0 }
 0x14c   : > { %v7526_v21 = vadd.f32 %v1760_v39, %v1276_v13  ;;  %v1278_v54 = vadd.f32 %v1277_v18, %v7326_v8 }
 0x14d   : > { %v1279_v42 = vpop.f32.mrf.mxu1  ;;  %v1764_v43 = vpop.f32.mrf.mxu0 }
 0x14e   : > { %v7529_v59 = vadd.f32 %v1762_v22, %v1278_v54  ;;  %v1280_v20 = vadd.f32 %v1279_v42, %v7330_v60 }
 0x14f   : > { %v1283_v3 = vpop.f32.mrf.mxu1  ;;  %v1768_v33 = vpop.f32.mrf.mxu0  ;;  %2207 = vmatmul.mubr.bf16.gmra.mxu1 %v7173_v10  ;;  %2589 = vmatmul.mubr.bf16.gmra.mxu0 %v9299_v17 }
 0x150   : > { %v7534_v55 = vadd.f32 %v1764_v43, %v1280_v20  ;;  %v1284_v26 = vadd.f32 %v1283_v3, %v7346_v45  ;;  %2216 = vmatprep.mubr.bf16.mxu1 %v9235_v5  ;;  %2598 = vmatprep.mubr.bf16.mxu0 %v9235_v5 }
 0x151   : > { %v1285_v8 = vpop.f32.mrf.mxu1  ;;  %v1770_v47 = vpop.f32.mrf.mxu0 }
 0x152   : > { %v7539_v39 = vadd.f32 %v1768_v33, %v1284_v26  ;;  %v1286_v60 = vadd.f32 %v1285_v8, %v7354_v37  ;;  %v9302_v33 = vld [vmem:[#allocation13_spill] sm:$0xff] }
 0x153   : > { %v1287_v13 = vpop.f32.mrf.mxu1  ;;  %v1772_v18 = vpop.f32.mrf.mxu0 }
 0x154   : > { %v7542_v22 = vadd.f32 %v1770_v47, %v1286_v60  ;;  %v1288_v54 = vadd.f32 %v1287_v13, %v7370_v25 }
 0x155   : > { %v1289_v42 = vpop.f32.mrf.mxu1  ;;  %v1774_v43 = vpop.f32.mrf.mxu0 }
 0x156   : > { %9300 = vst [vmem:[#allocation70_spill] sm:$0xff] %v7542_v22  ;;  %v7545_v20 = vadd.f32 %v1772_v18, %v1288_v54  ;;  %v1290_v45 = vadd.f32 %v1289_v42, %v7374_v51  ;;  %v7562_v42 = vld [vmem:[%s6446_s20 + $0xc0] sm:$0xf] }
 0x157   : > { %v1293_v3 = vpop.f32.mrf.mxu1  ;;  %v1778_v17 = vpop.f32.mrf.mxu0  ;;  %2217 = vmatmul.mubr.bf16.gmra.mxu1 %v7188_v0  ;;  %2599 = vmatmul.mubr.bf16.gmra.mxu0 %v9302_v33 }
 0x158   : > { %9301 = vst [vmem:[#allocation71_spill] sm:$0xff] %v7545_v20  ;;  %v7550_v37 = vadd.f32 %v1774_v43, %v1290_v45  ;;  %v1294_v26 = vadd.f32 %v1293_v3, %v7390_v44  ;;  %2226 = vmatprep.mubr.bf16.mxu1 %v9235_v5  ;;  %2608 = vmatprep.mubr.bf16.mxu0 %v9235_v5  ;;  %v7565_v45 = vld [vmem:[%s6446_s20 + $0xc4] sm:$0xf]  ;;  %v7588_v20 = vld [vmem:[%s6446_s20 + $0xc8] sm:$0x1] }
 0x159   : > { %v1295_v25 = vpop.f32.mrf.mxu1  ;;  %v1780_v8 = vpop.f32.mrf.mxu0 }
 0x15a   : > { %9303 = vst [vmem:[#allocation72_spill] sm:$0xff] %v7550_v37  ;;  %v7555_v47 = vadd.f32 %v1778_v17, %v1294_v26  ;;  %v1296_v51 = vadd.f32 %v1295_v25, %v7398_v41  ;;  %v9307_v41 = vld [vmem:[#allocation15_spill] sm:$0xff]  ;;  %v2332_v25 = vshrl.u32 %v7562_v42, 16 }
 0x15b   : > { %v1297_v60 = vpop.f32.mrf.mxu1  ;;  %v1782_v13 = vpop.f32.mrf.mxu0 }
 0x15c   : > { %9304 = vst [vmem:[#allocation73_spill] sm:$0xff] %v7555_v47  ;;  %v7558_v18 = vadd.f32 %v1780_v8, %v1296_v51  ;;  %v1298_v54 = vadd.f32 %v1297_v60, %v7414_v16  ;;  %v2335_v16 = vshll.u32 %v7562_v42, 16  ;;  %v2345_v60 = vshrl.u32 %v7565_v45, 16 }
 0x15d   : > { %v1299_v43 = vpop.f32.mrf.mxu1  ;;  %v1784_v44 = vpop.f32.mrf.mxu0 }
 0x15e   : > { %9305 = vst [vmem:[#allocation74_spill] sm:$0xff] %v7558_v18  ;;  %v7567_v3 = vadd.f32 %v1782_v13, %v1298_v54  ;;  %v1300_v33 = vadd.f32 %v1299_v43, %v7418_v12  ;;  %v2341_v12 = vshll.u32 %v7565_v45, 16  ;;  %v2347_v47 = vrot.slane %v2345_v60, 4 }
 0x15f   : > { %v1303_v17 = vpop.f32.mrf.mxu1  ;;  %v1788_v26 = vpop.f32.mrf.mxu0  ;;  %2227 = vmatmul.mubr.bf16.gmra.mxu1 %v7205_v11  ;;  %2609 = vmatmul.mubr.bf16.gmra.mxu0 %v9307_v41 }
 0x160   : > { %9306 = vst [vmem:[#allocation75_spill] sm:$0xff] %v7567_v3  ;;  %v7574_v8 = vadd.f32 %v1784_v44, %v1300_v33  ;;  %v1304_v51 = vadd.f32 %v1303_v17, %v7422_v62  ;;  %2236 = vmatprep.mubr.bf16.mxu1 %v9235_v5  ;;  %2618 = vmatprep.mubr.bf16.mxu0 %v9235_v5  ;;  %v2334_v44 = vrot.slane %v2332_v25, 4  ;;  %v2343_v18 = vrot.slane %v2341_v12, 5 }
 0x161   : > { %v1305_v13 = vpop.f32.mrf.mxu1  ;;  %v1790_v54 = vpop.f32.mrf.mxu0 }
 0x162   : > { %9308 = vst [vmem:[#allocation76_spill] sm:$0xff] %v7574_v8  ;;  %v7581_v43 = vadd.f32 %v1788_v26, %v1304_v51  ;;  %v1306_v41 = vadd.f32 %v1305_v13, %v7430_v52  ;;  %v2337_v8 = vrot.slane %v2335_v16, 5  ;;  %v2351_v16 = vshll.u32 %v7588_v20, 16 }
 0x163   : > { %v1307_v3 = vpop.f32.mrf.mxu1  ;;  %v1792_v33 = vpop.f32.mrf.mxu0 }
 0x164   : > { %v7584_v62 = vadd.f32 %v1790_v54, %v1306_v41  ;;  %v1308_v17 = vadd.f32 %v1307_v3, %v7434_v40  ;;  %v2338_v41 = vor.u32 %v2337_v8, %v2334_v44  ;;  %v2348_v3 = vor.u32 %v2347_v47, %v2343_v18 }
 0x165   : > { %v1309_v11 = vpop.f32.mrf.mxu1  ;;  %v1794_v37 = vpop.f32.mrf.mxu0  ;;  %v2353_v44 = vrot.slane %v2351_v16, 5 }
 0x166   : > { %v7590_v22 = vadd.f32 %v1792_v33, %v1308_v17  ;;  %v1310_v26 = vadd.f32 %v1309_v11, %v7438_v6  ;;  %v2339_v8 = vrot.slane %v2338_v41, 4  ;;  %v2349_v33 = vrot.slane %v2348_v3, 4 }
 0x167   : > { %v1313_v51 = vpop.f32.mrf.mxu1  ;;  %v1798_v52 = vpop.f32.mrf.mxu0  ;;  %2237 = vmatmul.mubr.bf16.gmra.mxu1 %v7222_v53  ;;  %2619 = vmatmul.mubr.bf16.gmra.mxu0 %v6868_v46 }
 0x168   : > { %v7595_v25 = vadd.f32 %v1794_v37, %v1310_v26  ;;  %v1314_v40 = vadd.f32 %v1313_v51, %v7442_v35  ;;  %2246 = vmatprep.mubr.bf16.mxu1 %v9235_v5  ;;  %2628 = vmatprep.mubr.bf16.mxu0 %v9235_v5 }
 0x169   : > { %v1315_v12 = vpop.f32.mrf.mxu1  ;;  %v1800_v11 = vpop.f32.mrf.mxu0 }
 0x16a   : > { %v7601_v6 = vadd.f32 %v1798_v52, %v1314_v40  ;;  %v1316_v60 = vadd.f32 %v1315_v12, %v7450_v50  ;;  %v2344_v50 = vsel %vm6482_vm2, %v2339_v8, %v2343_v18  ;;  %v7626_v18 = vcombine.low %v7562_v42, %v7565_v45 }
 0x16b   : > { %v1317_v13 = vpop.f32.mrf.mxu1  ;;  %v1802_v54 = vpop.f32.mrf.mxu0 }
 0x16c   : > { %v7604_v37 = vadd.f32 %v1800_v11, %v1316_v60  ;;  %v1318_v35 = vadd.f32 %v1317_v13, %v7454_v36 }
 0x16d   : > { %v1319_v17 = vpop.f32.mrf.mxu1  ;;  %v1804_v26 = vpop.f32.mrf.mxu0 }
 0x16e   : > { %v7607_v47 = vadd.f32 %v1802_v54, %v1318_v35  ;;  %v1320_v51 = vadd.f32 %v1319_v17, %v7458_v7  ;;  %v2354_v7 = vsel %vm6482_vm2, %v2349_v33, %v2353_v44 }
 0x16f   : > { %v1323_v46 = vpop.f32.mrf.mxu1  ;;  %v1808_v52 = vpop.f32.mrf.mxu0  ;;  %2247 = vmatmul.mubr.bf16.gmra.mxu1 %v7238_v56  ;;  %2629 = vmatmul.mubr.bf16.gmra.mxu0 %v6885_v61 }
 0x170   : > { %v7614_v41 = vadd.f32 %v1804_v26, %v1320_v51  ;;  %v1324_v36 = vadd.f32 %v1323_v46, %v7462_v19  ;;  %2256 = vmatprep.mubr.bf16.mxu1 %v9235_v5  ;;  %2638 = vmatprep.mubr.bf16.mxu0 %v9235_v5  ;;  %v7628_v46 = vcombine.low %v2344_v50, %v2354_v7 }
 0x171   : > { %v1325_v40 = vpop.f32.mrf.mxu1  ;;  %v1810_v3 = vpop.f32.mrf.mxu0 }
 0x172   : > { %v7621_v16 = vadd.f32 %v1808_v52, %v1324_v36  ;;  %v1326_v12 = vadd.f32 %v1325_v40, %v7470_v23  ;;  %9309 = vst [vmem:[#allocation77_spill] sm:$0xff] %v7628_v46 }
 0x173   : > { %v1327_v11 = vpop.f32.mrf.mxu1  ;;  %v1812_v60 = vpop.f32.mrf.mxu0 }
 0x174   : > { %v7630_v19 = vadd.f32 %v1810_v3, %v1326_v12  ;;  %v1328_v13 = vadd.f32 %v1327_v11, %v7474_v14  ;;  %v6193_v3 = vld [vmem:[%s9150_s2 + $0x470] ss:$8 sps:$4 sm:$0xff]  }
 0x175   : > { %v1329_v54 = vpop.f32.mrf.mxu1  ;;  %v1814_v8 = vpop.f32.mrf.mxu0 }
 0x176   : > { %v7633_v35 = vadd.f32 %v1812_v60, %v1328_v13  ;;  %v1330_v33 = vadd.f32 %v1329_v54, %v7478_v15  ;;  %v6198_v13 = vld [vmem:[%s9150_s2 + $0x3e4] ss:$8 sps:$4 sm:$0xff]  }
 0x177   : > { %v1333_v44 = vpop.f32.mrf.mxu1  ;;  %v1818_v23 = vpop.f32.mrf.mxu0  ;;  %2257 = vmatmul.mubr.bf16.gmra.mxu1 %v7626_v18  ;;  %2639 = vmatmul.mubr.bf16.gmra.mxu0 %v7628_v46 }
 0x178   : > { %v7638_v17 = vadd.f32 %v1814_v8, %v1330_v33  ;;  %v1334_v26 = vadd.f32 %v1333_v44, %v7482_v38  ;;  %2854 = vmatprep.mubr.bf16.mxu1 %v9235_v5  ;;  %3214 = vmatprep.mubr.bf16.mxu0 %v9235_v5  ;;  %v6190_v38 = vld [vmem:[%s9150_s2 + $0x3f0] ss:$8 sps:$4 sm:$0xff]  }
 0x179   : > { %v1335_v14 = vpop.f32.mrf.mxu1  ;;  %v1820_v51 = vpop.f32.mrf.mxu0 }
 0x17a   : > { %v7643_v52 = vadd.f32 %v1818_v23, %v1334_v26  ;;  %v1336_v15 = vadd.f32 %v1335_v14, %v7490_v57  ;;  %v6199_v23 = vld [vmem:[%s9150_s2 + $0x460] ss:$8 sps:$4 sm:$0xff]  }
 0x17b   : > { %v1337_v50 = vpop.f32.mrf.mxu1  ;;  %v1822_v36 = vpop.f32.mrf.mxu0 }
 0x17c   : > { %v7646_v7 = vadd.f32 %v1820_v51, %v1336_v15  ;;  %v1338_v40 = vadd.f32 %v1337_v50, %v7494_v31  ;;  %v6201_v31 = vld [vmem:[%s9150_s2 + $0x464] ss:$8 sps:$4 sm:$0xff]  }
 0x17d   : > { %v1339_v12 = vpop.f32.mrf.mxu1  ;;  %v1824_v11 = vpop.f32.mrf.mxu0 }
 0x17e   : > { %v7655_v60 = vadd.f32 %v1822_v36, %v1338_v40  ;;  %v1340_v57 = vadd.f32 %v1339_v12, %v7498_v28  ;;  %v6196_v28 = vld [vmem:[%s9150_s2 + $0x3e0] ss:$8 sps:$4 sm:$0xff]   ;;  %v6202_v12 = vld [vmem:[%s9150_s2 + $0x3d0] ss:$8 sps:$4 sm:$0xff]  }
 0x17f   : > { %v1343_v54 = vpop.f32.mrf.mxu1  ;;  %v1828_v8 = vpop.f32.mrf.mxu0  ;;  %2855 = vmatmul.mubr.bf16.vlgmr.msra.gmra.mxu1 %v6941_v58  ;;  %3215 = vmatmul.mubr.bf16.vlgmr.msra.gmra.mxu0 %v6980_v1  ;;  %v6204_v58 = vld [vmem:[%s9150_s2 + $0x3d4] ss:$8 sps:$4 sm:$0xff]  }
 0x180   : > { %v7666_v33 = vadd.f32 %v1824_v11, %v1340_v57  ;;  %v1344_v44 = vadd.f32 %v1343_v54, %v7260_v9  ;;  %3565 = vmatpush1.bf16.msra.mxu1 %v6190_v38  ;;  %3931 = vmatpush1.bf16.msra.mxu0 %v6193_v3  ;;  %v6207_v1 = vld [vmem:[%s9150_s2 + $0x454] ss:$8 sps:$4 sm:$0xff]  }
 0x181   : > { %v1345_v26 = vpop.f32.mrf.mxu1  ;;  %v1830_v14 = vpop.f32.mrf.mxu0  ;;  %2864 = vmatprep.mubr.bf16.mxu1 %v9235_v5  ;;  %3224 = vmatprep.mubr.bf16.mxu0 %v9235_v5 }
 0x182   : > { %v7683_v9 = vadd.f32 %v1828_v8, %v1344_v44  ;;  %v1346_v51 = vadd.f32 %v1345_v26, %v7272_v34  ;;  %3566 = vmatprep.subr.bf16.mxu1 %v6198_v13  ;;  %3932 = vmatprep.subr.bf16.mxu0 %v6201_v31  ;;  %v6205_v34 = vld [vmem:[%s9150_s2 + $0x450] ss:$8 sps:$4 sm:$0xff]   ;;  %v6213_v13 = vld [vmem:[%s9150_s2 + $0x444] ss:$8 sps:$4 sm:$0xff]  }
 0x183   : > { %v1347_v15 = vpop.f32.mrf.mxu1  ;;  %v1832_v50 = vpop.f32.mrf.mxu0  ;;  %v9310_v8 = vld [vmem:[#allocation21_spill] sm:$0xff] }
 0x184   : > { %v7686_v36 = vadd.f32 %v1830_v14, %v1346_v51  ;;  %v1348_v40 = vadd.f32 %v1347_v15, %v7284_v48  ;;  %3567 = vmatpush1.bf16.msra.mxu1 %v6196_v28  ;;  %3933 = vmatpush1.bf16.msra.mxu0 %v6199_v23  ;;  %v6210_v48 = vld [vmem:[%s9150_s2 + $0x3c4] ss:$8 sps:$4 sm:$0xff]   ;;  %v6208_v14 = vld [vmem:[%s9150_s2 + $0x3c0] ss:$8 sps:$4 sm:$0xff]   ;;  %v9312_v51 = vld [vmem:[#allocation43_spill] sm:$0xff] }
 0x185   : > { %v1349_v38 = vpop.f32.mrf.mxu1  ;;  %v1834_v3 = vpop.f32.mrf.mxu0  ;;  %3568 = vmatprep.subr.bf16.mxu1 %v6204_v58  ;;  %3934 = vmatprep.subr.bf16.mxu0 %v6207_v1  ;;  %v9311_v28 = vld [vmem:[#allocation42_spill] sm:$0xff] }
 0x186   : > { %v7695_v11 = vadd.f32 %v1832_v50, %v1348_v40  ;;  %v1350_v57 = vadd.f32 %v1349_v38, %v7288_v29  ;;  %v6211_v58 = vld [vmem:[%s9150_s2 + $0x440] ss:$8 sps:$4 sm:$0xff]   ;;  %v6216_v50 = vld [vmem:[%s9150_s2 + $0x3b4] ss:$8 sps:$4 sm:$0xff]  }
 0x187   : > { %v1353_v31 = vpop.f32.mrf.mxu1  ;;  %v1838_v54 = vpop.f32.mrf.mxu0  ;;  %2865 = vmatmul.mubr.bf16.gmra.mxu1 %v6982_v4  ;;  %3225 = vmatmul.mubr.bf16.gmra.mxu0 %v9310_v8  ;;  %v6219_v40 = vld [vmem:[%s9150_s2 + $0x434] ss:$8 sps:$4 sm:$0xff]  }
 0x188   : > { %v7706_v44 = vadd.f32 %v1834_v3, %v1350_v57  ;;  %v1354_v23 = vadd.f32 %v1353_v31, %v9311_v28  ;;  %2874 = vmatprep.mubr.bf16.mxu1 %v9235_v5  ;;  %3234 = vmatprep.mubr.bf16.mxu0 %v9235_v5  ;;  %v9315_v28 = vld [vmem:[#allocation45_spill] sm:$0xff] }
 0x189   : > { %v1355_v29 = vpop.f32.mrf.mxu1  ;;  %v1840_v26 = vpop.f32.mrf.mxu0  ;;  %3569 = vmatpush1.bf16.msra.mxu1 %v6202_v12  ;;  %3935 = vmatpush1.bf16.msra.mxu0 %v6205_v34  ;;  %v9313_v34 = vld [vmem:[#allocation44_spill] sm:$0xff] }
 0x18a   : > { %v7717_v1 = vadd.f32 %v1838_v54, %v1354_v23  ;;  %v1356_v15 = vadd.f32 %v1355_v29, %v9312_v51  ;;  %3570 = vmatprep.subr.bf16.mxu1 %v6210_v48  ;;  %3936 = vmatprep.subr.bf16.mxu0 %v6213_v13  ;;  %v6214_v48 = vld [vmem:[%s9150_s2 + $0x3b0] ss:$8 sps:$4 sm:$0xff]   ;;  %v6222_v29 = vld [vmem:[%s9150_s2 + $0x3a4] ss:$8 sps:$4 sm:$0xff]  }
 0x18b   : > { %v1357_v38 = vpop.f32.mrf.mxu1  ;;  %v1842_v3 = vpop.f32.mrf.mxu0  ;;  %v6217_v13 = vld [vmem:[%s9150_s2 + $0x430] ss:$8 sps:$4 sm:$0xff]   ;;  %v9316_v51 = vld [vmem:[#allocation22_spill] sm:$0xff] }
 0x18c   : > { %v7726_v12 = vadd.f32 %v1840_v26, %v1356_v15  ;;  %v1358_v57 = vadd.f32 %v1357_v38, %v9313_v34  ;;  %v6225_v26 = vld [vmem:[%s9150_s2 + $0x424] ss:$8 sps:$4 sm:$0xff]   ;;  %v9317_v15 = vld [vmem:[#allocation23_spill] sm:$0xff] }
 0x18d   : > { %v1359_v31 = vpop.f32.mrf.mxu1  ;;  %v1844_v54 = vpop.f32.mrf.mxu0  ;;  %3571 = vmatpush1.bf16.msra.mxu1 %v6208_v14  ;;  %3937 = vmatpush1.bf16.msra.mxu0 %v6211_v58 }
 0x18e   : > { %v7735_v8 = vadd.f32 %v1842_v3, %v1358_v57  ;;  %v1360_v23 = vadd.f32 %v1359_v31, %v9315_v28  ;;  %3572 = vmatprep.subr.bf16.mxu1 %v6216_v50  ;;  %3938 = vmatprep.subr.bf16.mxu0 %v6219_v40  ;;  %v9319_v3 = vld [vmem:[#allocation46_spill] sm:$0xff]  ;;  %v9321_v28 = vld [vmem:[#allocation47_spill] sm:$0xff] }
 0x18f   : > { %v1363_v14 = vpop.f32.mrf.mxu1  ;;  %v1848_v58 = vpop.f32.mrf.mxu0  ;;  %2875 = vmatmul.mubr.bf16.gmra.mxu1 %v9316_v51  ;;  %3235 = vmatmul.mubr.bf16.gmra.mxu0 %v9317_v15  ;;  %v6220_v57 = vld [vmem:[%s9150_s2 + $0x3a0] ss:$8 sps:$4 sm:$0xff]  }
 0x190   : > { %9314 = vst [vmem:[#allocation21_spill] sm:$0xff] %v7735_v8  ;;  %v7746_v38 = vadd.f32 %v1844_v54, %v1360_v23  ;;  %v1364_v34 = vadd.f32 %v1363_v14, %v9319_v3  ;;  %2884 = vmatprep.mubr.bf16.mxu1 %v9235_v5  ;;  %3244 = vmatprep.mubr.bf16.mxu0 %v9235_v5  ;;  %v6223_v31 = vld [vmem:[%s9150_s2 + $0x420] ss:$8 sps:$4 sm:$0xff]   ;;  %v6228_v14 = vld [vmem:[%s9150_s2 + $0x394] ss:$8 sps:$4 sm:$0xff]  }
 0x191   : > { %v1365_v50 = vpop.f32.mrf.mxu1  ;;  %v1850_v40 = vpop.f32.mrf.mxu0  ;;  %3573 = vmatpush1.bf16.msra.mxu1 %v6214_v48  ;;  %3939 = vmatpush1.bf16.msra.mxu0 %v6217_v13  ;;  %v6231_v48 = vld [vmem:[%s9150_s2 + $0x414] ss:$8 sps:$4 sm:$0xff]  }
 0x192   : > { %9318 = vst [vmem:[#allocation42_spill] sm:$0xff] %v7746_v38  ;;  %v7757_v54 = vadd.f32 %v1848_v58, %v1364_v34  ;;  %v1366_v23 = vadd.f32 %v1365_v50, %v9321_v28  ;;  %3574 = vmatprep.subr.bf16.mxu1 %v6222_v29  ;;  %3940 = vmatprep.subr.bf16.mxu0 %v6225_v26  ;;  %v6226_v29 = vld [vmem:[%s9150_s2 + $0x390] ss:$8 sps:$4 sm:$0xff]   ;;  %v9325_v28 = vld [vmem:[#allocation49_spill] sm:$0xff] }
 0x193   : > { %v1367_v13 = vpop.f32.mrf.mxu1  ;;  %v1852_v15 = vpop.f32.mrf.mxu0  ;;  %v6229_v26 = vld [vmem:[%s9150_s2 + $0x410] ss:$8 sps:$4 sm:$0xff]   ;;  %v9335_v38 = vld [vmem:[#allocation53_spill] sm:$0xff] }
 0x194   : > { %9320 = vst [vmem:[#allocation43_spill] sm:$0xff] %v7757_v54  ;;  %v7766_v3 = vadd.f32 %v1850_v40, %v1366_v23  ;;  %v1368_v46 = vadd.f32 %v1367_v13, %v9323_v32  ;;  %v6234_v32 = vld [vmem:[%s9150_s2 + $0x384] ss:$8 sps:$4 sm:$0xff]   ;;  %v9326_v23 = vld [vmem:[#allocation24_spill] sm:$0xff] }
 0x195   : > { %v1369_v58 = vpop.f32.mrf.mxu1  ;;  %v1854_v34 = vpop.f32.mrf.mxu0  ;;  %3575 = vmatpush1.bf16.msra.mxu1 %v6220_v57  ;;  %3941 = vmatpush1.bf16.msra.mxu0 %v6223_v31  ;;  %v6237_v40 = vld [vmem:[%s9150_s2 + $0x404] ss:$8 sps:$4 sm:$0xff]  }
 0x196   : > { %9322 = vst [vmem:[#allocation44_spill] sm:$0xff] %v7766_v3  ;;  %v7775_v50 = vadd.f32 %v1852_v15, %v1368_v46  ;;  %v1370_v61 = vadd.f32 %v1369_v58, %v9325_v28  ;;  %3576 = vmatprep.subr.bf16.mxu1 %v6228_v14  ;;  %3942 = vmatprep.subr.bf16.mxu0 %v6231_v48  ;;  %v9327_v13 = vld [vmem:[#allocation25_spill] sm:$0xff]  ;;  %v9329_v15 = vld [vmem:[#allocation50_spill] sm:$0xff] }
 0x197   : > { %v1373_v57 = vpop.f32.mrf.mxu1  ;;  %v1858_v31 = vpop.f32.mrf.mxu0  ;;  %2885 = vmatmul.mubr.bf16.gmra.mxu1 %v9326_v23  ;;  %3245 = vmatmul.mubr.bf16.gmra.mxu0 %v9327_v13  ;;  %v6232_v28 = vld [vmem:[%s9150_s2 + $0x380] ss:$8 sps:$4 sm:$0xff]  }
 0x198   : > { %9324 = vst [vmem:[#allocation45_spill] sm:$0xff] %v7775_v50  ;;  %v7786_v46 = vadd.f32 %v1854_v34, %v1370_v61  ;;  %v1374_v58 = vadd.f32 %v1373_v57, %v9329_v15  ;;  %2894 = vmatprep.mubr.bf16.mxu1 %v9235_v5  ;;  %3254 = vmatprep.mubr.bf16.mxu0 %v9235_v5  ;;  %v6235_v13 = vld [vmem:[%s9150_s2 + $0x400] ss:$8 sps:$4 sm:$0xff]   ;;  %v9331_v34 = vld [vmem:[#allocation51_spill] sm:$0xff] }
 0x199   : > { %v1375_v14 = vpop.f32.mrf.mxu1  ;;  %v1860_v48 = vpop.f32.mrf.mxu0  ;;  %3577 = vmatpush1.bf16.msra.mxu1 %v6226_v29  ;;  %3943 = vmatpush1.bf16.msra.mxu0 %v6229_v26  ;;  %v9333_v29 = vld [vmem:[#allocation52_spill] sm:$0xff] }
 0x19a   : > { %9328 = vst [vmem:[#allocation22_spill] sm:$0xff] %v7786_v46  ;;  %v7797_v61 = vadd.f32 %v1858_v31, %v1374_v58  ;;  %v1376_v57 = vadd.f32 %v1375_v14, %v9331_v34  ;;  %3578 = vmatprep.subr.bf16.mxu1 %v6234_v32  ;;  %3944 = vmatprep.subr.bf16.mxu0 %v6237_v40  ;;  %v9337_v32 = vld [vmem:[#allocation27_spill] sm:$0xff]  ;;  %v9339_v14 = vld [vmem:[#allocation54_spill] sm:$0xff] }
 0x19b   : > { %v1377_v15 = vpop.f32.mrf.mxu1  ;;  %v1862_v46 = vpop.f32.mrf.mxu0  ;;  %v9341_v34 = vld [vmem:[#allocation55_spill] sm:$0xff] }
 0x19c   : > { %9330 = vst [vmem:[#allocation23_spill] sm:$0xff] %v7797_v61  ;;  %v7800_v50 = vadd.f32 %v1860_v48, %v1376_v57  ;;  %v1378_v26 = vadd.f32 %v1377_v15, %v9333_v29  ;;  %v9336_v61 = vld [vmem:[#allocation26_spill] sm:$0xff]  ;;  %v9343_v29 = vld [vmem:[#allocation56_spill] sm:$0xff] }
 0x19d   : > { %v1379_v3 = vpop.f32.mrf.mxu1  ;;  %v1864_v54 = vpop.f32.mrf.mxu0  ;;  %3579 = vmatpush1.bf16.msra.mxu1 %v6232_v28  ;;  %3945 = vmatpush1.bf16.msra.mxu0 %v6235_v13 }
 0x19e   : > { %9332 = vst [vmem:[#allocation46_spill] sm:$0xff] %v7800_v50  ;;  %v7803_v23 = vadd.f32 %v1862_v46, %v1378_v26  ;;  %v1380_v8 = vadd.f32 %v1379_v3, %v9335_v38  ;;  %v9346_v50 = vld [vmem:[#allocation28_spill] sm:$0xff] }
 0x19f   : > { %v1383_v31 = vpop.f32.mrf.mxu1  ;;  %v1868_v58 = vpop.f32.mrf.mxu0  ;;  %2895 = vmatmul.mubr.bf16.gmra.mxu1 %v9336_v61  ;;  %3255 = vmatmul.mubr.bf16.gmra.mxu0 %v9337_v32 }
 0x1a0   : > { %9334 = vst [vmem:[#allocation47_spill] sm:$0xff] %v7803_v23  ;;  %v7808_v40 = vadd.f32 %v1864_v54, %v1380_v8  ;;  %v1384_v48 = vadd.f32 %v1383_v31, %v9339_v14  ;;  %2904 = vmatprep.mubr.bf16.mxu1 %v9235_v5  ;;  %3264 = vmatprep.mubr.bf16.mxu0 %v9235_v5  ;;  %v9345_v31 = vld [vmem:[#allocation57_spill] sm:$0xff] }
 0x1a1   : > { %v1385_v28 = vpop.f32.mrf.mxu1  ;;  %v1870_v13 = vpop.f32.mrf.mxu0 }
 0x1a2   : > { %9338 = vst [vmem:[#allocation48_spill] sm:$0xff] %v7808_v40  ;;  %v7813_v46 = vadd.f32 %v1868_v58, %v1384_v48  ;;  %v1386_v38 = vadd.f32 %v1385_v28, %v9341_v34  ;;  %v9347_v58 = vld [vmem:[#allocation29_spill] sm:$0xff]  ;;  %v9349_v28 = vld [vmem:[#allocation58_spill] sm:$0xff] }
 0x1a3   : > { %v1387_v3 = vpop.f32.mrf.mxu1  ;;  %v1872_v57 = vpop.f32.mrf.mxu0 }
 0x1a4   : > { %9340 = vst [vmem:[#allocation49_spill] sm:$0xff] %v7813_v46  ;;  %v7816_v15 = vadd.f32 %v1870_v13, %v1386_v38  ;;  %v1388_v26 = vadd.f32 %v1387_v3, %v9343_v29 }
 0x1a5   : > { %v1389_v8 = vpop.f32.mrf.mxu1  ;;  %v1874_v54 = vpop.f32.mrf.mxu0 }
 0x1a6   : > { %9342 = vst [vmem:[#allocation25_spill] sm:$0xff] %v7816_v15  ;;  %v7819_v32 = vadd.f32 %v1872_v57, %v1388_v26  ;;  %v1390_v14 = vadd.f32 %v1389_v8, %v9345_v31  ;;  %v9351_v57 = vld [vmem:[#allocation59_spill] sm:$0xff] }
 0x1a7   : > { %v1393_v40 = vpop.f32.mrf.mxu1  ;;  %v1878_v23 = vpop.f32.mrf.mxu0  ;;  %2905 = vmatmul.mubr.bf16.gmra.mxu1 %v9346_v50  ;;  %3265 = vmatmul.mubr.bf16.gmra.mxu0 %v9347_v58  ;;  %v9356_v50 = vld [vmem:[#allocation30_spill] sm:$0xff] }
 0x1a8   : > { %9344 = vst [vmem:[#allocation50_spill] sm:$0xff] %v7819_v32  ;;  %v7824_v48 = vadd.f32 %v1874_v54, %v1390_v14  ;;  %v1394_v34 = vadd.f32 %v1393_v40, %v9349_v28  ;;  %2914 = vmatprep.mubr.bf16.mxu1 %v9235_v5  ;;  %3274 = vmatprep.mubr.bf16.mxu0 %v9235_v5  ;;  %v9353_v32 = vld [vmem:[#allocation60_spill] sm:$0xff]  ;;  %v9355_v40 = vld [vmem:[#allocation61_spill] sm:$0xff] }
 0x1a9   : > { %v1395_v13 = vpop.f32.mrf.mxu1  ;;  %v1880_v38 = vpop.f32.mrf.mxu0 }
 0x1aa   : > { %9348 = vst [vmem:[#allocation51_spill] sm:$0xff] %v7824_v48  ;;  %v7829_v3 = vadd.f32 %v1878_v23, %v1394_v34  ;;  %v1396_v29 = vadd.f32 %v1395_v13, %v9351_v57  ;;  %v9357_v23 = vld [vmem:[#allocation31_spill] sm:$0xff]  ;;  %v9359_v13 = vld [vmem:[#allocation62_spill] sm:$0xff] }
 0x1ab   : > { %v1397_v26 = vpop.f32.mrf.mxu1  ;;  %v1882_v8 = vpop.f32.mrf.mxu0 }
 0x1ac   : > { %9350 = vst [vmem:[#allocation52_spill] sm:$0xff] %v7829_v3  ;;  %v7832_v31 = vadd.f32 %v1880_v38, %v1396_v29  ;;  %v1398_v58 = vadd.f32 %v1397_v26, %v9353_v32  ;;  %v9361_v26 = vld [vmem:[#allocation63_spill] sm:$0xff] }
 0x1ad   : > { %v1399_v54 = vpop.f32.mrf.mxu1  ;;  %v1884_v14 = vpop.f32.mrf.mxu0 }
 0x1ae   : > { %9352 = vst [vmem:[#allocation53_spill] sm:$0xff] %v7832_v31  ;;  %v7835_v48 = vadd.f32 %v1882_v8, %v1398_v58  ;;  %v1400_v28 = vadd.f32 %v1399_v54, %v9355_v40 }
 0x1af   : > { %v1403_v15 = vpop.f32.mrf.mxu1  ;;  %v1888_v46 = vpop.f32.mrf.mxu0  ;;  %2915 = vmatmul.mubr.bf16.gmra.mxu1 %v9356_v50  ;;  %3275 = vmatmul.mubr.bf16.gmra.mxu0 %v9357_v23  ;;  %v9366_v50 = vld [vmem:[#allocation32_spill] sm:$0xff] }
 0x1b0   : > { %9354 = vst [vmem:[#allocation26_spill] sm:$0xff] %v7835_v48  ;;  %v7840_v34 = vadd.f32 %v1884_v14, %v1400_v28  ;;  %v1404_v57 = vadd.f32 %v1403_v15, %v9359_v13  ;;  %2924 = vmatprep.mubr.bf16.mxu1 %v9235_v5  ;;  %3284 = vmatprep.mubr.bf16.mxu0 %v9235_v5  ;;  %v9363_v48 = vld [vmem:[#allocation64_spill] sm:$0xff]  ;;  %v9365_v15 = vld [vmem:[#allocation65_spill] sm:$0xff] }
 0x1b1   : > { %v1405_v32 = vpop.f32.mrf.mxu1  ;;  %v1890_v38 = vpop.f32.mrf.mxu0 }
 0x1b2   : > { %9358 = vst [vmem:[#allocation27_spill] sm:$0xff] %v7840_v34  ;;  %v7845_v29 = vadd.f32 %v1888_v46, %v1404_v57  ;;  %v1406_v8 = vadd.f32 %v1405_v32, %v9361_v26  ;;  %v9367_v46 = vld [vmem:[#allocation33_spill] sm:$0xff]  ;;  %v9369_v32 = vld [vmem:[#allocation66_spill] sm:$0xff] }
 0x1b3   : > { %v1407_v58 = vpop.f32.mrf.mxu1  ;;  %v1892_v54 = vpop.f32.mrf.mxu0 }
 0x1b4   : > { %9360 = vst [vmem:[#allocation54_spill] sm:$0xff] %v7845_v29  ;;  %v7848_v40 = vadd.f32 %v1890_v38, %v1406_v8  ;;  %v1408_v23 = vadd.f32 %v1407_v58, %v9363_v48  ;;  %v9370_v58 = vld [vmem:[#allocation67_spill] sm:$0xff] }
 0x1b5   : > { %v1409_v14 = vpop.f32.mrf.mxu1  ;;  %v1894_v28 = vpop.f32.mrf.mxu0 }
 0x1b6   : > { %9362 = vst [vmem:[#allocation55_spill] sm:$0xff] %v7848_v40  ;;  %v7851_v34 = vadd.f32 %v1892_v54, %v1408_v23  ;;  %v1410_v13 = vadd.f32 %v1409_v14, %v9365_v15 }
 0x1b7   : > { %v1413_v31 = vpop.f32.mrf.mxu1  ;;  %v1898_v3 = vpop.f32.mrf.mxu0  ;;  %2925 = vmatmul.mubr.bf16.gmra.mxu1 %v9366_v50  ;;  %3285 = vmatmul.mubr.bf16.gmra.mxu0 %v9367_v46  ;;  %v9373_v50 = vld [vmem:[#allocation34_spill] sm:$0xff] }
 0x1b8   : > { %9364 = vst [vmem:[#allocation56_spill] sm:$0xff] %v7851_v34  ;;  %v7856_v57 = vadd.f32 %v1894_v28, %v1410_v13  ;;  %v1414_v26 = vadd.f32 %v1413_v31, %v9369_v32  ;;  %2934 = vmatprep.mubr.bf16.mxu1 %v9235_v5  ;;  %3294 = vmatprep.mubr.bf16.mxu0 %v9235_v5  ;;  %v9371_v34 = vld [vmem:[#allocation68_spill] sm:$0xff]  ;;  %v9372_v31 = vld [vmem:[#allocation69_spill] sm:$0xff] }
 0x1b9   : > { %v1415_v48 = vpop.f32.mrf.mxu1  ;;  %v1900_v38 = vpop.f32.mrf.mxu0 }
 0x1ba   : > { %9368 = vst [vmem:[#allocation57_spill] sm:$0xff] %v7856_v57  ;;  %v7861_v8 = vadd.f32 %v1898_v3, %v1414_v26  ;;  %v1416_v54 = vadd.f32 %v1415_v48, %v9370_v58 }
 0x1bb   : > { %v1417_v23 = vpop.f32.mrf.mxu1  ;;  %v1902_v14 = vpop.f32.mrf.mxu0 }
 0x1bc   : > { %v7864_v15 = vadd.f32 %v1900_v38, %v1416_v54  ;;  %v1418_v46 = vadd.f32 %v1417_v23, %v9371_v34 }
 0x1bd   : > { %v1419_v28 = vpop.f32.mrf.mxu1  ;;  %v1904_v13 = vpop.f32.mrf.mxu0 }
 0x1be   : > { %v7867_v57 = vadd.f32 %v1902_v14, %v1418_v46  ;;  %v1420_v32 = vadd.f32 %v1419_v28, %v9372_v31 }
 0x1bf   : > { %v2108_v40 = vpop.f32.mrf.mxu1  ;;  %v2490_v29 = vpop.f32.mrf.mxu0  ;;  %2935 = vmatmul.mubr.bf16.gmra.mxu1 %v9373_v50  ;;  %3295 = vmatmul.mubr.bf16.gmra.mxu0 %v7158_v63 }
 0x1c0   : > { %v7872_v3 = vadd.f32 %v1904_v13, %v1420_v32  ;;  %v2267_v26 = vadd.f32 %v2108_v40, %v7507_v24  ;;  %2944 = vmatprep.mubr.bf16.mxu1 %v9235_v5  ;;  %3304 = vmatprep.mubr.bf16.mxu0 %v9235_v5  ;;  %v9374_v32 = vld [vmem:[#allocation35_spill] sm:$0xff] }
 0x1c1   : > { %v2110_v34 = vpop.f32.mrf.mxu1  ;;  %v2492_v48 = vpop.f32.mrf.mxu0 }
 0x1c2   : > { %v7877_v38 = vadd.f32 %v2490_v29, %v2267_v26  ;;  %v2268_v58 = vadd.f32 %v2110_v34, %v7510_v2 }
 0x1c3   : > { %v2112_v54 = vpop.f32.mrf.mxu1  ;;  %v2494_v23 = vpop.f32.mrf.mxu0 }
 0x1c4   : > { %v7880_v14 = vadd.f32 %v2492_v48, %v2268_v58  ;;  %v2269_v63 = vadd.f32 %v2112_v54, %v7513_v30 }
 0x1c5   : > { %v2114_v46 = vpop.f32.mrf.mxu1  ;;  %v2496_v28 = vpop.f32.mrf.mxu0 }
 0x1c6   : > { %v7883_v13 = vadd.f32 %v2494_v23, %v2269_v63  ;;  %v2270_v24 = vadd.f32 %v2114_v46, %v7518_v49 }
 0x1c7   : > { %v2118_v40 = vpop.f32.mrf.mxu1  ;;  %v2500_v31 = vpop.f32.mrf.mxu0  ;;  %2945 = vmatmul.mubr.bf16.gmra.mxu1 %v9374_v32  ;;  %3305 = vmatmul.mubr.bf16.gmra.mxu0 %v7173_v10 }
 0x1c8   : > { %v7888_v29 = vadd.f32 %v2496_v28, %v2270_v24  ;;  %v2271_v2 = vadd.f32 %v2118_v40, %v7523_v27  ;;  %2954 = vmatprep.mubr.bf16.mxu1 %v9235_v5  ;;  %3314 = vmatprep.mubr.bf16.mxu0 %v9235_v5  ;;  %v9377_v40 = vld [vmem:[#allocation36_spill] sm:$0xff] }
 0x1c9   : > { %v2120_v30 = vpop.f32.mrf.mxu1  ;;  %v2502_v26 = vpop.f32.mrf.mxu0 }
 0x1ca   : > { %v7893_v34 = vadd.f32 %v2500_v31, %v2271_v2  ;;  %v2272_v49 = vadd.f32 %v2120_v30, %v7526_v21 }
 0x1cb   : > { %v2122_v48 = vpop.f32.mrf.mxu1  ;;  %v2504_v58 = vpop.f32.mrf.mxu0 }
 0x1cc   : > { %v7896_v54 = vadd.f32 %v2502_v26, %v2272_v49  ;;  %v2273_v10 = vadd.f32 %v2122_v48, %v7529_v59  ;;  %v9380_v26 = vld [vmem:[#allocation70_spill] sm:$0xff] }
 0x1cd   : > { %v2124_v23 = vpop.f32.mrf.mxu1  ;;  %v2506_v63 = vpop.f32.mrf.mxu0 }
 0x1ce   : > { %9375 = vst [vmem:[#allocation29_spill] sm:$0xff] %v7896_v54  ;;  %v7899_v46 = vadd.f32 %v2504_v58, %v2273_v10  ;;  %v2274_v27 = vadd.f32 %v2124_v23, %v7534_v55  ;;  %v9382_v10 = vld [vmem:[#allocation71_spill] sm:$0xff]  ;;  %v9385_v54 = vld [vmem:[#allocation37_spill] sm:$0xff] }
 0x1cf   : > { %v2128_v28 = vpop.f32.mrf.mxu1  ;;  %v2510_v24 = vpop.f32.mrf.mxu0  ;;  %2955 = vmatmul.mubr.bf16.gmra.mxu1 %v9377_v40  ;;  %3315 = vmatmul.mubr.bf16.gmra.mxu0 %v7188_v0 }
 0x1d0   : > { %9376 = vst [vmem:[#allocation58_spill] sm:$0xff] %v7899_v46  ;;  %v7904_v31 = vadd.f32 %v2506_v63, %v2274_v27  ;;  %v2275_v21 = vadd.f32 %v2128_v28, %v7539_v39  ;;  %2964 = vmatprep.mubr.bf16.mxu1 %v9235_v5  ;;  %3324 = vmatprep.mubr.bf16.mxu0 %v9235_v5  ;;  %v9384_v39 = vld [vmem:[#allocation72_spill] sm:$0xff] }
 0x1d1   : > { %v2130_v59 = vpop.f32.mrf.mxu1  ;;  %v2512_v2 = vpop.f32.mrf.mxu0 }
 0x1d2   : > { %9378 = vst [vmem:[#allocation59_spill] sm:$0xff] %v7904_v31  ;;  %v7909_v30 = vadd.f32 %v2510_v24, %v2275_v21  ;;  %v2276_v55 = vadd.f32 %v2130_v59, %v9380_v26  ;;  %v9386_v24 = vld [vmem:[#allocation38_spill] sm:$0xff]  ;;  %v9388_v59 = vld [vmem:[#allocation73_spill] sm:$0xff] }
 0x1d3   : > { %v2132_v49 = vpop.f32.mrf.mxu1  ;;  %v2514_v48 = vpop.f32.mrf.mxu0 }
 0x1d4   : > { %9379 = vst [vmem:[#allocation60_spill] sm:$0xff] %v7909_v30  ;;  %v7912_v58 = vadd.f32 %v2512_v2, %v2276_v55  ;;  %v2277_v0 = vadd.f32 %v2132_v49, %v9382_v10 }
 0x1d5   : > { %v2134_v23 = vpop.f32.mrf.mxu1  ;;  %v2516_v63 = vpop.f32.mrf.mxu0 }
 0x1d6   : > { %9381 = vst [vmem:[#allocation61_spill] sm:$0xff] %v7912_v58  ;;  %v7915_v27 = vadd.f32 %v2514_v48, %v2277_v0  ;;  %v2278_v28 = vadd.f32 %v2134_v23, %v9384_v39  ;;  %v9389_v48 = vld [vmem:[#allocation74_spill] sm:$0xff] }
 0x1d7   : > { %v2138_v31 = vpop.f32.mrf.mxu1  ;;  %v2520_v46 = vpop.f32.mrf.mxu0  ;;  %2965 = vmatmul.mubr.bf16.gmra.mxu1 %v9385_v54  ;;  %3325 = vmatmul.mubr.bf16.gmra.mxu0 %v9386_v24  ;;  %v9392_v54 = vld [vmem:[#allocation39_spill] sm:$0xff] }
 0x1d8   : > { %9383 = vst [vmem:[#allocation31_spill] sm:$0xff] %v7915_v27  ;;  %v7920_v21 = vadd.f32 %v2516_v63, %v2278_v28  ;;  %v2279_v26 = vadd.f32 %v2138_v31, %v9388_v59  ;;  %2974 = vmatprep.mubr.bf16.mxu1 %v9235_v5  ;;  %3334 = vmatprep.mubr.bf16.mxu0 %v9235_v5  ;;  %v9390_v27 = vld [vmem:[#allocation75_spill] sm:$0xff]  ;;  %v9391_v31 = vld [vmem:[#allocation76_spill] sm:$0xff] }
 0x1d9   : > { %v2140_v2 = vpop.f32.mrf.mxu1  ;;  %v2522_v55 = vpop.f32.mrf.mxu0 }
 0x1da   : > { %9387 = vst [vmem:[#allocation62_spill] sm:$0xff] %v7920_v21  ;;  %v7925_v49 = vadd.f32 %v2520_v46, %v2279_v26  ;;  %v2280_v10 = vadd.f32 %v2140_v2, %v9389_v48 }
 0x1db   : > { %v2142_v0 = vpop.f32.mrf.mxu1  ;;  %v2524_v23 = vpop.f32.mrf.mxu0 }
 0x1dc   : > { %v7928_v39 = vadd.f32 %v2522_v55, %v2280_v10  ;;  %v2281_v24 = vadd.f32 %v2142_v0, %v9390_v27 }
 0x1dd   : > { %v2144_v63 = vpop.f32.mrf.mxu1  ;;  %v2526_v28 = vpop.f32.mrf.mxu0 }
 0x1de   : > { %v7931_v21 = vadd.f32 %v2524_v23, %v2281_v24  ;;  %v2282_v59 = vadd.f32 %v2144_v63, %v9391_v31 }
 0x1df   : > { %v2148_v58 = vpop.f32.mrf.mxu1  ;;  %v2530_v30 = vpop.f32.mrf.mxu0  ;;  %2975 = vmatmul.mubr.bf16.gmra.mxu1 %v9392_v54  ;;  %3335 = vmatmul.mubr.bf16.gmra.mxu0 %v7222_v53 }
 0x1e0   : > { %v7936_v46 = vadd.f32 %v2526_v28, %v2282_v59  ;;  %v2283_v26 = vadd.f32 %v2148_v58, %v7581_v43  ;;  %2984 = vmatprep.mubr.bf16.mxu1 %v9235_v5  ;;  %3344 = vmatprep.mubr.bf16.mxu0 %v9235_v5  ;;  %v9393_v59 = vld [vmem:[#allocation40_spill] sm:$0xff] }
 0x1e1   : > { %v2150_v27 = vpop.f32.mrf.mxu1  ;;  %v2532_v2 = vpop.f32.mrf.mxu0 }
 0x1e2   : > { %v7941_v55 = vadd.f32 %v2530_v30, %v2283_v26  ;;  %v2284_v48 = vadd.f32 %v2150_v27, %v7584_v62 }
 0x1e3   : > { %v2152_v10 = vpop.f32.mrf.mxu1  ;;  %v2534_v0 = vpop.f32.mrf.mxu0 }
 0x1e4   : > { %v7944_v23 = vadd.f32 %v2532_v2, %v2284_v48  ;;  %v2285_v53 = vadd.f32 %v2152_v10, %v7590_v22  ;;  %v2716_v22 = vrot.slane %v7565_v45, 5 }
 0x1e5   : > { %v2154_v24 = vpop.f32.mrf.mxu1  ;;  %v2536_v63 = vpop.f32.mrf.mxu0 }
 0x1e6   : > { %v7947_v28 = vadd.f32 %v2534_v0, %v2285_v53  ;;  %v2286_v43 = vadd.f32 %v2154_v24, %v7595_v25  ;;  %v2718_v53 = vrot.slane %v2716_v22, 4  ;;  %v2719_v24 = vrot.slane %v7588_v20, 5 }
 0x1e7   : > { %v2158_v58 = vpop.f32.mrf.mxu1  ;;  %v2540_v31 = vpop.f32.mrf.mxu0  ;;  %2985 = vmatmul.mubr.bf16.gmra.mxu1 %v9393_v59  ;;  %3345 = vmatmul.mubr.bf16.gmra.mxu0 %v7238_v56  ;;  %v5717_v56 = vrot.slane %v7562_v42, 9 }
 0x1e8   : > { %v7952_v30 = vadd.f32 %v2536_v63, %v2286_v43  ;;  %v2287_v62 = vadd.f32 %v2158_v58, %v7601_v6  ;;  %2994 = vmatprep.mubr.bf16.mxu1 %v9235_v5  ;;  %3354 = vmatprep.mubr.bf16.mxu0 %v9235_v5 }
 0x1e9   : > { %v2160_v26 = vpop.f32.mrf.mxu1  ;;  %v2542_v27 = vpop.f32.mrf.mxu0 }
 0x1ea   : > { %v7958_v2 = vadd.f32 %v2540_v31, %v2287_v62  ;;  %v2288_v25 = vadd.f32 %v2160_v26, %v7604_v37  ;;  %v9394_v62 = vld [vmem:[#allocation41_spill] sm:$0xff] }
 0x1eb   : > { %v2162_v48 = vpop.f32.mrf.mxu1  ;;  %v2544_v10 = vpop.f32.mrf.mxu0 }
 0x1ec   : > { %v7962_v0 = vadd.f32 %v2542_v27, %v2288_v25  ;;  %v2289_v6 = vadd.f32 %v2162_v48, %v7607_v47  ;;  %v2717_v47 = vsel %vm6889_vm5, %v5717_v56, %v2716_v22  ;;  %v7981_v27 = vld [vmem:[%s6446_s20 + $0xcc] sm:$0xf]  ;;  %v7984_v25 = vld [vmem:[%s6446_s20 + $0xd0] sm:$0xf] }
 0x1ed   : > { %v2164_v45 = vpop.f32.mrf.mxu1  ;;  %v2546_v63 = vpop.f32.mrf.mxu0 }
 0x1ee   : > { %v7966_v43 = vadd.f32 %v2544_v10, %v2289_v6  ;;  %v2290_v58 = vadd.f32 %v2164_v45, %v7614_v41  ;;  %v2720_v41 = vsel %vm6889_vm5, %v2718_v53, %v2719_v24  ;;  %v5767_v45 = vcombine.low %v7981_v27, %v7984_v25 }
 0x1ef   : > { %v2168_v37 = vpop.f32.mrf.mxu1  ;;  %v2550_v31 = vpop.f32.mrf.mxu0  ;;  %2995 = vmatmul.mubr.bf16.gmra.mxu1 %v9394_v62  ;;  %3355 = vmatmul.mubr.bf16.gmra.mxu0 %v7626_v18 }
 0x1f0   : > { %v7973_v26 = vadd.f32 %v2546_v63, %v2290_v58  ;;  %v2291_v20 = vadd.f32 %v2168_v37, %v7621_v16  ;;  %3004 = vmatprep.mubr.bf16.mxu1 %v9235_v5  ;;  %3364 = vmatprep.mubr.bf16.mxu0 %v9235_v5  ;;  %v7989_v16 = vcombine.low %v2717_v47, %v2720_v41 }
 0x1f1   : > { %v2170_v48 = vpop.f32.mrf.mxu1  ;;  %v2552_v18 = vpop.f32.mrf.mxu0 }
 0x1f2   : > { %v7986_v10 = vadd.f32 %v2550_v31, %v2291_v20  ;;  %v2292_v22 = vadd.f32 %v2170_v48, %v7630_v19 }
 0x1f3   : > { %v2172_v56 = vpop.f32.mrf.mxu1  ;;  %v2554_v6 = vpop.f32.mrf.mxu0 }
 0x1f4   : > { %9396 = vst [vmem:[#allocation63_spill] sm:$0xff] %v7986_v10  ;;  %v7993_v63 = vadd.f32 %v2552_v18, %v2292_v22  ;;  %v2293_v53 = vadd.f32 %v2172_v56, %v7633_v35 }
 0x1f5   : > { %v2174_v24 = vpop.f32.mrf.mxu1  ;;  %v2556_v58 = vpop.f32.mrf.mxu0 }
 0x1f6   : > { %v7996_v37 = vadd.f32 %v2554_v6, %v2293_v53  ;;  %v2294_v31 = vadd.f32 %v2174_v24, %v7638_v17 }
 0x1f7   : > { %v2178_v20 = vpop.f32.mrf.mxu1  ;;  %v2560_v10 = vpop.f32.mrf.mxu0  ;;  %3005 = vmatmul.mubr.bf16.gmra.mxu1 %v7989_v16  ;;  %3365 = vmatmul.mubr.bf16.gmra.mxu0 %v5767_v45 }
 0x1f8   : > { %v8000_v19 = vadd.f32 %v2556_v58, %v2294_v31  ;;  %v2295_v47 = vadd.f32 %v2178_v20, %v7643_v52  ;;  %3596 = vmatprep.mubr.bf16.mxu1 %v9235_v5  ;;  %3962 = vmatprep.mubr.bf16.mxu0 %v9235_v5  ;;  %v9397_v20 = vld [vmem:[#allocation8_spill] sm:$0xff] }
 0x1f9   : > { %v2180_v35 = vpop.f32.mrf.mxu1  ;;  %v2562_v41 = vpop.f32.mrf.mxu0 }
 0x1fa   : > { %v8005_v48 = vadd.f32 %v2560_v10, %v2295_v47  ;;  %v2296_v18 = vadd.f32 %v2180_v35, %v7646_v7 }
 0x1fb   : > { %v2182_v17 = vpop.f32.mrf.mxu1  ;;  %v2564_v22 = vpop.f32.mrf.mxu0 }
 0x1fc   : > { %v8008_v56 = vadd.f32 %v2562_v41, %v2296_v18  ;;  %v2297_v6 = vadd.f32 %v2182_v17, %v7655_v60 }
 0x1fd   : > { %v2184_v45 = vpop.f32.mrf.mxu1  ;;  %v2566_v53 = vpop.f32.mrf.mxu0 }
 0x1fe   : > { %v8011_v24 = vadd.f32 %v2564_v22, %v2297_v6  ;;  %v2298_v52 = vadd.f32 %v2184_v45, %v7666_v33 }
 0x1ff   : > { %v2188_v58 = vpop.f32.mrf.mxu1  ;;  %v2570_v31 = vpop.f32.mrf.mxu0  ;;  %3597 = vmatmul.mubr.bf16.vlgmr.msra.gmra.mxu1 %v9397_v20  ;;  %3963 = vmatmul.mubr.bf16.vlgmr.msra.gmra.mxu0 %v6982_v4 }
 0x200   : > { %v8016_v10 = vadd.f32 %v2566_v53, %v2298_v52  ;;  %v2299_v7 = vadd.f32 %v2188_v58, %v7683_v9  ;;  %3606 = vmatprep.mubr.bf16.mxu1 %v9235_v5  ;;  %3972 = vmatprep.mubr.bf16.mxu0 %v9235_v5  ;;  %v9398_v58 = vld [vmem:[#allocation10_spill] sm:$0xff] }
 0x201   : > { %v2190_v60 = vpop.f32.mrf.mxu1  ;;  %v2572_v47 = vpop.f32.mrf.mxu0 }
 0x202   : > { %v8021_v35 = vadd.f32 %v2570_v31, %v2299_v7  ;;  %v2300_v33 = vadd.f32 %v2190_v60, %v7686_v36 }
 0x203   : > { %v2192_v41 = vpop.f32.mrf.mxu1  ;;  %v2574_v18 = vpop.f32.mrf.mxu0 }
 0x204   : > { %v8024_v17 = vadd.f32 %v2572_v47, %v2300_v33  ;;  %v2301_v4 = vadd.f32 %v2192_v41, %v7695_v11  ;;  %v9401_v41 = vld [vmem:[#allocation21_spill] sm:$0xff] }
 0x205   : > { %v2194_v22 = vpop.f32.mrf.mxu1  ;;  %v2576_v6 = vpop.f32.mrf.mxu0 }
 0x206   : > { %v8027_v45 = vadd.f32 %v2574_v18, %v2301_v4  ;;  %v2302_v9 = vadd.f32 %v2194_v22, %v7706_v44 }
 0x207   : > { %v2198_v53 = vpop.f32.mrf.mxu1  ;;  %v2580_v52 = vpop.f32.mrf.mxu0  ;;  %3607 = vmatmul.mubr.bf16.gmra.mxu1 %v9398_v58  ;;  %3973 = vmatmul.mubr.bf16.gmra.mxu0 %v9316_v51  ;;  %v9404_v58 = vld [vmem:[#allocation12_spill] sm:$0xff] }
 0x208   : > { %v8032_v31 = vadd.f32 %v2576_v6, %v2302_v9  ;;  %v2303_v36 = vadd.f32 %v2198_v53, %v7717_v1  ;;  %3616 = vmatprep.mubr.bf16.mxu1 %v9235_v5  ;;  %3982 = vmatprep.mubr.bf16.mxu0 %v9235_v5  ;;  %v9403_v1 = vld [vmem:[#allocation42_spill] sm:$0xff] }
 0x209   : > { %v2200_v11 = vpop.f32.mrf.mxu1  ;;  %v2582_v20 = vpop.f32.mrf.mxu0 }
 0x20a   : > { %v8037_v7 = vadd.f32 %v2580_v52, %v2303_v36  ;;  %v2304_v44 = vadd.f32 %v2200_v11, %v7726_v12  ;;  %v9405_v52 = vld [vmem:[#allocation24_spill] sm:$0xff]  ;;  %v9407_v12 = vld [vmem:[#allocation43_spill] sm:$0xff] }
 0x20b   : > { %v2202_v60 = vpop.f32.mrf.mxu1  ;;  %v2584_v47 = vpop.f32.mrf.mxu0 }
 0x20c   : > { %9399 = vst [vmem:[#allocation64_spill] sm:$0xff] %v8037_v7  ;;  %v8040_v33 = vadd.f32 %v2582_v20, %v2304_v44  ;;  %v2305_v51 = vadd.f32 %v2202_v60, %v9401_v41  ;;  %v9413_v7 = vld [vmem:[#allocation14_spill] sm:$0xff] }
 0x20d   : > { %v2204_v18 = vpop.f32.mrf.mxu1  ;;  %v2586_v4 = vpop.f32.mrf.mxu0 }
 0x20e   : > { %9400 = vst [vmem:[#allocation65_spill] sm:$0xff] %v8040_v33  ;;  %v8043_v22 = vadd.f32 %v2584_v47, %v2305_v51  ;;  %v2306_v6 = vadd.f32 %v2204_v18, %v9403_v1  ;;  %v9408_v47 = vld [vmem:[#allocation44_spill] sm:$0xff] }
 0x20f   : > { %v2208_v9 = vpop.f32.mrf.mxu1  ;;  %v2590_v53 = vpop.f32.mrf.mxu0  ;;  %3617 = vmatmul.mubr.bf16.gmra.mxu1 %v9404_v58  ;;  %3983 = vmatmul.mubr.bf16.gmra.mxu0 %v9405_v52  ;;  %v9410_v58 = vld [vmem:[#allocation45_spill] sm:$0xff] }
 0x210   : > { %9402 = vst [vmem:[#allocation33_spill] sm:$0xff] %v8043_v22  ;;  %v8048_v36 = vadd.f32 %v2586_v4, %v2306_v6  ;;  %v2307_v11 = vadd.f32 %v2208_v9, %v9407_v12  ;;  %3626 = vmatprep.mubr.bf16.mxu1 %v9235_v5  ;;  %3992 = vmatprep.mubr.bf16.mxu0 %v9235_v5  ;;  %v9412_v9 = vld [vmem:[#allocation22_spill] sm:$0xff] }
 0x211   : > { %v2210_v20 = vpop.f32.mrf.mxu1  ;;  %v2592_v44 = vpop.f32.mrf.mxu0 }
 0x212   : > { %9406 = vst [vmem:[#allocation66_spill] sm:$0xff] %v8048_v36  ;;  %v8053_v60 = vadd.f32 %v2590_v53, %v2307_v11  ;;  %v2308_v41 = vadd.f32 %v2210_v20, %v9408_v47  ;;  %v9415_v11 = vld [vmem:[#allocation23_spill] sm:$0xff] }
 0x213   : > { %v2212_v51 = vpop.f32.mrf.mxu1  ;;  %v2594_v18 = vpop.f32.mrf.mxu0 }
 0x214   : > { %v8056_v1 = vadd.f32 %v2592_v44, %v2308_v41  ;;  %v2309_v52 = vadd.f32 %v2212_v51, %v9410_v58  ;;  %v9417_v51 = vld [vmem:[#allocation46_spill] sm:$0xff] }
 0x215   : > { %v2214_v4 = vpop.f32.mrf.mxu1  ;;  %v2596_v6 = vpop.f32.mrf.mxu0 }
 0x216   : > { %9409 = vst [vmem:[#allocation67_spill] sm:$0xff] %v8056_v1  ;;  %v8059_v36 = vadd.f32 %v2594_v18, %v2309_v52  ;;  %v2310_v12 = vadd.f32 %v2214_v4, %v9412_v9  ;;  %v9422_v1 = vld [vmem:[#allocation16_spill] sm:$0xff] }
 0x217   : > { %v2218_v22 = vpop.f32.mrf.mxu1  ;;  %v2600_v33 = vpop.f32.mrf.mxu0  ;;  %3627 = vmatmul.mubr.bf16.gmra.mxu1 %v9413_v7  ;;  %3993 = vmatmul.mubr.bf16.gmra.mxu0 %v9336_v61  ;;  %v9419_v7 = vld [vmem:[#allocation47_spill] sm:$0xff] }
 0x218   : > { %9411 = vst [vmem:[#allocation68_spill] sm:$0xff] %v8059_v36  ;;  %v8064_v53 = vadd.f32 %v2596_v6, %v2310_v12  ;;  %v2311_v20 = vadd.f32 %v2218_v22, %v9415_v11  ;;  %3636 = vmatprep.mubr.bf16.mxu1 %v9235_v5  ;;  %4002 = vmatprep.mubr.bf16.mxu0 %v9235_v5  ;;  %v9421_v22 = vld [vmem:[#allocation48_spill] sm:$0xff] }
 0x219   : > { %v2220_v44 = vpop.f32.mrf.mxu1  ;;  %v2602_v47 = vpop.f32.mrf.mxu0 }
 0x21a   : > { %9414 = vst [vmem:[#allocation69_spill] sm:$0xff] %v8064_v53  ;;  %v8069_v41 = vadd.f32 %v2600_v33, %v2311_v20  ;;  %v2312_v18 = vadd.f32 %v2220_v44, %v9417_v51  ;;  %v9423_v33 = vld [vmem:[#allocation28_spill] sm:$0xff]  ;;  %v9425_v44 = vld [vmem:[#allocation49_spill] sm:$0xff] }
 0x21b   : > { %v2222_v58 = vpop.f32.mrf.mxu1  ;;  %v2604_v52 = vpop.f32.mrf.mxu0 }
 0x21c   : > { %9416 = vst [vmem:[#allocation34_spill] sm:$0xff] %v8069_v41  ;;  %v8072_v4 = vadd.f32 %v2602_v47, %v2312_v18  ;;  %v2313_v61 = vadd.f32 %v2222_v58, %v9419_v7  ;;  %v9432_v41 = vld [vmem:[#allocation18_spill] sm:$0xff] }
 0x21d   : > { %v2224_v6 = vpop.f32.mrf.mxu1  ;;  %v2606_v9 = vpop.f32.mrf.mxu0 }
 0x21e   : > { %9418 = vst [vmem:[#allocation35_spill] sm:$0xff] %v8072_v4  ;;  %v8075_v12 = vadd.f32 %v2604_v52, %v2313_v61  ;;  %v2314_v11 = vadd.f32 %v2224_v6, %v9421_v22  ;;  %v9427_v52 = vld [vmem:[#allocation25_spill] sm:$0xff] }
 0x21f   : > { %v2228_v53 = vpop.f32.mrf.mxu1  ;;  %v2610_v36 = vpop.f32.mrf.mxu0  ;;  %3637 = vmatmul.mubr.bf16.gmra.mxu1 %v9422_v1  ;;  %4003 = vmatmul.mubr.bf16.gmra.mxu0 %v9423_v33  ;;  %v9429_v1 = vld [vmem:[#allocation50_spill] sm:$0xff] }
 0x220   : > { %9420 = vst [vmem:[#allocation36_spill] sm:$0xff] %v8075_v12  ;;  %v8080_v20 = vadd.f32 %v2606_v9, %v2314_v11  ;;  %v2315_v51 = vadd.f32 %v2228_v53, %v9425_v44  ;;  %3646 = vmatprep.mubr.bf16.mxu1 %v9235_v5  ;;  %4012 = vmatprep.mubr.bf16.mxu0 %v9235_v5  ;;  %v9431_v53 = vld [vmem:[#allocation51_spill] sm:$0xff] }
 0x221   : > { %v2230_v47 = vpop.f32.mrf.mxu1  ;;  %v2612_v18 = vpop.f32.mrf.mxu0 }
 0x222   : > { %9424 = vst [vmem:[#allocation70_spill] sm:$0xff] %v8080_v20  ;;  %v8085_v58 = vadd.f32 %v2610_v36, %v2315_v51  ;;  %v2316_v7 = vadd.f32 %v2230_v47, %v9427_v52  ;;  %v9433_v36 = vld [vmem:[#allocation30_spill] sm:$0xff]  ;;  %v9435_v47 = vld [vmem:[#allocation52_spill] sm:$0xff] }
 0x223   : > { %v2232_v61 = vpop.f32.mrf.mxu1  ;;  %v2614_v6 = vpop.f32.mrf.mxu0 }
 0x224   : > { %9426 = vst [vmem:[#allocation71_spill] sm:$0xff] %v8085_v58  ;;  %v8088_v22 = vadd.f32 %v2612_v18, %v2316_v7  ;;  %v2317_v33 = vadd.f32 %v2232_v61, %v9429_v1  ;;  %v9442_v58 = vld [vmem:[#allocation6_spill] sm:$0xff] }
 0x225   : > { %v2234_v9 = vpop.f32.mrf.mxu1  ;;  %v2616_v11 = vpop.f32.mrf.mxu0 }
 0x226   : > { %9428 = vst [vmem:[#allocation72_spill] sm:$0xff] %v8088_v22  ;;  %v8091_v20 = vadd.f32 %v2614_v6, %v2317_v33  ;;  %v2318_v44 = vadd.f32 %v2234_v9, %v9431_v53  ;;  %v9437_v6 = vld [vmem:[#allocation53_spill] sm:$0xff] }
 0x227   : > { %v2238_v12 = vpop.f32.mrf.mxu1  ;;  %v2620_v4 = vpop.f32.mrf.mxu0  ;;  %3647 = vmatmul.mubr.bf16.gmra.mxu1 %v9432_v41  ;;  %4013 = vmatmul.mubr.bf16.gmra.mxu0 %v9433_v36  ;;  %v9439_v41 = vld [vmem:[#allocation26_spill] sm:$0xff] }
 0x228   : > { %9430 = vst [vmem:[#allocation38_spill] sm:$0xff] %v8091_v20  ;;  %v8096_v51 = vadd.f32 %v2616_v11, %v2318_v44  ;;  %v2319_v52 = vadd.f32 %v2238_v12, %v9435_v47  ;;  %3656 = vmatprep.mubr.bf16.mxu1 %v9235_v5  ;;  %4022 = vmatprep.mubr.bf16.mxu0 %v9235_v5  ;;  %v9441_v12 = vld [vmem:[#allocation27_spill] sm:$0xff] }
 0x229   : > { %v2240_v18 = vpop.f32.mrf.mxu1  ;;  %v2622_v7 = vpop.f32.mrf.mxu0 }
 0x22a   : > { %9434 = vst [vmem:[#allocation73_spill] sm:$0xff] %v8096_v51  ;;  %v8101_v61 = vadd.f32 %v2620_v4, %v2319_v52  ;;  %v2320_v1 = vadd.f32 %v2240_v18, %v9437_v6  ;;  %v9443_v4 = vld [vmem:[#allocation32_spill] sm:$0xff]  ;;  %v9445_v18 = vld [vmem:[#allocation54_spill] sm:$0xff] }
 0x22b   : > { %v2242_v33 = vpop.f32.mrf.mxu1  ;;  %v2624_v9 = vpop.f32.mrf.mxu0 }
 0x22c   : > { %9436 = vst [vmem:[#allocation74_spill] sm:$0xff] %v8101_v61  ;;  %v8104_v53 = vadd.f32 %v2622_v7, %v2320_v1  ;;  %v2321_v36 = vadd.f32 %v2242_v33, %v9439_v41  ;;  %v9449_v61 = vld [vmem:[#allocation7_spill] sm:$0xff] }
 0x22d   : > { %v2244_v11 = vpop.f32.mrf.mxu1  ;;  %v2626_v44 = vpop.f32.mrf.mxu0 }
 0x22e   : > { %9438 = vst [vmem:[#allocation75_spill] sm:$0xff] %v8104_v53  ;;  %v8107_v51 = vadd.f32 %v2624_v9, %v2321_v36  ;;  %v2322_v47 = vadd.f32 %v2244_v11, %v9441_v12  ;;  %v9446_v9 = vld [vmem:[#allocation55_spill] sm:$0xff] }
 0x22f   : > { %v2248_v20 = vpop.f32.mrf.mxu1  ;;  %v2630_v22 = vpop.f32.mrf.mxu0  ;;  %3657 = vmatmul.mubr.bf16.gmra.mxu1 %v9442_v58  ;;  %4023 = vmatmul.mubr.bf16.gmra.mxu0 %v9443_v4  ;;  %v9447_v58 = vld [vmem:[#allocation56_spill] sm:$0xff] }
 0x230   : > { %9440 = vst [vmem:[#allocation76_spill] sm:$0xff] %v8107_v51  ;;  %v8112_v52 = vadd.f32 %v2626_v44, %v2322_v47  ;;  %v2323_v6 = vadd.f32 %v2248_v20, %v9445_v18  ;;  %3666 = vmatprep.mubr.bf16.mxu1 %v9235_v5  ;;  %4032 = vmatprep.mubr.bf16.mxu0 %v9235_v5  ;;  %v9448_v20 = vld [vmem:[#allocation57_spill] sm:$0xff] }
 0x231   : > { %v2250_v7 = vpop.f32.mrf.mxu1  ;;  %v2632_v1 = vpop.f32.mrf.mxu0 }
 0x232   : > { %9444 = vst [vmem:[#allocation39_spill] sm:$0xff] %v8112_v52  ;;  %v8117_v33 = vadd.f32 %v2630_v22, %v2323_v6  ;;  %v2324_v41 = vadd.f32 %v2250_v7, %v9446_v9 }
 0x233   : > { %v2252_v36 = vpop.f32.mrf.mxu1  ;;  %v2634_v11 = vpop.f32.mrf.mxu0 }
 0x234   : > { %v8120_v12 = vadd.f32 %v2632_v1, %v2324_v41  ;;  %v2325_v4 = vadd.f32 %v2252_v36, %v9447_v58 }
 0x235   : > { %v2254_v44 = vpop.f32.mrf.mxu1  ;;  %v2636_v47 = vpop.f32.mrf.mxu0 }
 0x236   : > { %v8123_v52 = vadd.f32 %v2634_v11, %v2325_v4  ;;  %v2326_v18 = vadd.f32 %v2254_v44, %v9448_v20  ;;  %v9450_v20 = vld [vmem:[#allocation9_spill] sm:$0xff] }
 0x237   : > { %v2258_v51 = vpop.f32.mrf.mxu1  ;;  %v2640_v53 = vpop.f32.mrf.mxu0  ;;  %3667 = vmatmul.mubr.bf16.gmra.mxu1 %v9449_v61  ;;  %4033 = vmatmul.mubr.bf16.gmra.mxu0 %v9373_v50 }
 0x238   : > { %v8128_v22 = vadd.f32 %v2636_v47, %v2326_v18  ;;  %v2327_v6 = vadd.f32 %v2258_v51, %v7861_v8  ;;  %3676 = vmatprep.mubr.bf16.mxu1 %v9235_v5  ;;  %4042 = vmatprep.mubr.bf16.mxu0 %v9235_v5 }
 0x239   : > { %v2260_v7 = vpop.f32.mrf.mxu1  ;;  %v2642_v1 = vpop.f32.mrf.mxu0 }
 0x23a   : > { %v8133_v9 = vadd.f32 %v2640_v53, %v2327_v6  ;;  %v2328_v41 = vadd.f32 %v2260_v7, %v7864_v15 }
 0x23b   : > { %v2262_v36 = vpop.f32.mrf.mxu1  ;;  %v2644_v11 = vpop.f32.mrf.mxu0 }
 0x23c   : > { %v8136_v58 = vadd.f32 %v2642_v1, %v2328_v41  ;;  %v2329_v50 = vadd.f32 %v2262_v36, %v7867_v57 }
 0x23d   : > { %v2264_v61 = vpop.f32.mrf.mxu1  ;;  %v2646_v4 = vpop.f32.mrf.mxu0 }
 0x23e   : > { %v8139_v44 = vadd.f32 %v2644_v11, %v2329_v50  ;;  %v2330_v8 = vadd.f32 %v2264_v61, %v7872_v3 }
 0x23f   : > { %v2856_v51 = vpop.f32.mrf.mxu1  ;;  %v3216_v47 = vpop.f32.mrf.mxu0  ;;  %3677 = vmatmul.mubr.bf16.gmra.mxu1 %v9450_v20  ;;  %4043 = vmatmul.mubr.bf16.gmra.mxu0 %v9374_v32 }
 0x240   : > { %v8144_v53 = vadd.f32 %v2646_v4, %v2330_v8  ;;  %v3015_v15 = vadd.f32 %v2856_v51, %v7877_v38  ;;  %3686 = vmatprep.mubr.bf16.mxu1 %v9235_v5  ;;  %4052 = vmatprep.mubr.bf16.mxu0 %v9235_v5  ;;  %v9451_v8 = vld [vmem:[#allocation11_spill] sm:$0xff] }
 0x241   : > { %v2858_v57 = vpop.f32.mrf.mxu1  ;;  %v3218_v18 = vpop.f32.mrf.mxu0 }
 0x242   : > { %v8149_v6 = vadd.f32 %v3216_v47, %v3015_v15  ;;  %v3016_v3 = vadd.f32 %v2858_v57, %v7880_v14  ;;  %v9453_v15 = vld [vmem:[#allocation29_spill] sm:$0xff] }
 0x243   : > { %v2860_v7 = vpop.f32.mrf.mxu1  ;;  %v3220_v1 = vpop.f32.mrf.mxu0 }
 0x244   : > { %v8152_v41 = vadd.f32 %v3218_v18, %v3016_v3  ;;  %v3017_v32 = vadd.f32 %v2860_v7, %v7883_v13  ;;  %v9455_v7 = vld [vmem:[#allocation58_spill] sm:$0xff] }
 0x245   : > { %v2862_v36 = vpop.f32.mrf.mxu1  ;;  %v3222_v11 = vpop.f32.mrf.mxu0 }
 0x246   : > { %v8155_v50 = vadd.f32 %v3220_v1, %v3017_v32  ;;  %v3018_v38 = vadd.f32 %v2862_v36, %v7888_v29 }
 0x247   : > { %v2866_v61 = vpop.f32.mrf.mxu1  ;;  %v3226_v4 = vpop.f32.mrf.mxu0  ;;  %3687 = vmatmul.mubr.bf16.gmra.mxu1 %v9451_v8  ;;  %4053 = vmatmul.mubr.bf16.gmra.mxu0 %v9377_v40  ;;  %v9458_v8 = vld [vmem:[#allocation13_spill] sm:$0xff] }
 0x248   : > { %v8160_v51 = vadd.f32 %v3222_v11, %v3018_v38  ;;  %v3019_v14 = vadd.f32 %v2866_v61, %v7893_v34  ;;  %3696 = vmatprep.mubr.bf16.mxu1 %v9235_v5  ;;  %4062 = vmatprep.mubr.bf16.mxu0 %v9235_v5  ;;  %v9457_v34 = vld [vmem:[#allocation59_spill] sm:$0xff] }
 0x249   : > { %v2868_v13 = vpop.f32.mrf.mxu1  ;;  %v3228_v47 = vpop.f32.mrf.mxu0 }
 0x24a   : > { %v8165_v20 = vadd.f32 %v3226_v4, %v3019_v14  ;;  %v3020_v29 = vadd.f32 %v2868_v13, %v9453_v15  ;;  %v9459_v4 = vld [vmem:[#allocation37_spill] sm:$0xff]  ;;  %v9461_v13 = vld [vmem:[#allocation60_spill] sm:$0xff] }
 0x24b   : > { %v2870_v57 = vpop.f32.mrf.mxu1  ;;  %v3230_v18 = vpop.f32.mrf.mxu0 }
 0x24c   : > { %9452 = vst [vmem:[#allocation40_spill] sm:$0xff] %v8165_v20  ;;  %v8168_v3 = vadd.f32 %v3228_v47, %v3020_v29  ;;  %v3021_v40 = vadd.f32 %v2870_v57, %v9455_v7  ;;  %v9465_v20 = vld [vmem:[#allocation15_spill] sm:$0xff] }
 0x24d   : > { %v2872_v1 = vpop.f32.mrf.mxu1  ;;  %v3232_v32 = vpop.f32.mrf.mxu0 }
 0x24e   : > { %9454 = vst [vmem:[#allocation41_spill] sm:$0xff] %v8168_v3  ;;  %v8171_v36 = vadd.f32 %v3230_v18, %v3021_v40  ;;  %v3022_v11 = vadd.f32 %v2872_v1, %v9457_v34  ;;  %v9462_v18 = vld [vmem:[#allocation61_spill] sm:$0xff] }
 0x24f   : > { %v2876_v38 = vpop.f32.mrf.mxu1  ;;  %v3236_v61 = vpop.f32.mrf.mxu0  ;;  %3697 = vmatmul.mubr.bf16.gmra.mxu1 %v9458_v8  ;;  %4063 = vmatmul.mubr.bf16.gmra.mxu0 %v9459_v4  ;;  %v9463_v8 = vld [vmem:[#allocation31_spill] sm:$0xff] }
 0x250   : > { %9456 = vst [vmem:[#allocation20_spill] sm:$0xff] %v8171_v36  ;;  %v8176_v14 = vadd.f32 %v3232_v32, %v3022_v11  ;;  %v3023_v15 = vadd.f32 %v2876_v38, %v9461_v13  ;;  %3706 = vmatprep.mubr.bf16.mxu1 %v9235_v5  ;;  %4072 = vmatprep.mubr.bf16.mxu0 %v9235_v5  ;;  %v9464_v38 = vld [vmem:[#allocation62_spill] sm:$0xff] }
 0x251   : > { %v2878_v47 = vpop.f32.mrf.mxu1  ;;  %v3238_v29 = vpop.f32.mrf.mxu0 }
 0x252   : > { %9460 = vst [vmem:[#allocation8_spill] sm:$0xff] %v8176_v14  ;;  %v8181_v57 = vadd.f32 %v3236_v61, %v3023_v15  ;;  %v3024_v7 = vadd.f32 %v2878_v47, %v9462_v18 }
 0x253   : > { %v2880_v40 = vpop.f32.mrf.mxu1  ;;  %v3240_v1 = vpop.f32.mrf.mxu0 }
 0x254   : > { %v8184_v34 = vadd.f32 %v3238_v29, %v3024_v7  ;;  %v3025_v4 = vadd.f32 %v2880_v40, %v9463_v8 }
 0x255   : > { %v2882_v32 = vpop.f32.mrf.mxu1  ;;  %v3242_v11 = vpop.f32.mrf.mxu0 }
 0x256   : > { %v8187_v14 = vadd.f32 %v3240_v1, %v3025_v4  ;;  %v3026_v13 = vadd.f32 %v2882_v32, %v9464_v38 }
 0x257   : > { %v2886_v36 = vpop.f32.mrf.mxu1  ;;  %v3246_v3 = vpop.f32.mrf.mxu0  ;;  %3707 = vmatmul.mubr.bf16.gmra.mxu1 %v9465_v20  ;;  %4073 = vmatmul.mubr.bf16.gmra.mxu0 %v9392_v54 }
 0x258   : > { %v8192_v61 = vadd.f32 %v3242_v11, %v3026_v13  ;;  %v3027_v15 = vadd.f32 %v2886_v36, %v7925_v49  ;;  %3716 = vmatprep.mubr.bf16.mxu1 %v9235_v5  ;;  %4082 = vmatprep.mubr.bf16.mxu0 %v9235_v5  ;;  %v3440_v36 = vshrl.u32 %v7981_v27, 16  ;;  %v3443_v11 = vshll.u32 %v7981_v27, 16  ;;  %v9468_v13 = vld [vmem:[#allocation17_spill] sm:$0xff] }
 0x259   : > { %v2888_v47 = vpop.f32.mrf.mxu1  ;;  %v3248_v29 = vpop.f32.mrf.mxu0 }
 0x25a   : > { %v8197_v18 = vadd.f32 %v3246_v3, %v3027_v15  ;;  %v3028_v7 = vadd.f32 %v2888_v47, %v7928_v39  ;;  %v3453_v3 = vshrl.u32 %v7984_v25, 16 }
 0x25b   : > { %v2890_v40 = vpop.f32.mrf.mxu1  ;;  %v3250_v1 = vpop.f32.mrf.mxu0 }
 0x25c   : > { %v8200_v8 = vadd.f32 %v3248_v29, %v3028_v7  ;;  %v3029_v54 = vadd.f32 %v2890_v40, %v7931_v21  ;;  %v3449_v21 = vshll.u32 %v7984_v25, 16 }
 0x25d   : > { %v2892_v20 = vpop.f32.mrf.mxu1  ;;  %v3252_v4 = vpop.f32.mrf.mxu0 }
 0x25e   : > { %9466 = vst [vmem:[#allocation10_spill] sm:$0xff] %v8200_v8  ;;  %v8203_v32 = vadd.f32 %v3250_v1, %v3029_v54  ;;  %v3030_v49 = vadd.f32 %v2892_v20, %v7936_v46  ;;  %v3445_v20 = vrot.slane %v3443_v11, 5 }
 0x25f   : > { %v2896_v38 = vpop.f32.mrf.mxu1  ;;  %v3256_v39 = vpop.f32.mrf.mxu0  ;;  %3717 = vmatmul.mubr.bf16.gmra.mxu1 %v9468_v13  ;;  %4083 = vmatmul.mubr.bf16.gmra.mxu0 %v9393_v59  ;;  %v3442_v59 = vrot.slane %v3440_v36, 4  ;;  %v3451_v13 = vrot.slane %v3449_v21, 5 }
 0x260   : > { %9467 = vst [vmem:[#allocation21_spill] sm:$0xff] %v8203_v32  ;;  %v8212_v15 = vadd.f32 %v3252_v4, %v3030_v49  ;;  %v3031_v47 = vadd.f32 %v2896_v38, %v7941_v55  ;;  %3726 = vmatprep.mubr.bf16.mxu1 %v9235_v5  ;;  %4092 = vmatprep.mubr.bf16.mxu0 %v9235_v5  ;;  %v3455_v4 = vrot.slane %v3453_v3, 4  ;;  %v295_v38 = vld [vmem:[%s6446_s20 + $0xd4] sm:$0x1] }
 0x261   : > { %v2898_v46 = vpop.f32.mrf.mxu1  ;;  %v3258_v29 = vpop.f32.mrf.mxu0  ;;  %v3446_v36 = vor.u32 %v3445_v20, %v3442_v59  ;;  %v3459_v3 = vshll.u32 %v295_v38, 16  ;;  %v5817_v20 = vrot.slane %v7981_v27, 9 }
 0x262   : > { %9469 = vst [vmem:[#allocation42_spill] sm:$0xff] %v8212_v15  ;;  %v8217_v7 = vadd.f32 %v3256_v39, %v3031_v47  ;;  %v3032_v40 = vadd.f32 %v2898_v46, %v7944_v23  ;;  %v9471_v23 = vld [vmem:[#allocation19_spill] sm:$0xff]  ;;  %v3456_v11 = vor.u32 %v3455_v4, %v3451_v13  ;;  %v3824_v46 = vrot.slane %v7984_v25, 5 }
 0x263   : > { %v2900_v1 = vpop.f32.mrf.mxu1  ;;  %v3260_v54 = vpop.f32.mrf.mxu0 }
 0x264   : > { %9470 = vst [vmem:[#allocation12_spill] sm:$0xff] %v8217_v7  ;;  %v8220_v49 = vadd.f32 %v3258_v29, %v3032_v40  ;;  %v3033_v55 = vadd.f32 %v2900_v1, %v7947_v28  ;;  %v3457_v59 = vrot.slane %v3456_v11, 4 }
 0x265   : > { %v2902_v15 = vpop.f32.mrf.mxu1  ;;  %v3262_v32 = vpop.f32.mrf.mxu0 }
 0x266   : > { %v8224_v8 = vadd.f32 %v3260_v54, %v3033_v55  ;;  %v3034_v39 = vadd.f32 %v2902_v15, %v7952_v30  ;;  %v3447_v54 = vrot.slane %v3446_v36, 4  ;;  %v3826_v55 = vrot.slane %v3824_v46, 4 }
 0x267   : > { %v2906_v47 = vpop.f32.mrf.mxu1  ;;  %v3266_v7 = vpop.f32.mrf.mxu0  ;;  %3727 = vmatmul.mubr.bf16.gmra.mxu1 %v9471_v23  ;;  %4093 = vmatmul.mubr.bf16.gmra.mxu0 %v9394_v62 }
 0x268   : > { %v8229_v21 = vadd.f32 %v3262_v32, %v3034_v39  ;;  %v3035_v28 = vadd.f32 %v2906_v47, %v7958_v2  ;;  %3736 = vmatprep.mubr.bf16.mxu1 %v9235_v5  ;;  %4102 = vmatprep.mubr.bf16.mxu0 %v9235_v5  ;;  %v3461_v32 = vrot.slane %v3459_v3, 5  ;;  %v3827_v39 = vrot.slane %v295_v38, 5  ;;  %v9474_v3 = vld [vmem:[#allocation63_spill] sm:$0xff] }
 0x269   : > { %v2908_v30 = vpop.f32.mrf.mxu1  ;;  %v3268_v15 = vpop.f32.mrf.mxu0  ;;  %v3452_v27 = vsel %vm6482_vm2, %v3447_v54, %v3451_v13  ;;  %v3825_v38 = vsel %vm6889_vm5, %v5817_v20, %v3824_v46 }
 0x26a   : > { %v8235_v29 = vadd.f32 %v3266_v7, %v3035_v28  ;;  %v3036_v40 = vadd.f32 %v2908_v30, %v7962_v0  ;;  %v9472_v30 = vld [vmem:[#allocation77_spill] sm:$0xff] }
 0x26b   : > { %v2910_v62 = vpop.f32.mrf.mxu1  ;;  %v3270_v1 = vpop.f32.mrf.mxu0 }
 0x26c   : > { %v8239_v2 = vadd.f32 %v3268_v15, %v3036_v40  ;;  %v3037_v4 = vadd.f32 %v2910_v62, %v7966_v43  ;;  %v3462_v43 = vsel %vm6482_vm2, %v3457_v59, %v3461_v32 }
 0x26d   : > { %v2912_v25 = vpop.f32.mrf.mxu1  ;;  %v3272_v47 = vpop.f32.mrf.mxu0  ;;  %v5800_v46 = vcombine.low %v3452_v27, %v3462_v43 }
 0x26e   : > { %v8242_v23 = vadd.f32 %v3270_v1, %v3037_v4  ;;  %v3038_v7 = vadd.f32 %v2912_v25, %v7973_v26  ;;  %v3828_v26 = vsel %vm6889_vm5, %v3826_v55, %v3827_v39 }
 0x26f   : > { %v2916_v0 = vpop.f32.mrf.mxu1  ;;  %v3276_v28 = vpop.f32.mrf.mxu0  ;;  %3737 = vmatmul.mubr.bf16.gmra.mxu1 %v9472_v30  ;;  %4103 = vmatmul.mubr.bf16.gmra.mxu0 %v7989_v16  ;;  %v5834_v59 = vcombine.low %v3825_v38, %v3828_v26 }
 0x270   : > { %v8253_v11 = vadd.f32 %v3272_v47, %v3038_v7  ;;  %v3039_v15 = vadd.f32 %v2916_v0, %v9474_v3  ;;  %3746 = vmatprep.mubr.bf16.mxu1 %v9235_v5  ;;  %4112 = vmatprep.mubr.bf16.mxu0 %v9235_v5 }
 0x271   : > { %v2918_v16 = vpop.f32.mrf.mxu1  ;;  %v3278_v40 = vpop.f32.mrf.mxu0 }
 0x272   : > { %v8260_v13 = vadd.f32 %v3276_v28, %v3039_v15  ;;  %v3040_v62 = vadd.f32 %v2918_v16, %v7993_v63 }
 0x273   : > { %v2920_v1 = vpop.f32.mrf.mxu1  ;;  %v3280_v54 = vpop.f32.mrf.mxu0 }
 0x274   : > { %v8263_v32 = vadd.f32 %v3278_v40, %v3040_v62  ;;  %v3041_v20 = vadd.f32 %v2920_v1, %v7996_v37 }
 0x275   : > { %v2922_v4 = vpop.f32.mrf.mxu1  ;;  %v3282_v25 = vpop.f32.mrf.mxu0 }
 0x276   : > { %v8266_v5 = vadd.f32 %v3280_v54, %v3041_v20  ;;  %v3042_v42 = vadd.f32 %v2922_v4, %v8000_v19 }
 0x277   : > { %v2926_v55 = vpop.f32.mrf.mxu1  ;;  %v3286_v39 = vpop.f32.mrf.mxu0  ;;  %3747 = vmatmul.mubr.bf16.gmra.mxu1 %v5800_v46  ;;  %4113 = vmatmul.mubr.bf16.gmra.mxu0 %v5834_v59 }
 0x278   : > { %v8269_v47 = vadd.f32 %v3282_v25, %v3042_v42  ;;  %v3043_v63 = vadd.f32 %v2926_v55, %v8005_v48 }
 0x279   : > { %v2928_v7 = vpop.f32.mrf.mxu1  ;;  %v3288_v0 = vpop.f32.mrf.mxu0 }
 0x27a   : > { %9475 = vst [vmem:[#allocation24_spill] sm:$0xff] %v8269_v47  ;;  %v8272_v28 = vadd.f32 %v3286_v39, %v3043_v63  ;;  %v3044_v37 = vadd.f32 %v2928_v7, %v8008_v56  ;;  %v9484_v7 = vld [vmem:[#allocation64_spill] sm:$0xff] }
 0x27b   : > { %v2930_v30 = vpop.f32.mrf.mxu1  ;;  %v3290_v27 = vpop.f32.mrf.mxu0 }
 0x27c   : > { %9476 = vst [vmem:[#allocation43_spill] sm:$0xff] %v8272_v28  ;;  %v8275_v43 = vadd.f32 %v3288_v0, %v3044_v37  ;;  %v3045_v19 = vadd.f32 %v2930_v30, %v8011_v24  ;;  %v6281_v28 = vld [vmem:[%s6446_s20 + $0x64] sm:$0xf] }
 0x27d   : > { %v2932_v38 = vpop.f32.mrf.mxu1  ;;  %v3292_v3 = vpop.f32.mrf.mxu0 }
 0x27e   : > { %9477 = vst [vmem:[#allocation44_spill] sm:$0xff] %v8275_v43  ;;  %v8278_v15 = vadd.f32 %v3290_v27, %v3045_v19  ;;  %v3046_v26 = vadd.f32 %v2932_v38, %v8016_v10  ;;  %v9486_v27 = vld [vmem:[#allocation65_spill] sm:$0xff] }
 0x27f   : > { %v2936_v16 = vpop.f32.mrf.mxu1  ;;  %v3296_v48 = vpop.f32.mrf.mxu0 }
 0x280   : > { %9478 = vst [vmem:[#allocation45_spill] sm:$0xff] %v8278_v15  ;;  %v8281_v40 = vadd.f32 %v3292_v3, %v3046_v26  ;;  %v3047_v62 = vadd.f32 %v2936_v16, %v8021_v35  ;;  %v9488_v26 = vld [vmem:[#allocation33_spill] sm:$0xff] }
 0x281   : > { %v2938_v1 = vpop.f32.mrf.mxu1  ;;  %v3298_v56 = vpop.f32.mrf.mxu0 }
 0x282   : > { %9479 = vst [vmem:[#allocation22_spill] sm:$0xff] %v8281_v40  ;;  %v8284_v54 = vadd.f32 %v3296_v48, %v3047_v62  ;;  %v3048_v46 = vadd.f32 %v2938_v1, %v8024_v17  ;;  %v9490_v1 = vld [vmem:[#allocation66_spill] sm:$0xff] }
 0x283   : > { %v2940_v59 = vpop.f32.mrf.mxu1  ;;  %v3300_v24 = vpop.f32.mrf.mxu0 }
 0x284   : > { %9480 = vst [vmem:[#allocation14_spill] sm:$0xff] %v8284_v54  ;;  %v8287_v20 = vadd.f32 %v3298_v56, %v3048_v46  ;;  %v3049_v4 = vadd.f32 %v2940_v59, %v8027_v45 }
 0x285   : > { %v2942_v25 = vpop.f32.mrf.mxu1  ;;  %v3302_v10 = vpop.f32.mrf.mxu0 }
 0x286   : > { %9481 = vst [vmem:[#allocation23_spill] sm:$0xff] %v8287_v20  ;;  %v8290_v42 = vadd.f32 %v3300_v24, %v3049_v4  ;;  %v3050_v55 = vadd.f32 %v2942_v25, %v8032_v31  ;;  %v6276_v20 = vld [vmem:[%s6446_s20 + $0x54] sm:$0xf] }
 0x287   : > { %v2946_v39 = vpop.f32.mrf.mxu1  ;;  %v3306_v35 = vpop.f32.mrf.mxu0  ;;  %v4531_v54 = vunpack.c.l.bf16 %v6276_v20 }
 0x288   : > { %9482 = vst [vmem:[#allocation46_spill] sm:$0xff] %v8290_v42  ;;  %v8293_v63 = vadd.f32 %v3302_v10, %v3050_v55  ;;  %v3051_v0 = vadd.f32 %v2946_v39, %v9484_v7  ;;  %v9493_v39 = vld [vmem:[#allocation67_spill] sm:$0xff] }
 0x289   : > { %v2948_v37 = vpop.f32.mrf.mxu1  ;;  %v3308_v17 = vpop.f32.mrf.mxu0 }
 0x28a   : > { %9483 = vst [vmem:[#allocation47_spill] sm:$0xff] %v8293_v63  ;;  %v8296_v30 = vadd.f32 %v3306_v35, %v3051_v0  ;;  %v3052_v19 = vadd.f32 %v2948_v37, %v9486_v27 }
 0x28b   : > { %v2950_v38 = vpop.f32.mrf.mxu1  ;;  %v3310_v45 = vpop.f32.mrf.mxu0 }
 0x28c   : > { %9485 = vst [vmem:[#allocation48_spill] sm:$0xff] %v8296_v30  ;;  %v8299_v3 = vadd.f32 %v3308_v17, %v3052_v19  ;;  %v3053_v16 = vadd.f32 %v2950_v38, %v9488_v26  ;;  %v9495_v17 = vld [vmem:[#allocation68_spill] sm:$0xff]  ;;  %v9497_v26 = vld [vmem:[#allocation69_spill] sm:$0xff] }
 0x28d   : > { %v2952_v48 = vpop.f32.mrf.mxu1  ;;  %v3312_v31 = vpop.f32.mrf.mxu0 }
 0x28e   : > { %9487 = vst [vmem:[#allocation16_spill] sm:$0xff] %v8299_v3  ;;  %v8302_v62 = vadd.f32 %v3310_v45, %v3053_v16  ;;  %v3054_v56 = vadd.f32 %v2952_v48, %v9490_v1  ;;  %v9499_v1 = vld [vmem:[#allocation34_spill] sm:$0xff] }
 0x28f   : > { %v2956_v46 = vpop.f32.mrf.mxu1  ;;  %v3316_v59 = vpop.f32.mrf.mxu0 }
 0x290   : > { %9489 = vst [vmem:[#allocation28_spill] sm:$0xff] %v8302_v62  ;;  %v8305_v24 = vadd.f32 %v3312_v31, %v3054_v56  ;;  %v3055_v4 = vadd.f32 %v2956_v46, %v8053_v60 }
 0x291   : > { %v2958_v25 = vpop.f32.mrf.mxu1  ;;  %v3318_v10 = vpop.f32.mrf.mxu0 }
 0x292   : > { %9491 = vst [vmem:[#allocation49_spill] sm:$0xff] %v8305_v24  ;;  %v8308_v55 = vadd.f32 %v3316_v59, %v3055_v4  ;;  %v3056_v35 = vadd.f32 %v2958_v25, %v9493_v39  ;;  %v9501_v25 = vld [vmem:[#allocation35_spill] sm:$0xff] }
 0x293   : > { %v2960_v7 = vpop.f32.mrf.mxu1  ;;  %v3320_v0 = vpop.f32.mrf.mxu0 }
 0x294   : > { %9492 = vst [vmem:[#allocation25_spill] sm:$0xff] %v8308_v55  ;;  %v8311_v37 = vadd.f32 %v3318_v10, %v3056_v35  ;;  %v3057_v27 = vadd.f32 %v2960_v7, %v9495_v17 }
 0x295   : > { %v2962_v19 = vpop.f32.mrf.mxu1  ;;  %v3322_v38 = vpop.f32.mrf.mxu0 }
 0x296   : > { %9494 = vst [vmem:[#allocation50_spill] sm:$0xff] %v8311_v37  ;;  %v8314_v45 = vadd.f32 %v3320_v0, %v3057_v27  ;;  %v3058_v16 = vadd.f32 %v2962_v19, %v9497_v26  ;;  %v9503_v0 = vld [vmem:[#allocation36_spill] sm:$0xff] }
 0x297   : > { %v2966_v48 = vpop.f32.mrf.mxu1  ;;  %v3326_v60 = vpop.f32.mrf.mxu0 }
 0x298   : > { %9496 = vst [vmem:[#allocation51_spill] sm:$0xff] %v8314_v45  ;;  %v8317_v31 = vadd.f32 %v3322_v38, %v3058_v16  ;;  %v3059_v56 = vadd.f32 %v2966_v48, %v9499_v1  ;;  %v9505_v38 = vld [vmem:[#allocation70_spill] sm:$0xff] }
 0x299   : > { %v2968_v46 = vpop.f32.mrf.mxu1  ;;  %v3328_v59 = vpop.f32.mrf.mxu0 }
 0x29a   : > { %9498 = vst [vmem:[#allocation18_spill] sm:$0xff] %v8317_v31  ;;  %v8320_v4 = vadd.f32 %v3326_v60, %v3059_v56  ;;  %v3060_v10 = vadd.f32 %v2968_v46, %v9501_v25  ;;  %v9507_v60 = vld [vmem:[#allocation71_spill] sm:$0xff] }
 0x29b   : > { %v2970_v39 = vpop.f32.mrf.mxu1  ;;  %v3330_v35 = vpop.f32.mrf.mxu0 }
 0x29c   : > { %9500 = vst [vmem:[#allocation30_spill] sm:$0xff] %v8320_v4  ;;  %v8323_v7 = vadd.f32 %v3328_v59, %v3060_v10  ;;  %v3061_v17 = vadd.f32 %v2970_v39, %v9503_v0  ;;  %v9509_v59 = vld [vmem:[#allocation72_spill] sm:$0xff] }
 0x29d   : > { %v2972_v27 = vpop.f32.mrf.mxu1  ;;  %v3332_v19 = vpop.f32.mrf.mxu0 }
 0x29e   : > { %9502 = vst [vmem:[#allocation52_spill] sm:$0xff] %v8323_v7  ;;  %v8326_v26 = vadd.f32 %v3330_v35, %v3061_v17  ;;  %v3062_v16 = vadd.f32 %v2972_v27, %v9505_v38  ;;  %v9511_v35 = vld [vmem:[#allocation38_spill] sm:$0xff] }
 0x29f   : > { %v2976_v31 = vpop.f32.mrf.mxu1  ;;  %v3336_v48 = vpop.f32.mrf.mxu0 }
 0x2a0   : > { %9504 = vst [vmem:[#allocation53_spill] sm:$0xff] %v8326_v26  ;;  %v8329_v1 = vadd.f32 %v3332_v19, %v3062_v16  ;;  %v3063_v56 = vadd.f32 %v2976_v31, %v9507_v60  ;;  %v9513_v19 = vld [vmem:[#allocation73_spill] sm:$0xff] }
 0x2a1   : > { %v2978_v4 = vpop.f32.mrf.mxu1  ;;  %v3338_v46 = vpop.f32.mrf.mxu0 }
 0x2a2   : > { %9506 = vst [vmem:[#allocation26_spill] sm:$0xff] %v8329_v1  ;;  %v8332_v25 = vadd.f32 %v3336_v48, %v3063_v56  ;;  %v3064_v10 = vadd.f32 %v2978_v4, %v9509_v59  ;;  %v4189_v1 = vlaneseq  ;;  %v9515_v48 = vld [vmem:[#allocation74_spill] sm:$0xff] }
 0x2a3   : > { %v2980_v7 = vpop.f32.mrf.mxu1  ;;  %v3340_v39 = vpop.f32.mrf.mxu0 }
 0x2a4   : > { %9508 = vst [vmem:[#allocation27_spill] sm:$0xff] %v8332_v25  ;;  %v8335_v0 = vadd.f32 %v3338_v46, %v3064_v10  ;;  %v3065_v17 = vadd.f32 %v2980_v7, %v9511_v35  ;;  %v9517_v46 = vld [vmem:[#allocation75_spill] sm:$0xff]  ;;  %v4190_v7 = vshrl.u32 %v4189_v1, 7  ;;  %v4187_v1 = vld [vmem:[%s9151_s3] ss:$4 sm:$0x3] }
 0x2a5   : > { %v2982_v26 = vpop.f32.mrf.mxu1  ;;  %v3342_v27 = vpop.f32.mrf.mxu0 }
 0x2a6   : > { %9510 = vst [vmem:[#allocation6_spill] sm:$0xff] %v8335_v0  ;;  %v8338_v38 = vadd.f32 %v3340_v39, %v3065_v17  ;;  %v3066_v16 = vadd.f32 %v2982_v26, %v9513_v19  ;;  %v9519_v17 = vld [vmem:[#allocation76_spill] sm:$0xff] }
 0x2a7   : > { %v2986_v31 = vpop.f32.mrf.mxu1  ;;  %v3346_v60 = vpop.f32.mrf.mxu0 }
 0x2a8   : > { %9512 = vst [vmem:[#allocation32_spill] sm:$0xff] %v8338_v38  ;;  %v8341_v45 = vadd.f32 %v3342_v27, %v3066_v16  ;;  %v3067_v56 = vadd.f32 %v2986_v31, %v9515_v48  ;;  %v9521_v16 = vld [vmem:[#allocation39_spill] sm:$0xff]  ;;  %v4191_v48 = vsub.s32 0, %v4190_v7 }
 0x2a9   : > { %v2988_v4 = vpop.f32.mrf.mxu1  ;;  %v3348_v59 = vpop.f32.mrf.mxu0 }
 0x2aa   : > { %9514 = vst [vmem:[#allocation54_spill] sm:$0xff] %v8341_v45  ;;  %v8344_v25 = vadd.f32 %v3346_v60, %v3067_v56  ;;  %v3068_v10 = vadd.f32 %v2988_v4, %v9517_v46  ;;  %v4195_v56 = vsub.s32 1, %v4190_v7 }
 0x2ab   : > { %v2990_v35 = vpop.f32.mrf.mxu1  ;;  %v3350_v0 = vpop.f32.mrf.mxu0 }
 0x2ac   : > { %9516 = vst [vmem:[#allocation55_spill] sm:$0xff] %v8344_v25  ;;  %v8347_v39 = vadd.f32 %v3348_v59, %v3068_v10  ;;  %v3069_v26 = vadd.f32 %v2990_v35, %v9519_v17 }
 0x2ad   : > { %v2992_v19 = vpop.f32.mrf.mxu1  ;;  %v3352_v38 = vpop.f32.mrf.mxu0 }
 0x2ae   : > { %9518 = vst [vmem:[#allocation56_spill] sm:$0xff] %v8347_v39  ;;  %v8350_v27 = vadd.f32 %v3350_v0, %v3069_v26  ;;  %v3070_v31 = vadd.f32 %v2992_v19, %v9521_v16  ;;  %v5851_v0 = vld [vmem:[%s9151_s3 + $0x1] ss:$4 sm:$0x3]  ;;  %v8365_v26 = vrot.slane %v4187_v1, %v4191_v48  ;;  %v6258_v16 = vld [vmem:[%s6446_s20 + $0xc] sm:$0xf] }
 0x2af   : > { %v2996_v45 = vpop.f32.mrf.mxu1  ;;  %v3356_v60 = vpop.f32.mrf.mxu0 }
 0x2b0   : > { %9520 = vst [vmem:[#allocation57_spill] sm:$0xff] %v8350_v27  ;;  %v8356_v4 = vadd.f32 %v3352_v38, %v3070_v31  ;;  %v3071_v59 = vadd.f32 %v2996_v45, %v8117_v33  ;;  %v5852_v38 = vld [vmem:[%s9151_s3 + $0x2] ss:$4 sm:$0x3]  ;;  %v8370_v33 = vrot.slane %v5851_v0, %v4191_v48  ;;  %v8372_v45 = vrot.slane %v4187_v1, %v4195_v56 }
 0x2b1   : > { %v2998_v46 = vpop.f32.mrf.mxu1  ;;  %v3358_v10 = vpop.f32.mrf.mxu0  ;;  %v4513_v31 = vunpack.c.l.bf16 %v6258_v16  ;;  %v8382_v37 = vrot.slane %v5852_v38, %v4191_v48  ;;  %v8384_v1 = vrot.slane %v5851_v0, %v4195_v56  ;;  %v6261_v16 = vld [vmem:[%s6446_s20 + $0x18] sm:$0xf]  ;;  %v8393_v3 = vrot.slane %v5852_v38, %v4195_v56 }
 0x2b2   : > { %9522 = vst [vmem:[#allocation7_spill] sm:$0xff] %v8356_v4  ;;  %v8362_v35 = vadd.f32 %v3356_v60, %v3071_v59  ;;  %v3072_v17 = vadd.f32 %v2998_v46, %v8120_v12  ;;  %v6259_v60 = vld [vmem:[%s6446_s20 + $0x14] sm:$0x1]  ;;  %v6260_v4 = vld [vmem:[%s6446_s20 + $0x10] sm:$0xf]  ;;  %v4516_v55 = vunpack.c.l.bf16 %v6261_v16 }
 0x2b3   : > { %v3000_v7 = vpop.f32.mrf.mxu1  ;;  %v3360_v19 = vpop.f32.mrf.mxu0  ;;  %v4515_v59 = vunpack.c.l.bf16 %v6259_v60  ;;  %v4514_v27 = vunpack.c.l.bf16 %v6260_v4  ;;  %v6262_v60 = vld [vmem:[%s6446_s20 + $0x20] sm:$0x1] }
 0x2b4   : > { %9523 = vst [vmem:[#allocation9_spill] sm:$0xff] %v8362_v35  ;;  %v8376_v12 = vadd.f32 %v3358_v10, %v3072_v17  ;;  %v3073_v46 = vadd.f32 %v3000_v7, %v8123_v52  ;;  %v8379_v35 = vstv %s4561_s24  ;;  %v4518_v24 = vunpack.c.l.bf16 %v6262_v60  ;;  %v6263_v17 = vld [vmem:[%s6446_s20 + $0x1c] sm:$0xf] }
 0x2b5   : > { %9525 = vst [vmem:[#allocation29_spill] sm:$0xff] %v8379_v35  ;;  %v3002_v39 = vpop.f32.mrf.mxu1  ;;  %v3362_v25 = vpop.f32.mrf.mxu0  ;;  %v4517_v7 = vunpack.c.l.bf16 %v6263_v17  ;;  %v8396_v0 = vmul.f32 %v8379_v35, %v4513_v31  ;;  %v8399_v16 = vmul.f32 %v8379_v35, %v4515_v59  ;;  %v8410_v31 = vmul.f32 %v8379_v35, %v4516_v55 }
 0x2b6   : > { %9524 = vst [vmem:[#allocation11_spill] sm:$0xff] %v8376_v12  ;;  %v8388_v10 = vadd.f32 %v3360_v19, %v3073_v46  ;;  %v3074_v52 = vadd.f32 %v3002_v39, %v8128_v22  ;;  %v6264_v12 = vld [vmem:[%s6446_s20 + $0x24] sm:$0xf]  ;;  %v6265_v19 = vld [vmem:[%s6446_s20 + $0x2c] sm:$0x1]  ;;  %v8406_v39 = vmul.f32 %v8379_v35, %v4514_v27  ;;  %v8413_v59 = vmul.f32 %v8379_v35, %v4518_v24 }
 0x2b7   : > { %v4519_v4 = vunpack.c.l.bf16 %v6264_v12  ;;  %v3006_v62 = vpop.f32.mrf.mxu1  ;;  %v3366_v48 = vpop.f32.mrf.mxu0  ;;  %v4521_v46 = vunpack.c.l.bf16 %v6265_v19  ;;  %v6266_v12 = vld [vmem:[%s6446_s20 + $0x28] sm:$0xf]  ;;  %v6268_v19 = vld [vmem:[%s6446_s20 + $0x38] sm:$0x1] }
 0x2b8   : > { %9526 = vst [vmem:[#allocation58_spill] sm:$0xff] %v8388_v10  ;;  %v8402_v60 = vadd.f32 %v3362_v25, %v3074_v52  ;;  %v3075_v22 = vadd.f32 %v3006_v62, %v8133_v9  ;;  %v4520_v17 = vunpack.c.l.bf16 %v6266_v12  ;;  %v6267_v25 = vld [vmem:[%s6446_s20 + $0x30] sm:$0xf]  ;;  %v4524_v9 = vunpack.c.l.bf16 %v6268_v19  ;;  %v6271_v19 = vld [vmem:[%s6446_s20 + $0x44] sm:$0x1] }
 0x2b9   : > { %v3008_v56 = vpop.f32.mrf.mxu1  ;;  %v3368_v38 = vpop.f32.mrf.mxu0  ;;  %v4522_v52 = vunpack.c.l.bf16 %v6267_v25  ;;  %v8421_v12 = vmul.f32 %v8379_v35, %v4517_v7  ;;  %v8427_v24 = vmul.f32 %v8379_v35, %v4521_v46  ;;  %v6269_v25 = vld [vmem:[%s6446_s20 + $0x34] sm:$0xf] }
 0x2ba   : > { %9527 = vst [vmem:[#allocation59_spill] sm:$0xff] %v8402_v60  ;;  %v8417_v62 = vadd.f32 %v3366_v48, %v3075_v22  ;;  %v3076_v27 = vadd.f32 %v3008_v56, %v8136_v58  ;;  %v8424_v60 = vmul.f32 %v8379_v35, %v4519_v4  ;;  %v4523_v30 = vunpack.c.l.bf16 %v6269_v25  ;;  %v6270_v48 = vld [vmem:[%s6446_s20 + $0x3c] sm:$0xf]  ;;  %v6272_v56 = vld [vmem:[%s6446_s20 + $0x40] sm:$0xf] }
 0x2bb   : > { %v3010_v55 = vpop.f32.mrf.mxu1  ;;  %v3370_v10 = vpop.f32.mrf.mxu0  ;;  %v4525_v22 = vunpack.c.l.bf16 %v6270_v48  ;;  %v8436_v4 = vmul.f32 %v8379_v35, %v4520_v17  ;;  %v4526_v46 = vunpack.c.l.bf16 %v6272_v56  ;;  %v8440_v25 = vmul.f32 %v8379_v35, %v4522_v52 }
 0x2bc   : > { %9528 = vst [vmem:[#allocation13_spill] sm:$0xff] %v8417_v62  ;;  %v4527_v62 = vunpack.c.l.bf16 %v6271_v19  ;;  %v8432_v58 = vadd.f32 %v3368_v38, %v3076_v27  ;;  %v3077_v7 = vadd.f32 %v3010_v55, %v8139_v44  ;;  %v8443_v48 = vmul.f32 %v8379_v35, %v4524_v9  ;;  %v6273_v19 = vld [vmem:[%s6446_s20 + $0x48] sm:$0xf]  ;;  %v6274_v27 = vld [vmem:[%s6446_s20 + $0x50] sm:$0x1] }
 0x2bd   : > { %v3012_v63 = vpop.f32.mrf.mxu1  ;;  %v3372_v42 = vpop.f32.mrf.mxu0  ;;  %v4528_v38 = vunpack.c.l.bf16 %v6273_v19  ;;  %v6275_v55 = vld [vmem:[%s6446_s20 + $0x4c] sm:$0xf]  ;;  %v8453_v9 = vmul.f32 %v8379_v35, %v4523_v30  ;;  %v8456_v19 = vmul.f32 %v8379_v35, %v4525_v22  ;;  %v8466_v20 = vmul.f32 %v8379_v35, %v4526_v46 }
 0x2be   : > { %9529 = vst [vmem:[#allocation37_spill] sm:$0xff] %v8432_v58  ;;  %v4530_v58 = vunpack.c.l.bf16 %v6274_v27  ;;  %v8447_v44 = vadd.f32 %v3370_v10, %v3077_v7  ;;  %v3078_v17 = vadd.f32 %v3012_v63, %v8144_v53  ;;  %v4529_v56 = vunpack.c.l.bf16 %v6275_v55  ;;  %v6277_v7 = vld [vmem:[%s6446_s20 + $0x5c] sm:$0x1]  ;;  %v6278_v55 = vld [vmem:[%s6446_s20 + $0x58] sm:$0xf] }
 0x2bf   : > { %v3598_v40 = vpop.f32.mrf.mxu1  ;;  %v3964_v52 = vpop.f32.mrf.mxu0  ;;  %v8459_v10 = vmul.f32 %v8379_v35, %v4527_v62  ;;  %v4533_v27 = vunpack.c.l.bf16 %v6277_v7  ;;  %v8470_v22 = vmul.f32 %v8379_v35, %v4528_v38  ;;  %v6280_v7 = vld [vmem:[%s6446_s20 + $0x68] sm:$0x1] }
 0x2c0   : > { %9530 = vst [vmem:[#allocation60_spill] sm:$0xff] %v8447_v44  ;;  %v8462_v53 = vadd.f32 %v3372_v42, %v3078_v17  ;;  %v3757_v63 = vadd.f32 %v3598_v40, %v8149_v6  ;;  %v4532_v44 = vunpack.c.l.bf16 %v6278_v55  ;;  %v8473_v62 = vmul.f32 %v8379_v35, %v4530_v58  ;;  %v6279_v42 = vld [vmem:[%s6446_s20 + $0x60] sm:$0xf] }
 0x2c1   : > { %v3600_v30 = vpop.f32.mrf.mxu1  ;;  %v3966_v15 = vpop.f32.mrf.mxu0  ;;  %v4534_v17 = vunpack.c.l.bf16 %v6279_v42  ;;  %v4536_v6 = vunpack.c.l.bf16 %v6280_v7  ;;  %v8479_v55 = vmul.f32 %v8379_v35, %v4529_v56  ;;  %v8485_v58 = vmul.f32 %v8379_v35, %v4533_v27 }
 0x2c2   : > { %9531 = vst [vmem:[#allocation61_spill] sm:$0xff] %v8462_v53  ;;  %9532 = vst [vmem:[#allocation31_spill] sm:$0xff] %v8473_v62  ;;  %v4123_v40 = vadd.f32 %v3964_v52, %v3757_v63  ;;  %v3758_v46 = vadd.f32 %v3600_v30, %v8152_v41  ;;  %v8482_v53 = vmul.f32 %v8379_v35, %v4531_v54  ;;  %v4535_v42 = vunpack.c.l.bf16 %v6281_v28  ;;  %v6282_v62 = vld [vmem:[%s6446_s20 + $0x6c] sm:$0xf]  ;;  %v6283_v52 = vld [vmem:[%s6446_s20 + $0x74] sm:$0x1] }
 0x2c3   : > { %9533 = vst [vmem:[#allocation62_spill] sm:$0xff] %v8479_v55  ;;  %v3602_v43 = vpop.f32.mrf.mxu1  ;;  %v3968_v38 = vpop.f32.mrf.mxu0  ;;  %9535 = vst [vmem:[#allocation17_spill] sm:$0xff] %v8485_v58  ;;  %v4537_v7 = vunpack.c.l.bf16 %v6282_v62  ;;  %v4539_v63 = vunpack.c.l.bf16 %v6283_v52  ;;  %v8493_v54 = vmul.f32 %v8379_v35, %v4532_v44  ;;  %v8496_v27 = vmul.f32 %v8379_v35, %v4534_v17  ;;  %v6284_v62 = vld [vmem:[%s6446_s20 + $0x70] sm:$0xf]  ;;  %v6285_v52 = vld [vmem:[%s6446_s20 + $0x78] sm:$0xf] }
 0x2c4   : > { %9534 = vst [vmem:[#allocation15_spill] sm:$0xff] %v8482_v53  ;;  %v4199_v41 = vmul.f32 %v8365_v26, %v4123_v40  ;;  %v4124_v56 = vadd.f32 %v3966_v15, %v3758_v46  ;;  %v3759_v30 = vadd.f32 %v3602_v43, %v8155_v50  ;;  %v8499_v28 = vmul.f32 %v8379_v35, %v4536_v6 }
 0x2c5   : > { %v3604_v53 = vpop.f32.mrf.mxu1  ;;  %v3970_v55 = vpop.f32.mrf.mxu0  ;;  %9536 = vst [vmem:[#allocation19_spill] sm:$0xff] %v8496_v27  ;;  %v4538_v58 = vunpack.c.l.bf16 %v6284_v62  ;;  %v4540_v47 = vunpack.c.l.bf16 %v6285_v52  ;;  %v8507_v17 = vmul.f32 %v8379_v35, %v4535_v42  ;;  %v8510_v6 = vmul.f32 %v8379_v35, %v4537_v7  ;;  %v6286_v52 = vld [vmem:[%s6446_s20 + $0x80] sm:$0x1] }
 0x2c6   : > { %9537 = vst [vmem:[#allocation77_spill] sm:$0xff] %v8499_v28  ;;  %v4276_v15 = vadd.f32 %v8370_v33, %v4199_v41  ;;  %v4200_v50 = vmul.f32 %v8372_v45, %v4124_v56  ;;  %v4125_v43 = vadd.f32 %v3968_v38, %v3759_v30  ;;  %v3760_v44 = vadd.f32 %v3604_v53, %v8160_v51  ;;  %v9541_v53 = vld [vmem:[#allocation40_spill] sm:$0xff] }
 0x2c7   : > { %v3608_v40 = vpop.f32.mrf.mxu1  ;;  %v3974_v46 = vpop.f32.mrf.mxu0  ;;  %9538 = vst [vmem:[#allocation5_spill] sm:$0xff] %v8507_v17  ;;  %9539 = vst [vmem:[#allocation63_spill] sm:$0xff] %v8510_v6  ;;  %v8513_v62 = vmul.f32 %v8379_v35, %v4539_v63  ;;  %v4542_v28 = vunpack.c.l.bf16 %v6286_v52  ;;  %v8520_v17 = vmul.f32 %v8379_v35, %v4538_v58  ;;  %v8523_v7 = vmul.f32 %v8379_v35, %v4540_v47  ;;  %v6287_v63 = vld [vmem:[%s6446_s20 + $0x7c] sm:$0xf] }
 0x2c8   : > { %vm4340_vm6 = vcmp.gt.f32.partialorder %v4276_v15, 0.5  ;;  %v4277_v41 = vadd.f32 %v8384_v1, %v4200_v50  ;;  %v4201_v38 = vmul.f32 %v8365_v26, %v4125_v43  ;;  %v4126_v51 = vadd.f32 %v3970_v55, %v3760_v44  ;;  %v9544_v43 = vld [vmem:[#allocation41_spill] sm:$0xff] }
 0x2c9   : > { %9540 = vst [vmem:[#allocation64_spill] sm:$0xff] %v8513_v62  ;;  %v3761_v56 = vadd.f32 %v3608_v40, %v9541_v53  ;;  %v3610_v30 = vpop.f32.mrf.mxu1  ;;  %v3976_v42 = vpop.f32.mrf.mxu0  ;;  %9542 = vst [vmem:[#allocation65_spill] sm:$0xff] %v8520_v17  ;;  %v4541_v62 = vunpack.c.l.bf16 %v6287_v63  ;;  %v4417_v44 = vsel %vm4340_vm6, %v8382_v37, 0.0  ;;  %v8533_v47 = vmul.f32 %v8379_v35, %v4542_v28 }
 0x2ca   : > { %9543 = vst [vmem:[#allocation33_spill] sm:$0xff] %v8523_v7  ;;  %vm4341_vm8 = vcmp.gt.f32.partialorder %v4277_v41, 0.5  ;;  %v4278_v52 = vadd.f32 %v8370_v33, %v4201_v38  ;;  %v4202_v50 = vmul.f32 %v8372_v45, %v4126_v51  ;;  %v3762_v55 = vadd.f32 %v3610_v30, %v9544_v43  ;;  %v9546_v30 = vld [vmem:[#allocation20_spill] sm:$0xff] }
 0x2cb   : > { %v4418_v40 = vsel %vm4341_vm8, %v8393_v3, 0.0  ;;  %v4127_v58 = vadd.f32 %v3974_v46, %v3761_v56  ;;  %v3612_v53 = vpop.f32.mrf.mxu1  ;;  %v3978_v17 = vpop.f32.mrf.mxu0  ;;  %9545 = vst [vmem:[#allocation66_spill] sm:$0xff] %v8533_v47  ;;  %v8539_v6 = vmul.f32 %v8379_v35, %v4541_v62  ;;  %v6288_v46 = vld [vmem:[%s6446_s20 + $0x84] sm:$0xf] }
 0x2cc   : > { %v4481_v63 = vadd.f32 %v4418_v40, %v4417_v44  ;;  %vm4342_vm9 = vcmp.gt.f32.partialorder %v4278_v52, 0.5  ;;  %v4279_v41 = vadd.f32 %v8384_v1, %v4202_v50  ;;  %v4128_v38 = vadd.f32 %v3976_v42, %v3762_v55  ;;  %v9548_v44 = vld [vmem:[#allocation8_spill] sm:$0xff] }
 0x2cd   : > { %v4203_v51 = vmul.f32 %v8365_v26, %v4127_v58  ;;  %v3763_v43 = vadd.f32 %v3612_v53, %v9546_v30  ;;  %v3614_v15 = vpop.f32.mrf.mxu1  ;;  %v3980_v7 = vpop.f32.mrf.mxu0  ;;  %9547 = vst [vmem:[#allocation67_spill] sm:$0xff] %v8539_v6  ;;  %v4543_v56 = vunpack.c.l.bf16 %v6288_v46  ;;  %v4419_v50 = vsel %vm4342_vm9, %v8382_v37, 0.0 }
 0x2ce   : > { %v4644_v27 = vrot.slane %v4481_v63, 7  ;;  %vm4343_vm10 = vcmp.gt.f32.partialorder %v4279_v41, 0.5  ;;  %v4204_v28 = vmul.f32 %v8372_v45, %v4128_v38  ;;  %v3764_v52 = vadd.f32 %v3614_v15, %v9548_v44 }
 0x2cf   : > { %v4420_v42 = vsel %vm4343_vm10, %v8393_v3, 0.0  ;;  %v4280_v55 = vadd.f32 %v8370_v33, %v4203_v51  ;;  %v4129_v40 = vadd.f32 %v3978_v17, %v3763_v43  ;;  %v3618_v58 = vpop.f32.mrf.mxu1  ;;  %v3984_v53 = vpop.f32.mrf.mxu0  ;;  %v8552_v6 = vmul.f32 %v8379_v35, %v4543_v56 }
 0x2d0   : > { %v4740_v62 = vadd.f32 %v4644_v27, %v8396_v0  ;;  %v4482_v30 = vadd.f32 %v4420_v42, %v4419_v50  ;;  %v4281_v46 = vadd.f32 %v8384_v1, %v4204_v28  ;;  %v4130_v63 = vadd.f32 %v3980_v7, %v3764_v52 }
 0x2d1   : > { %vm4344_vm11 = vcmp.gt.f32.partialorder %v4280_v55, 0.5  ;;  %v4205_v41 = vmul.f32 %v8365_v26, %v4129_v40  ;;  %v3765_v38 = vadd.f32 %v3618_v58, %v8181_v57  ;;  %v3620_v15 = vpop.f32.mrf.mxu1  ;;  %v3986_v44 = vpop.f32.mrf.mxu0  ;;  %9549 = vst [vmem:[#allocation68_spill] sm:$0xff] %v8552_v6 }
 0x2d2   : > { %v5904_v51 = vpack.c.bf16 %v4740_v62, %v4740_v62  ;;  %v4645_v17 = vrot.slane %v4482_v30, 7  ;;  %v4421_v43 = vsel %vm4344_vm11, %v8382_v37, 0.0  ;;  %vm4345_vm12 = vcmp.gt.f32.partialorder %v4281_v46, 0.5 }
 0x2d3   : > { %v4422_v0 = vsel %vm4345_vm12, %v8393_v3, 0.0  ;;  %v4282_v28 = vadd.f32 %v8370_v33, %v4205_v41  ;;  %v4206_v7 = vmul.f32 %v8372_v45, %v4130_v63  ;;  %v4131_v52 = vadd.f32 %v3984_v53, %v3765_v38  ;;  %v3622_v50 = vpop.f32.mrf.mxu1  ;;  %v8558_v42 = vpop.f32.mrf.mxu0 }
 0x2d4   : > { %v4949_v57 = vshrl.u32 %v5904_v51, 16  ;;  %v4952_v55 = vshll.u32 %v5904_v51, 16  ;;  %v4646_v56 = vsel %vm4643_vm7, %v4644_v27, %v4645_v17  ;;  %v4742_v40 = vadd.f32 %v4645_v17, %v8399_v16 }
 0x2d5   : > { %v4741_v58 = vadd.f32 %v4646_v56, %v8406_v39  ;;  %v4483_v62 = vadd.f32 %v4422_v0, %v4421_v43  ;;  %vm4346_vm13 = vcmp.gt.f32.partialorder %v4282_v28, 0.5  ;;  %v4283_v30 = vadd.f32 %v8384_v1, %v4206_v7  ;;  %v3624_v46 = vpop.f32.mrf.mxu1  ;;  %v3990_v41 = vpop.f32.mrf.mxu0 }
 0x2d6   : > { %v4951_v63 = vrot.slane %v4949_v57, 4  ;;  %v4954_v53 = vrot.slane %v4952_v55, 5  ;;  %v5906_v38 = vpack.c.bf16 %v4742_v40, %v4742_v40  ;;  %v4423_v35 = vsel %vm4346_vm13, %v8382_v37, 0.0 }
 0x2d7   : > { %v5905_v6 = vpack.c.bf16 %v4741_v58, %v4741_v58  ;;  %v4647_v51 = vrot.slane %v4483_v62, 7  ;;  %vm4347_vm14 = vcmp.gt.f32.partialorder %v4283_v30, 0.5  ;;  %v4207_v27 = vmul.f32 %v8365_v26, %v4131_v52  ;;  %v8566_v16 = vpop.f32.mrf.mxu1  ;;  %v8568_v39 = vpop.f32.mrf.mxu0 }
 0x2d8   : > { %v4955_v17 = vor.u32 %v4954_v53, %v4951_v63  ;;  %v4968_v43 = vshll.u32 %v5906_v38, 16  ;;  %v4424_v0 = vsel %vm4347_vm14, %v8393_v3, 0.0  ;;  %v3766_v28 = vadd.f32 %v3620_v15, %v8184_v34 }
 0x2d9   : > { %v4958_v7 = vshll.u32 %v5905_v6, 16  ;;  %v4962_v57 = vshrl.u32 %v5905_v6, 16  ;;  %v4743_v55 = vadd.f32 %v4647_v51, %v8410_v31  ;;  %v4484_v56 = vadd.f32 %v4424_v0, %v4423_v35  ;;  %v3630_v40 = vpop.f32.mrf.mxu1  ;;  %v8574_v58 = vpop.f32.mrf.mxu0 }
 0x2da   : > { %v4956_v52 = vrot.slane %v4955_v17, 4  ;;  %v4970_v62 = vrot.slane %v4968_v43, 5  ;;  %v4284_v30 = vadd.f32 %v8370_v33, %v4207_v27  ;;  %v4132_v47 = vadd.f32 %v3986_v44, %v3766_v28 }
 0x2db   : > { %v4960_v63 = vrot.slane %v4958_v7, 5  ;;  %v4964_v34 = vrot.slane %v4962_v57, 4  ;;  %v5907_v6 = vpack.c.bf16 %v4743_v55, %v4743_v55  ;;  %v4648_v15 = vrot.slane %v4484_v56, 7  ;;  %v3632_v31 = vpop.f32.mrf.mxu1  ;;  %v8582_v35 = vpop.f32.mrf.mxu0 }
 0x2dc   : > { %vm4348_vm15 = vcmp.gt.f32.partialorder %v4284_v30, 0.5  ;;  %v4208_v53 = vmul.f32 %v8372_v45, %v4132_v47  ;;  %v3767_v38 = vadd.f32 %v3622_v50, %v8187_v14  ;;  %v3768_v44 = vadd.f32 %v3624_v46, %v8192_v61 }
 0x2dd   : > { %v4961_v27 = vsel %vm6482_vm2, %v4956_v52, %v4960_v63  ;;  %v4965_v17 = vor.u32 %v4964_v34, %v4960_v63  ;;  %v4973_v43 = vshrl.u32 %v5907_v6, 16  ;;  %v4976_v0 = vshll.u32 %v5907_v6, 16  ;;  %v3634_v28 = vpop.f32.mrf.mxu1  ;;  %v8589_v7 = vpop.f32.mrf.mxu0 }
 0x2de   : > { %5364 = vst [vmem:[%s8580_s7] sm:$0xf] %v4961_v27  ;;  %v4649_v57 = vsel %vm4643_vm7, %v4647_v51, %v4648_v15  ;;  %v4745_v55 = vadd.f32 %v4648_v15, %v8413_v59  ;;  %v4425_v47 = vsel %vm4348_vm15, %v8382_v37, 0.0  ;;  %v4285_v14 = vadd.f32 %v8384_v1, %v4208_v53 }
 0x2df   : > { %v4966_v50 = vrot.slane %v4965_v17, 4  ;;  %v4975_v61 = vrot.slane %v4973_v43, 4  ;;  %v4978_v46 = vrot.slane %v4976_v0, 5  ;;  %v4744_v56 = vadd.f32 %v4649_v57, %v8421_v12  ;;  %v3638_v52 = vpop.f32.mrf.mxu1  ;;  %v8597_v30 = vpop.f32.mrf.mxu0 }
 0x2e0   : > { %v5909_v63 = vpack.c.bf16 %v4745_v55, %v4745_v55  ;;  %vm4349_vm0 = vcmp.gt.f32.partialorder %v4285_v14, 0.5  ;;  %v4133_v34 = vadd.f32 %v8558_v42, %v3767_v38  ;;  %v4134_v51 = vadd.f32 %v3990_v41, %v3768_v44 }
 0x2e1   : > { %v4971_v59 = vsel %vm6482_vm2, %v4966_v50, %v4970_v62  ;;  %v4979_v6 = vor.u32 %v4978_v46, %v4975_v61  ;;  %v5908_v15 = vpack.c.bf16 %v4744_v56, %v4744_v56  ;;  %v4426_v53 = vsel %vm4349_vm0, %v8393_v3, 0.0  ;;  %v8603_v27 = vpop.f32.mrf.mxu1  ;;  %v8605_v17 = vpop.f32.mrf.mxu0 }
 0x2e2   : > { %5365 = vst [vmem:[%s8580_s7 + $0x4] sm:$0xf] %v4971_v59  ;;  %v4992_v12 = vshll.u32 %v5909_v63, 16  ;;  %v4485_v43 = vadd.f32 %v4426_v53, %v4425_v47  ;;  %v4209_v0 = vmul.f32 %v8365_v26, %v4133_v34  ;;  %v4210_v57 = vmul.f32 %v8372_v45, %v4134_v51  ;;  %v9550_v34 = vld [vmem:[#allocation10_spill] sm:$0xff] }
 0x2e3   : > { %v4980_v42 = vrot.slane %v4979_v6, 4  ;;  %v4982_v41 = vshll.u32 %v5908_v15, 16  ;;  %v4986_v38 = vshrl.u32 %v5908_v15, 16  ;;  %v3769_v62 = vadd.f32 %v8566_v16, %v8197_v18  ;;  %v8612_v44 = vpop.f32.mrf.mxu1  ;;  %v8614_v55 = vpop.f32.mrf.mxu0  ;;  %v9551_v6 = vld [vmem:[#allocation21_spill] sm:$0xff] }
 0x2e4   : > { %v4994_v14 = vrot.slane %v4992_v12, 5  ;;  %v4650_v50 = vrot.slane %v4485_v43, 7  ;;  %v4286_v61 = vadd.f32 %v8370_v33, %v4209_v0  ;;  %v4287_v47 = vadd.f32 %v8384_v1, %v4210_v57 }
 0x2e5   : > { %v4984_v46 = vrot.slane %v4982_v41, 5  ;;  %v4988_v56 = vrot.slane %v4986_v38, 4  ;;  %v4135_v63 = vadd.f32 %v8568_v39, %v3769_v62  ;;  %v3770_v51 = vadd.f32 %v3630_v40, %v9550_v34  ;;  %v8620_v59 = vpop.f32.mrf.mxu1  ;;  %v8622_v18 = vpop.f32.mrf.mxu0  ;;  %v9552_v62 = vld [vmem:[#allocation42_spill] sm:$0xff] }
 0x2e6   : > { %v4746_v16 = vadd.f32 %v4650_v50, %v8424_v60  ;;  %vm4350_vm1 = vcmp.gt.f32.partialorder %v4286_v61, 0.5  ;;  %vm4351_vm3 = vcmp.gt.f32.partialorder %v4287_v47, 0.5  ;;  %v3771_v15 = vadd.f32 %v3632_v31, %v9551_v6  ;;  %v9553_v47 = vld [vmem:[#allocation12_spill] sm:$0xff] }
 0x2e7   : > { %v4985_v53 = vsel %vm6482_vm2, %v4980_v42, %v4984_v46  ;;  %v4989_v12 = vor.u32 %v4988_v56, %v4984_v46  ;;  %v4427_v43 = vsel %vm4350_vm1, %v8382_v37, 0.0  ;;  %v4428_v39 = vsel %vm4351_vm3, %v8393_v3, 0.0  ;;  %v8630_v0 = vpop.f32.mrf.mxu1  ;;  %v8632_v40 = vpop.f32.mrf.mxu0 }
 0x2e8   : > { %5366 = vst [vmem:[%s8580_s7 + $0x8] sm:$0xf] %v4985_v53  ;;  %v5910_v57 = vpack.c.bf16 %v4746_v16, %v4746_v16  ;;  %v4486_v41 = vadd.f32 %v4428_v39, %v4427_v43  ;;  %v4211_v60 = vmul.f32 %v8365_v26, %v4135_v63  ;;  %v4136_v38 = vadd.f32 %v8574_v58, %v3770_v51 }
 0x2e9   : > { %v4990_v31 = vrot.slane %v4989_v12, 4  ;;  %v4137_v42 = vadd.f32 %v8582_v35, %v3771_v15  ;;  %v3772_v61 = vadd.f32 %v3634_v28, %v9552_v62  ;;  %v3773_v46 = vadd.f32 %v3638_v52, %v9553_v47  ;;  %v8640_v56 = vpop.f32.mrf.mxu1  ;;  %v8642_v34 = vpop.f32.mrf.mxu0 }
 0x2ea   : > { %v4997_v6 = vshrl.u32 %v5910_v57, 16  ;;  %v5000_v53 = vshll.u32 %v5910_v57, 16  ;;  %v4651_v16 = vrot.slane %v4486_v41, 7  ;;  %v4288_v43 = vadd.f32 %v8370_v33, %v4211_v60 }
 0x2eb   : > { %v4995_v58 = vsel %vm6482_vm2, %v4990_v31, %v4994_v14  ;;  %v4212_v63 = vmul.f32 %v8372_v45, %v4136_v38  ;;  %v4213_v35 = vmul.f32 %v8365_v26, %v4137_v42  ;;  %v4138_v28 = vadd.f32 %v8589_v7, %v3772_v61  ;;  %v8650_v51 = vpop.f32.mrf.mxu1  ;;  %v8652_v52 = vpop.f32.mrf.mxu0 }
 0x2ec   : > { %5367 = vst [vmem:[%s8580_s7 + $0xc] sm:$0xf] %v4995_v58  ;;  %v4999_v15 = vrot.slane %v4997_v6, 4  ;;  %v5002_v12 = vrot.slane %v5000_v53, 5  ;;  %v4652_v39 = vsel %vm4643_vm7, %v4650_v50, %v4651_v16  ;;  %v4748_v57 = vadd.f32 %v4651_v16, %v8427_v24 }
 0x2ed   : > { %v4747_v41 = vadd.f32 %v4652_v39, %v8436_v4  ;;  %vm4352_vm4 = vcmp.gt.f32.partialorder %v4288_v43, 0.5  ;;  %v4289_v14 = vadd.f32 %v8384_v1, %v4212_v63  ;;  %v4290_v60 = vadd.f32 %v8370_v33, %v4213_v35  ;;  %v8660_v38 = vpop.f32.mrf.mxu1  ;;  %v8662_v7 = vpop.f32.mrf.mxu0 }
 0x2ee   : > { %v5003_v31 = vor.u32 %v5002_v12, %v4999_v15  ;;  %v5912_v42 = vpack.c.bf16 %v4748_v57, %v4748_v57  ;;  %v4429_v62 = vsel %vm4352_vm4, %v8382_v37, 0.0  ;;  %v4214_v61 = vmul.f32 %v8372_v45, %v4138_v28 }
 0x2ef   : > { %v5911_v50 = vpack.c.bf16 %v4747_v41, %v4747_v41  ;;  %vm4353_vm5 = vcmp.gt.f32.partialorder %v4289_v14, 0.5  ;;  %vm4354_vm6 = vcmp.gt.f32.partialorder %v4290_v60, 0.5  ;;  %v4139_v24 = vadd.f32 %v8597_v30, %v3773_v46  ;;  %v8667_v4 = vpop.f32.mrf.mxu1  ;;  %v8672_v15 = vpop.f32.mrf.mxu0 }
 0x2f0   : > { %v5004_v47 = vrot.slane %v5003_v31, 4  ;;  %v5016_v6 = vshll.u32 %v5912_v42, 16  ;;  %v4430_v53 = vsel %vm4353_vm5, %v8393_v3, 0.0  ;;  %v4431_v16 = vsel %vm4354_vm6, %v8382_v37, 0.0 }
 0x2f1   : > { %v5006_v43 = vshll.u32 %v5911_v50, 16  ;;  %v5010_v58 = vshrl.u32 %v5911_v50, 16  ;;  %v4487_v63 = vadd.f32 %v4430_v53, %v4429_v62  ;;  %v4291_v35 = vadd.f32 %v8384_v1, %v4214_v61  ;;  %v8674_v28 = vpop.f32.mrf.mxu1  ;;  %v8690_v50 = vpop.f32.mrf.mxu0 }
 0x2f2   : > { %v5018_v12 = vrot.slane %v5016_v6, 5  ;;  %v4215_v30 = vmul.f32 %v8365_v26, %v4139_v24  ;;  %v3774_v46 = vadd.f32 %v8603_v27, %v8220_v49  ;;  %v3775_v39 = vadd.f32 %v8612_v44, %v8224_v8 }
 0x2f3   : > { %v5008_v57 = vrot.slane %v5006_v43, 5  ;;  %v5012_v41 = vrot.slane %v5010_v58, 4  ;;  %v4653_v14 = vrot.slane %v4487_v63, 7  ;;  %vm4355_vm8 = vcmp.gt.f32.partialorder %v4291_v35, 0.5  ;;  %v8685_v61 = vpop.f32.mrf.mxu1 }
 0x2f4   : > { %v4432_v60 = vsel %vm4355_vm8, %v8393_v3, 0.0  ;;  %v4292_v31 = vadd.f32 %v8370_v33, %v4215_v30  ;;  %v4140_v42 = vadd.f32 %v8605_v17, %v3774_v46  ;;  %v4141_v62 = vadd.f32 %v8614_v55, %v3775_v39  ;;  %v8708_v39 = vpop.f32.mrf.mxu0 }
 0x2f5   : > { %v5009_v49 = vsel %vm6482_vm2, %v5004_v47, %v5008_v57  ;;  %v5013_v27 = vor.u32 %v5012_v41, %v5008_v57  ;;  %v4749_v8 = vadd.f32 %v4653_v14, %v8440_v25  ;;  %v4488_v44 = vadd.f32 %v4432_v60, %v4431_v16  ;;  %v8703_v35 = vpop.f32.mrf.mxu1 }
 0x2f6   : > { %5368 = vst [vmem:[%s8580_s7 + $0x10] sm:$0xf] %v5009_v49  ;;  %vm4356_vm9 = vcmp.gt.f32.partialorder %v4292_v31, 0.5  ;;  %v4216_v24 = vmul.f32 %v8372_v45, %v4140_v42  ;;  %v4217_v6 = vmul.f32 %v8365_v26, %v4141_v62  ;;  %v3776_v17 = vadd.f32 %v8620_v59, %v8229_v21 }
 0x2f7   : > { %v5014_v55 = vrot.slane %v5013_v27, 4  ;;  %v5913_v53 = vpack.c.bf16 %v4749_v8, %v4749_v8  ;;  %v4654_v43 = vrot.slane %v4488_v44, 7  ;;  %v4433_v47 = vsel %vm4356_vm9, %v8382_v37, 0.0  ;;  %v8716_v62 = vpop.f32.mrf.mxu1  ;;  %v8723_v8 = vpop.f32.mrf.mxu0 }
 0x2f8   : > { %v4293_v25 = vadd.f32 %v8384_v1, %v4216_v24  ;;  %v4294_v16 = vadd.f32 %v8370_v33, %v4217_v6  ;;  %v4142_v58 = vadd.f32 %v8622_v18, %v3776_v17  ;;  %v3777_v63 = vadd.f32 %v8630_v0, %v8235_v29 }
 0x2f9   : > { %v5019_v30 = vsel %vm6482_vm2, %v5014_v55, %v5018_v12  ;;  %v5021_v21 = vshrl.u32 %v5913_v53, 16  ;;  %v5024_v59 = vshll.u32 %v5913_v53, 16  ;;  %v4655_v46 = vsel %vm4643_vm7, %v4653_v14, %v4654_v43 }
 0x2fa   : > { %5369 = vst [vmem:[%s8580_s7 + $0x14] sm:$0xf] %v5019_v30  ;;  %v4750_v57 = vadd.f32 %v4655_v46, %v8453_v9  ;;  %v4751_v41 = vadd.f32 %v4654_v43, %v8443_v48  ;;  %vm4357_vm10 = vcmp.gt.f32.partialorder %v4293_v25, 0.5  ;;  %vm4358_vm11 = vcmp.gt.f32.partialorder %v4294_v16, 0.5 }
 0x2fb   : > { %v5023_v18 = vrot.slane %v5021_v21, 4  ;;  %v5026_v29 = vrot.slane %v5024_v59, 5  ;;  %v4434_v0 = vsel %vm4357_vm10, %v8393_v3, 0.0  ;;  %v4435_v60 = vsel %vm4358_vm11, %v8382_v37, 0.0 }
 0x2fc   : > { %v5914_v12 = vpack.c.bf16 %v4750_v57, %v4750_v57  ;;  %v5915_v31 = vpack.c.bf16 %v4751_v41, %v4751_v41  ;;  %v4489_v42 = vadd.f32 %v4434_v0, %v4433_v47  ;;  %v4218_v14 = vmul.f32 %v8372_v45, %v4142_v58 }
 0x2fd   : > { %v5027_v49 = vor.u32 %v5026_v29, %v5023_v18  ;;  %v4143_v9 = vadd.f32 %v8632_v40, %v3777_v63  ;;  %v3778_v48 = vadd.f32 %v8640_v56, %v8239_v2  ;;  %v3779_v27 = vadd.f32 %v8650_v51, %v8242_v23  ;;  %v8729_v23 = vpop.f32.mrf.mxu1  ;;  %v8734_v63 = vpop.f32.mrf.mxu0 }
 0x2fe   : > { %v5030_v44 = vshll.u32 %v5914_v12, 16  ;;  %v5034_v24 = vshrl.u32 %v5914_v12, 16  ;;  %v5040_v6 = vshll.u32 %v5915_v31, 16  ;;  %v4656_v17 = vrot.slane %v4489_v42, 7 }
 0x2ff   : > { %v5028_v55 = vrot.slane %v5027_v49, 4  ;;  %v4295_v53 = vadd.f32 %v8384_v1, %v4218_v14  ;;  %v4219_v43 = vmul.f32 %v8365_v26, %v4143_v9  ;;  %v4144_v40 = vadd.f32 %v8642_v34, %v3778_v48  ;;  %v8743_v0 = vpop.f32.mrf.mxu1  ;;  %v8748_v42 = vpop.f32.mrf.mxu0 }
 0x300   : > { %v5032_v47 = vrot.slane %v5030_v44, 5  ;;  %v5036_v25 = vrot.slane %v5034_v24, 4  ;;  %v5042_v2 = vrot.slane %v5040_v6, 5  ;;  %v4752_v56 = vadd.f32 %v4656_v17, %v8456_v19 }
 0x301   : > { %vm4359_vm12 = vcmp.gt.f32.partialorder %v4295_v53, 0.5  ;;  %v4296_v51 = vadd.f32 %v8370_v33, %v4219_v43  ;;  %v4220_v16 = vmul.f32 %v8372_v45, %v4144_v40  ;;  %v4145_v58 = vadd.f32 %v8652_v52, %v3779_v27  ;;  %v8759_v53 = vpop.f32.mrf.mxu1 }
 0x302   : > { %v5033_v30 = vsel %vm6482_vm2, %v5028_v55, %v5032_v47  ;;  %v5037_v34 = vor.u32 %v5036_v25, %v5032_v47  ;;  %v5916_v21 = vpack.c.bf16 %v4752_v56, %v4752_v56  ;;  %v4436_v59 = vsel %vm4359_vm12, %v8393_v3, 0.0 }
 0x303   : > { %5370 = vst [vmem:[%s8580_s7 + $0x18] sm:$0xf] %v5033_v30  ;;  %v4490_v19 = vadd.f32 %v4436_v59, %v4435_v60  ;;  %vm4360_vm13 = vcmp.gt.f32.partialorder %v4296_v51, 0.5  ;;  %v4297_v46 = vadd.f32 %v8384_v1, %v4220_v16  ;;  %v4221_v57 = vmul.f32 %v8365_v26, %v4145_v58  ;;  %v8775_v30 = vpop.f32.mrf.mxu1 }
 0x304   : > { %v5038_v41 = vrot.slane %v5037_v34, 4  ;;  %v5045_v18 = vshrl.u32 %v5916_v21, 16  ;;  %v5048_v52 = vshll.u32 %v5916_v21, 16  ;;  %v4437_v29 = vsel %vm4360_vm13, %v8382_v37, 0.0 }
 0x305   : > { %v4657_v12 = vrot.slane %v4490_v19, 7  ;;  %vm4361_vm14 = vcmp.gt.f32.partialorder %v4297_v46, 0.5  ;;  %v4298_v31 = vadd.f32 %v8370_v33, %v4221_v57  ;;  %v3780_v60 = vadd.f32 %v8660_v38, %v8253_v11 }
 0x306   : > { %v5043_v14 = vsel %vm6482_vm2, %v5038_v41, %v5042_v2  ;;  %v5047_v49 = vrot.slane %v5045_v18, 4  ;;  %v5050_v9 = vrot.slane %v5048_v52, 5  ;;  %v4438_v48 = vsel %vm4361_vm14, %v8393_v3, 0.0 }
 0x307   : > { %5371 = vst [vmem:[%s8580_s7 + $0x1c] sm:$0xf] %v5043_v14  ;;  %v4658_v27 = vsel %vm4643_vm7, %v4656_v17, %v4657_v12  ;;  %v4754_v44 = vadd.f32 %v4657_v12, %v8459_v10  ;;  %v4491_v24 = vadd.f32 %v4438_v48, %v4437_v29  ;;  %vm4362_vm15 = vcmp.gt.f32.partialorder %v4298_v31, 0.5  ;;  %v8765_v10 = vpop.f32.mrf.mxu0  ;;  %v8787_v12 = vpop.f32.mrf.mxu1 }
 0x308   : > { %v5051_v6 = vor.u32 %v5050_v9, %v5047_v49  ;;  %v4753_v55 = vadd.f32 %v4658_v27, %v8466_v20  ;;  %v4439_v11 = vsel %vm4362_vm15, %v8382_v37, 0.0  ;;  %v4146_v38 = vadd.f32 %v8662_v7, %v3780_v60 }
 0x309   : > { %v5918_v43 = vpack.c.bf16 %v4754_v44, %v4754_v44  ;;  %v4659_v40 = vrot.slane %v4491_v24, 7  ;;  %v3781_v47 = vadd.f32 %v8667_v4, %v8260_v13  ;;  %v3782_v17 = vadd.f32 %v8674_v28, %v8263_v32 }
 0x30a   : > { %v5052_v25 = vrot.slane %v5051_v6, 4  ;;  %v5917_v2 = vpack.c.bf16 %v4753_v55, %v4753_v55  ;;  %v4222_v20 = vmul.f32 %v8372_v45, %v4146_v38  ;;  %v3783_v56 = vadd.f32 %v8685_v61, %v8266_v5  ;;  %v9554_v6 = vld [vmem:[#allocation24_spill] sm:$0xff] }
 0x30b   : > { %v5064_v7 = vshll.u32 %v5918_v43, 16  ;;  %v4755_v51 = vadd.f32 %v4659_v40, %v8470_v22  ;;  %v4147_v16 = vadd.f32 %v8672_v15, %v3781_v47  ;;  %v4148_v58 = vadd.f32 %v8690_v50, %v3782_v17  ;;  %v8779_v22 = vpop.f32.mrf.mxu0  ;;  %v9555_v43 = vld [vmem:[#allocation31_spill] sm:$0xff] }
 0x30c   : > { %v5054_v13 = vshll.u32 %v5917_v2, 16  ;;  %v5058_v4 = vshrl.u32 %v5917_v2, 16  ;;  %v4299_v32 = vadd.f32 %v8384_v1, %v4222_v20  ;;  %v4149_v28 = vadd.f32 %v8708_v39, %v3783_v56  ;;  %v9556_v20 = vld [vmem:[#allocation62_spill] sm:$0xff] }
 0x30d   : > { %v5066_v34 = vrot.slane %v5064_v7, 5  ;;  %v5919_v21 = vpack.c.bf16 %v4755_v51, %v4755_v51  ;;  %v4223_v59 = vmul.f32 %v8365_v26, %v4147_v16  ;;  %v4224_v5 = vmul.f32 %v8372_v45, %v4148_v58  ;;  %v8791_v49 = vpop.f32.mrf.mxu0 }
 0x30e   : > { %v5056_v15 = vrot.slane %v5054_v13, 5  ;;  %v5060_v61 = vrot.slane %v5058_v4, 4  ;;  %vm4363_vm0 = vcmp.gt.f32.partialorder %v4299_v32, 0.5  ;;  %v4225_v50 = vmul.f32 %v8365_v26, %v4149_v28  ;;  %v9557_v13 = vld [vmem:[#allocation43_spill] sm:$0xff]  ;;  %v9558_v4 = vld [vmem:[#allocation44_spill] sm:$0xff] }
 0x30f   : > { %v5069_v19 = vshrl.u32 %v5919_v21, 16  ;;  %v5072_v46 = vshll.u32 %v5919_v21, 16  ;;  %v4440_v39 = vsel %vm4363_vm0, %v8393_v3, 0.0  ;;  %v4300_v57 = vadd.f32 %v8370_v33, %v4223_v59  ;;  %v8807_v16 = vpop.f32.mrf.mxu0  ;;  %v9559_v21 = vld [vmem:[#allocation45_spill] sm:$0xff] }
 0x310   : > { %v5057_v41 = vsel %vm6482_vm2, %v5052_v25, %v5056_v15  ;;  %v5061_v18 = vor.u32 %v5060_v61, %v5056_v15  ;;  %v4492_v52 = vadd.f32 %v4440_v39, %v4439_v11  ;;  %v4301_v29 = vadd.f32 %v8384_v1, %v4224_v5  ;;  %v8801_v25 = vpop.f32.mrf.mxu1  ;;  %v9560_v5 = vld [vmem:[#allocation22_spill] sm:$0xff]  ;;  %v9561_v61 = vld [vmem:[#allocation15_spill] sm:$0xff] }
 0x311   : > { %5372 = vst [vmem:[%s8580_s7 + $0x20] sm:$0xf] %v5057_v41  ;;  %v5071_v31 = vrot.slane %v5069_v19, 4  ;;  %v5074_v60 = vrot.slane %v5072_v46, 5  ;;  %vm4364_vm1 = vcmp.gt.f32.partialorder %v4300_v57, 0.5  ;;  %v4302_v14 = vadd.f32 %v8370_v33, %v4225_v50 }
 0x312   : > { %v5062_v9 = vrot.slane %v5061_v18, 4  ;;  %v4660_v48 = vrot.slane %v4492_v52, 7  ;;  %v4441_v27 = vsel %vm4364_vm1, %v8382_v37, 0.0  ;;  %vm4365_vm3 = vcmp.gt.f32.partialorder %v4301_v29, 0.5  ;;  %v4048_v18 = vpop.f32.mrf.mxu0 }
 0x313   : > { %v5075_v44 = vor.u32 %v5074_v60, %v5071_v31  ;;  %v4442_v24 = vsel %vm4365_vm3, %v8393_v3, 0.0  ;;  %vm4366_vm4 = vcmp.gt.f32.partialorder %v4302_v14, 0.5  ;;  %v3784_v55 = vadd.f32 %v8703_v35, %v9554_v6 }
 0x314   : > { %v5067_v11 = vsel %vm6482_vm2, %v5062_v9, %v5066_v34  ;;  %v4661_v38 = vsel %vm4643_vm7, %v4659_v40, %v4660_v48  ;;  %v4757_v47 = vadd.f32 %v4660_v48, %v9555_v43  ;;  %v4493_v17 = vadd.f32 %v4442_v24, %v4441_v27 }
 0x315   : > { %5373 = vst [vmem:[%s8580_s7 + $0x24] sm:$0xf] %v5067_v11  ;;  %v5076_v2 = vrot.slane %v5075_v44, 4  ;;  %v4756_v56 = vadd.f32 %v4661_v38, %v9556_v20  ;;  %v4443_v7 = vsel %vm4366_vm4, %v8382_v37, 0.0  ;;  %v4150_v51 = vadd.f32 %v8723_v8, %v3784_v55  ;;  %v8833_v55 = vpop.f32.mrf.mxu0 }
 0x316   : > { %v5921_v35 = vpack.c.bf16 %v4757_v47, %v4757_v47  ;;  %v4662_v58 = vrot.slane %v4493_v17, 7  ;;  %v3785_v40 = vadd.f32 %v8716_v62, %v9557_v13  ;;  %v3786_v32 = vadd.f32 %v8729_v23, %v9558_v4  ;;  %v3684_v62 = vpop.f32.mrf.mxu1 }
 0x317   : > { %v5920_v28 = vpack.c.bf16 %v4756_v56, %v4756_v56  ;;  %v4226_v34 = vmul.f32 %v8372_v45, %v4150_v51  ;;  %v3787_v59 = vadd.f32 %v8743_v0, %v9559_v21  ;;  %v3788_v15 = vadd.f32 %v8759_v53, %v9560_v5 }
 0x318   : > { %v5088_v8 = vshll.u32 %v5921_v35, 16  ;;  %v4758_v50 = vadd.f32 %v4662_v58, %v9561_v61  ;;  %v4151_v19 = vadd.f32 %v8734_v63, %v3785_v40  ;;  %v4152_v46 = vadd.f32 %v8748_v42, %v3786_v32  ;;  %v9562_v40 = vld [vmem:[#allocation17_spill] sm:$0xff] }
 0x319   : > { %v5078_v39 = vshll.u32 %v5920_v28, 16  ;;  %v5082_v57 = vshrl.u32 %v5920_v28, 16  ;;  %v4303_v23 = vadd.f32 %v8384_v1, %v4226_v34  ;;  %v4153_v41 = vadd.f32 %v8765_v10, %v3787_v59  ;;  %v8828_v10 = vpop.f32.mrf.mxu1  ;;  %v8846_v28 = vpop.f32.mrf.mxu0 }
 0x31a   : > { %v5090_v52 = vrot.slane %v5088_v8, 5  ;;  %v5922_v0 = vpack.c.bf16 %v4758_v50, %v4758_v50  ;;  %v4227_v29 = vmul.f32 %v8365_v26, %v4151_v19  ;;  %v4228_v53 = vmul.f32 %v8372_v45, %v4152_v46  ;;  %v9563_v8 = vld [vmem:[#allocation14_spill] sm:$0xff]  ;;  %v9564_v50 = vld [vmem:[#allocation23_spill] sm:$0xff] }
 0x31b   : > { %v5080_v31 = vrot.slane %v5078_v39, 5  ;;  %v5084_v60 = vrot.slane %v5082_v57, 4  ;;  %vm4367_vm5 = vcmp.gt.f32.partialorder %v4303_v23, 0.5  ;;  %v4229_v63 = vmul.f32 %v8365_v26, %v4153_v41  ;;  %v8840_v51 = vpop.f32.mrf.mxu1  ;;  %v9565_v39 = vld [vmem:[#allocation46_spill] sm:$0xff]  ;;  %v9566_v23 = vld [vmem:[#allocation47_spill] sm:$0xff] }
 0x31c   : > { %v5093_v42 = vshrl.u32 %v5922_v0, 16  ;;  %v5096_v14 = vshll.u32 %v5922_v0, 16  ;;  %v4444_v9 = vsel %vm4367_vm5, %v8393_v3, 0.0  ;;  %v4304_v48 = vadd.f32 %v8370_v33, %v4227_v29  ;;  %v9567_v0 = vld [vmem:[#allocation19_spill] sm:$0xff] }
 0x31d   : > { %v5081_v27 = vsel %vm6482_vm2, %v5076_v2, %v5080_v31  ;;  %v5085_v44 = vor.u32 %v5084_v60, %v5080_v31  ;;  %v4494_v24 = vadd.f32 %v4444_v9, %v4443_v7  ;;  %v4305_v6 = vadd.f32 %v8384_v1, %v4228_v53  ;;  %v3692_v41 = vpop.f32.mrf.mxu1 }
 0x31e   : > { %5374 = vst [vmem:[%s8580_s7 + $0x28] sm:$0xf] %v5081_v27  ;;  %v5095_v11 = vrot.slane %v5093_v42, 4  ;;  %v5098_v38 = vrot.slane %v5096_v14, 5  ;;  %vm4368_vm6 = vcmp.gt.f32.partialorder %v4304_v48, 0.5  ;;  %v4306_v43 = vadd.f32 %v8370_v33, %v4229_v63 }
 0x31f   : > { %v5086_v47 = vrot.slane %v5085_v44, 4  ;;  %v4663_v17 = vrot.slane %v4494_v24, 7  ;;  %v4445_v20 = vsel %vm4368_vm6, %v8382_v37, 0.0  ;;  %vm4369_vm8 = vcmp.gt.f32.partialorder %v4305_v6, 0.5 }
 0x320   : > { %v5099_v56 = vor.u32 %v5098_v38, %v5095_v11  ;;  %v4446_v2 = vsel %vm4369_vm8, %v8393_v3, 0.0  ;;  %vm4370_vm9 = vcmp.gt.f32.partialorder %v4306_v43, 0.5  ;;  %v4154_v7 = vadd.f32 %v8779_v22, %v3788_v15 }
 0x321   : > { %v5091_v35 = vsel %vm6482_vm2, %v5086_v47, %v5090_v52  ;;  %v4664_v13 = vsel %vm4643_vm7, %v4662_v58, %v4663_v17  ;;  %v4760_v4 = vadd.f32 %v4663_v17, %v9562_v40  ;;  %v4495_v32 = vadd.f32 %v4446_v2, %v4445_v20 }
 0x322   : > { %5375 = vst [vmem:[%s8580_s7 + $0x2c] sm:$0xf] %v5091_v35  ;;  %v5100_v34 = vrot.slane %v5099_v56, 4  ;;  %v4759_v21 = vadd.f32 %v4664_v13, %v8493_v54  ;;  %v4447_v59 = vsel %vm4370_vm9, %v8382_v37, 0.0  ;;  %v4230_v22 = vmul.f32 %v8372_v45, %v4154_v7  ;;  %v9568_v13 = vld [vmem:[#allocation77_spill] sm:$0xff] }
 0x323   : > { %v5924_v5 = vpack.c.bf16 %v4760_v4, %v4760_v4  ;;  %v4665_v15 = vrot.slane %v4495_v32, 7  ;;  %v3789_v61 = vadd.f32 %v8775_v30, %v9563_v8  ;;  %v3790_v58 = vadd.f32 %v8787_v12, %v9564_v50  ;;  %v4056_v30 = vpop.f32.mrf.mxu0 }
 0x324   : > { %v5923_v19 = vpack.c.bf16 %v4759_v21, %v4759_v21  ;;  %v4307_v46 = vadd.f32 %v8384_v1, %v4230_v22  ;;  %v3791_v57 = vadd.f32 %v8801_v25, %v9565_v39  ;;  %v3792_v54 = vadd.f32 %v3684_v62, %v9566_v23  ;;  %v9569_v21 = vld [vmem:[#allocation5_spill] sm:$0xff] }
 0x325   : > { %v5112_v52 = vshll.u32 %v5924_v5, 16  ;;  %v4761_v29 = vadd.f32 %v4665_v15, %v9567_v0  ;;  %v4155_v53 = vadd.f32 %v8791_v49, %v3789_v61  ;;  %v4156_v31 = vadd.f32 %v8807_v16, %v3790_v58  ;;  %v3694_v49 = vpop.f32.mrf.mxu1 }
 0x326   : > { %v5102_v60 = vshll.u32 %v5923_v19, 16  ;;  %v5106_v63 = vshrl.u32 %v5923_v19, 16  ;;  %vm4371_vm10 = vcmp.gt.f32.partialorder %v4307_v46, 0.5  ;;  %v4157_v12 = vadd.f32 %v4048_v18, %v3791_v57  ;;  %v4058_v18 = vpop.f32.mrf.mxu0  ;;  %v9570_v57 = vld [vmem:[#allocation48_spill] sm:$0xff] }
 0x327   : > { %v5114_v42 = vrot.slane %v5112_v52, 5  ;;  %v5925_v14 = vpack.c.bf16 %v4761_v29, %v4761_v29  ;;  %v4448_v9 = vsel %vm4371_vm10, %v8393_v3, 0.0  ;;  %v4231_v25 = vmul.f32 %v8365_v26, %v4155_v53  ;;  %v8876_v32 = vpop.f32.mrf.mxu1  ;;  %v9571_v52 = vld [vmem:[#allocation16_spill] sm:$0xff] }
 0x328   : > { %v5104_v62 = vrot.slane %v5102_v60, 5  ;;  %v5108_v48 = vrot.slane %v5106_v63, 4  ;;  %v4496_v27 = vadd.f32 %v4448_v9, %v4447_v59  ;;  %v4232_v44 = vmul.f32 %v8372_v45, %v4156_v31  ;;  %v4060_v22 = vpop.f32.mrf.mxu0  ;;  %v9572_v29 = vld [vmem:[#allocation28_spill] sm:$0xff] }
 0x329   : > { %v5117_v24 = vshrl.u32 %v5925_v14, 16  ;;  %v5120_v16 = vshll.u32 %v5925_v14, 16  ;;  %v4308_v6 = vadd.f32 %v8370_v33, %v4231_v25  ;;  %v4233_v11 = vmul.f32 %v8365_v26, %v4157_v12  ;;  %v3700_v31 = vpop.f32.mrf.mxu1 }
 0x32a   : > { %v5105_v38 = vsel %vm6482_vm2, %v5100_v34, %v5104_v62  ;;  %v5109_v43 = vor.u32 %v5108_v48, %v5104_v62  ;;  %v4666_v47 = vrot.slane %v4496_v27, 7  ;;  %v4309_v17 = vadd.f32 %v8384_v1, %v4232_v44  ;;  %v4064_v14 = vpop.f32.mrf.mxu0  ;;  %v9573_v48 = vld [vmem:[#allocation63_spill] sm:$0xff] }
 0x32b   : > { %5376 = vst [vmem:[%s8580_s7 + $0x30] sm:$0xf] %v5105_v38  ;;  %v5119_v20 = vrot.slane %v5117_v24, 4  ;;  %v5122_v56 = vrot.slane %v5120_v16, 5  ;;  %vm4372_vm11 = vcmp.gt.f32.partialorder %v4308_v6, 0.5  ;;  %v4310_v2 = vadd.f32 %v8370_v33, %v4233_v11  ;;  %v9574_v16 = vld [vmem:[#allocation49_spill] sm:$0xff]  ;;  %v3702_v11 = vpop.f32.mrf.mxu1 }
 0x32c   : > { %v5110_v7 = vrot.slane %v5109_v43, 4  ;;  %v4667_v35 = vsel %vm4643_vm7, %v4665_v15, %v4666_v47  ;;  %v4763_v40 = vadd.f32 %v4666_v47, %v9568_v13  ;;  %v4449_v4 = vsel %vm4372_vm11, %v8382_v37, 0.0  ;;  %v4066_v38 = vpop.f32.mrf.mxu0 }
 0x32d   : > { %v5123_v34 = vor.u32 %v5122_v56, %v5119_v20  ;;  %v4762_v59 = vadd.f32 %v4667_v35, %v9569_v21  ;;  %vm4373_vm12 = vcmp.gt.f32.partialorder %v4309_v17, 0.5  ;;  %vm4374_vm13 = vcmp.gt.f32.partialorder %v4310_v2, 0.5  ;;  %v8905_v13 = vpop.f32.mrf.mxu1 }
 0x32e   : > { %v5115_v5 = vsel %vm6482_vm2, %v5110_v7, %v5114_v42  ;;  %v5927_v8 = vpack.c.bf16 %v4763_v40, %v4763_v40  ;;  %v4450_v61 = vsel %vm4373_vm12, %v8393_v3, 0.0  ;;  %v4451_v15 = vsel %vm4374_vm13, %v8382_v37, 0.0 }
 0x32f   : > { %5377 = vst [vmem:[%s8580_s7 + $0x34] sm:$0xf] %v5115_v5  ;;  %v5124_v50 = vrot.slane %v5123_v34, 4  ;;  %v5926_v58 = vpack.c.bf16 %v4762_v59, %v4762_v59  ;;  %v4497_v19 = vadd.f32 %v4450_v61, %v4449_v4  ;;  %v4158_v46 = vadd.f32 %v8833_v55, %v3792_v54  ;;  %v4068_v59 = vpop.f32.mrf.mxu0 }
 0x330   : > { %v5136_v39 = vshll.u32 %v5927_v8, 16  ;;  %v3793_v23 = vadd.f32 %v8828_v10, %v9570_v57  ;;  %v3794_v0 = vadd.f32 %v8840_v51, %v9571_v52  ;;  %v3795_v53 = vadd.f32 %v3692_v41, %v9572_v29  ;;  %v9577_v52 = vld [vmem:[#allocation25_spill] sm:$0xff]  ;;  %v9578_v29 = vld [vmem:[#allocation50_spill] sm:$0xff] }
 0x331   : > { %v5126_v60 = vshll.u32 %v5926_v58, 16  ;;  %v5130_v63 = vshrl.u32 %v5926_v58, 16  ;;  %v4668_v12 = vrot.slane %v4497_v19, 7  ;;  %v4234_v42 = vmul.f32 %v8372_v45, %v4158_v46  ;;  %v9575_v58 = vld [vmem:[#allocation64_spill] sm:$0xff] }
 0x332   : > { %v5138_v9 = vrot.slane %v5136_v39, 5  ;;  %v4159_v25 = vadd.f32 %v8846_v28, %v3793_v23  ;;  %v4160_v55 = vadd.f32 %v4056_v30, %v3794_v0  ;;  %v4161_v54 = vadd.f32 %v4058_v18, %v3795_v53  ;;  %v9576_v39 = vld [vmem:[#allocation65_spill] sm:$0xff] }
 0x333   : > { %v5128_v62 = vrot.slane %v5126_v60, 5  ;;  %v5132_v10 = vrot.slane %v5130_v63, 4  ;;  %v4764_v27 = vadd.f32 %v4668_v12, %v9573_v48  ;;  %v4311_v51 = vadd.f32 %v8384_v1, %v4234_v42  ;;  %v8921_v60 = vpop.f32.mrf.mxu1 }
 0x334   : > { %v4235_v41 = vmul.f32 %v8365_v26, %v4159_v25  ;;  %v4236_v44 = vmul.f32 %v8372_v45, %v4160_v55  ;;  %v4237_v24 = vmul.f32 %v8365_v26, %v4161_v54  ;;  %v3796_v6 = vadd.f32 %v3694_v49, %v9574_v16  ;;  %v9579_v25 = vld [vmem:[#allocation51_spill] sm:$0xff] }
 0x335   : > { %v5129_v28 = vsel %vm6482_vm2, %v5124_v50, %v5128_v62  ;;  %v5133_v30 = vor.u32 %v5132_v10, %v5128_v62  ;;  %v5928_v18 = vpack.c.bf16 %v4764_v27, %v4764_v27  ;;  %vm4375_vm14 = vcmp.gt.f32.partialorder %v4311_v51, 0.5  ;;  %v9580_v27 = vld [vmem:[#allocation33_spill] sm:$0xff] }
 0x336   : > { %5378 = vst [vmem:[%s8580_s7 + $0x38] sm:$0xf] %v5129_v28  ;;  %v4452_v43 = vsel %vm4375_vm14, %v8393_v3, 0.0  ;;  %v4312_v47 = vadd.f32 %v8370_v33, %v4235_v41  ;;  %v4313_v17 = vadd.f32 %v8384_v1, %v4236_v44  ;;  %v4314_v20 = vadd.f32 %v8370_v33, %v4237_v24 }
 0x337   : > { %v5134_v56 = vrot.slane %v5133_v30, 4  ;;  %v5141_v49 = vshrl.u32 %v5928_v18, 16  ;;  %v5144_v2 = vshll.u32 %v5928_v18, 16  ;;  %v4498_v7 = vadd.f32 %v4452_v43, %v4451_v15 }
 0x338   : > { %vm4376_vm15 = vcmp.gt.f32.partialorder %v4312_v47, 0.5  ;;  %vm4377_vm0 = vcmp.gt.f32.partialorder %v4313_v17, 0.5  ;;  %vm4378_vm1 = vcmp.gt.f32.partialorder %v4314_v20, 0.5  ;;  %v4162_v35 = vadd.f32 %v4060_v22, %v3796_v6  ;;  %v3710_v6 = vpop.f32.mrf.mxu1 }
 0x339   : > { %v5139_v40 = vsel %vm6482_vm2, %v5134_v56, %v5138_v9  ;;  %v5143_v4 = vrot.slane %v5141_v49, 4  ;;  %v5146_v34 = vrot.slane %v5144_v2, 5  ;;  %v4669_v21 = vrot.slane %v4498_v7, 7 }
 0x33a   : > { %5379 = vst [vmem:[%s8580_s7 + $0x3c] sm:$0xf] %v5139_v40  ;;  %v4453_v5 = vsel %vm4376_vm15, %v8382_v37, 0.0  ;;  %v4454_v8 = vsel %vm4377_vm0, %v8393_v3, 0.0  ;;  %v4455_v61 = vsel %vm4378_vm1, %v8382_v37, 0.0  ;;  %v4238_v15 = vmul.f32 %v8372_v45, %v4162_v35 }
 0x33b   : > { %v5147_v50 = vor.u32 %v5146_v34, %v5143_v4  ;;  %v4670_v22 = vsel %vm4643_vm7, %v4668_v12, %v4669_v21  ;;  %v4766_v19 = vadd.f32 %v4669_v21, %v9575_v58  ;;  %v4499_v46 = vadd.f32 %v4454_v8, %v4453_v5  ;;  %v8924_v12 = vpop.f32.mrf.mxu0  ;;  %v9581_v4 = vld [vmem:[#allocation66_spill] sm:$0xff]  ;;  %v3712_v21 = vpop.f32.mrf.mxu1  ;;  %v9582_v8 = vld [vmem:[#allocation67_spill] sm:$0xff] }
 0x33c   : > { %v4765_v57 = vadd.f32 %v4670_v22, %v9576_v39  ;;  %v4315_v23 = vadd.f32 %v8384_v1, %v4238_v15  ;;  %v3797_v0 = vadd.f32 %v8876_v32, %v9577_v52  ;;  %v3798_v53 = vadd.f32 %v3700_v31, %v9578_v29 }
 0x33d   : > { %v5148_v63 = vrot.slane %v5147_v50, 4  ;;  %v5930_v42 = vpack.c.bf16 %v4766_v19, %v4766_v19  ;;  %v4671_v9 = vrot.slane %v4499_v46, 7  ;;  %v3799_v55 = vadd.f32 %v3702_v11, %v9579_v25  ;;  %v4074_v18 = vpop.f32.mrf.mxu0  ;;  %v3714_v29 = vpop.f32.mrf.mxu1 }
 0x33e   : > { %v5929_v54 = vpack.c.bf16 %v4765_v57, %v4765_v57  ;;  %vm4379_vm3 = vcmp.gt.f32.partialorder %v4315_v23, 0.5  ;;  %v4163_v62 = vadd.f32 %v4064_v14, %v3797_v0  ;;  %v4164_v10 = vadd.f32 %v4066_v38, %v3798_v53 }
 0x33f   : > { %v5160_v48 = vshll.u32 %v5930_v42, 16  ;;  %v4767_v51 = vadd.f32 %v4671_v9, %v9580_v27  ;;  %v4456_v32 = vsel %vm4379_vm3, %v8393_v3, 0.0  ;;  %v4165_v41 = vadd.f32 %v4068_v59, %v3799_v55  ;;  %v4076_v15 = vpop.f32.mrf.mxu0  ;;  %v6290_v27 = vld [vmem:[%s6446_s20 + $0x8c] sm:$0x1] }
 0x340   : > { %v5150_v31 = vshll.u32 %v5929_v54, 16  ;;  %v5154_v44 = vshrl.u32 %v5929_v54, 16  ;;  %v4500_v24 = vadd.f32 %v4456_v32, %v4455_v61  ;;  %v4239_v16 = vmul.f32 %v8365_v26, %v4163_v62 }
 0x341   : > { %v5162_v28 = vrot.slane %v5160_v48, 5  ;;  %v5931_v11 = vpack.c.bf16 %v4767_v51, %v4767_v51  ;;  %v4240_v30 = vmul.f32 %v8372_v45, %v4164_v10  ;;  %v4241_v14 = vmul.f32 %v8365_v26, %v4165_v41  ;;  %v4078_v55 = vpop.f32.mrf.mxu0  ;;  %v6289_v10 = vld [vmem:[%s6446_s20 + $0x88] sm:$0xf] }
 0x342   : > { %v5152_v38 = vrot.slane %v5150_v31, 5  ;;  %v5156_v43 = vrot.slane %v5154_v44, 4  ;;  %v4672_v47 = vrot.slane %v4500_v24, 7  ;;  %v4316_v17 = vadd.f32 %v8370_v33, %v4239_v16  ;;  %v9584_v44 = vld [vmem:[#allocation30_spill] sm:$0xff]  ;;  %v9585_v16 = vld [vmem:[#allocation68_spill] sm:$0xff] }
 0x343   : > { %v5165_v20 = vshrl.u32 %v5931_v11, 16  ;;  %v5168_v56 = vshll.u32 %v5931_v11, 16  ;;  %v4317_v49 = vadd.f32 %v8384_v1, %v4240_v30  ;;  %v4318_v2 = vadd.f32 %v8370_v33, %v4241_v14  ;;  %v9587_v14 = vld [vmem:[#allocation52_spill] sm:$0xff] }
 0x344   : > { %v5153_v7 = vsel %vm6482_vm2, %v5148_v63, %v5152_v38  ;;  %v5157_v35 = vor.u32 %v5156_v43, %v5152_v38  ;;  %v4673_v40 = vsel %vm4643_vm7, %v4671_v9, %v4672_v47  ;;  %v4769_v34 = vadd.f32 %v4672_v47, %v9581_v4  ;;  %v9583_v9 = vld [vmem:[#allocation18_spill] sm:$0xff]  ;;  %v3718_v43 = vpop.f32.mrf.mxu1 }
 0x345   : > { %5380 = vst [vmem:[%s8580_s7 + $0x40] sm:$0xf] %v5153_v7  ;;  %v5167_v59 = vrot.slane %v5165_v20, 4  ;;  %v5170_v5 = vrot.slane %v5168_v56, 5  ;;  %v4768_v61 = vadd.f32 %v4673_v40, %v9582_v8  ;;  %vm4380_vm4 = vcmp.gt.f32.partialorder %v4316_v17, 0.5  ;;  %v4080_v56 = vpop.f32.mrf.mxu0 }
 0x346   : > { %v5158_v50 = vrot.slane %v5157_v35, 4  ;;  %v5933_v22 = vpack.c.bf16 %v4769_v34, %v4769_v34  ;;  %v4457_v58 = vsel %vm4380_vm4, %v8382_v37, 0.0  ;;  %vm4381_vm5 = vcmp.gt.f32.partialorder %v4317_v49, 0.5  ;;  %v9588_v35 = vld [vmem:[#allocation53_spill] sm:$0xff] }
 0x347   : > { %v5171_v19 = vor.u32 %v5170_v5, %v5167_v59  ;;  %v5932_v46 = vpack.c.bf16 %v4768_v61, %v4768_v61  ;;  %v4458_v39 = vsel %vm4381_vm5, %v8393_v3, 0.0  ;;  %vm4382_vm6 = vcmp.gt.f32.partialorder %v4318_v2, 0.5  ;;  %v6291_v2 = vld [vmem:[%s6446_s20 + $0x90] sm:$0xf]  ;;  %v9589_v59 = vld [vmem:[#allocation26_spill] sm:$0xff] }
 0x348   : > { %v5163_v57 = vsel %vm6482_vm2, %v5158_v50, %v5162_v28  ;;  %v5184_v23 = vshll.u32 %v5933_v22, 16  ;;  %v8944_v52 = vadd.f32 %v4458_v39, %v4457_v58  ;;  %v4459_v0 = vsel %vm4382_vm6, %v8382_v37, 0.0  ;;  %v9586_v28 = vld [vmem:[#allocation29_spill] sm:$0xff]  ;;  %v3720_v22 = vpop.f32.mrf.mxu1 }
 0x349   : > { %5381 = vst [vmem:[%s8580_s7 + $0x44] sm:$0xf] %v5163_v57  ;;  %v5172_v53 = vrot.slane %v5171_v19, 4  ;;  %v5174_v63 = vshll.u32 %v5932_v46, 16  ;;  %v5178_v42 = vshrl.u32 %v5932_v46, 16  ;;  %v3800_v25 = vadd.f32 %v8905_v13, %v9583_v9  ;;  %v4084_v19 = vpop.f32.mrf.mxu0 }
 0x34a   : > { %v5186_v54 = vrot.slane %v5184_v23, 5  ;;  %v4674_v62 = vrot.slane %v8944_v52, 7  ;;  %v4544_v48 = vunpack.c.l.bf16 %v6289_v10  ;;  %v4545_v51 = vunpack.c.l.bf16 %v6290_v27 }
 0x34b   : > { %v5176_v32 = vrot.slane %v5174_v63, 5  ;;  %v5180_v41 = vrot.slane %v5178_v42, 4  ;;  %v4166_v31 = vadd.f32 %v8924_v12, %v3800_v25  ;;  %v3801_v24 = vadd.f32 %v8921_v60, %v9584_v44  ;;  %v6292_v25 = vld [vmem:[%s6446_s20 + $0x94] sm:$0xf] }
 0x34c   : > { %v4770_v13 = vadd.f32 %v4674_v62, %v9585_v16  ;;  %v4594_v11 = vmul.f32 %v9586_v28, %v4544_v48  ;;  %v4595_v30 = vmul.f32 %v9586_v28, %v4545_v51  ;;  %v3802_v38 = vadd.f32 %v3710_v6, %v9587_v14  ;;  %v4086_v51 = vpop.f32.mrf.mxu0 }
 0x34d   : > { %v5177_v47 = vsel %vm6482_vm2, %v5172_v53, %v5176_v32  ;;  %v5181_v17 = vor.u32 %v5180_v41, %v5176_v32  ;;  %v4242_v12 = vmul.f32 %v8372_v45, %v4166_v31  ;;  %v4167_v20 = vadd.f32 %v4074_v18, %v3801_v24  ;;  %v6293_v31 = vld [vmem:[%s6446_s20 + $0x98] sm:$0x1] }
 0x34e   : > { %5382 = vst [vmem:[%s8580_s7 + $0x48] sm:$0xf] %v5177_v47  ;;  %v5934_v60 = vpack.c.bf16 %v4770_v13, %v4770_v13  ;;  %v4168_v49 = vadd.f32 %v4076_v15, %v3802_v38  ;;  %v4546_v7 = vunpack.c.l.bf16 %v6291_v2  ;;  %v3803_v40 = vadd.f32 %v3712_v21, %v9588_v35  ;;  %v9591_v2 = vld [vmem:[#allocation6_spill] sm:$0xff] }
 0x34f   : > { %v5182_v4 = vrot.slane %v5181_v17, 4  ;;  %v4319_v6 = vadd.f32 %v8384_v1, %v4242_v12  ;;  %v4243_v34 = vmul.f32 %v8365_v26, %v4167_v20  ;;  %v3804_v5 = vadd.f32 %v3714_v29, %v9589_v59 }
 0x350   : > { %v5189_v8 = vshrl.u32 %v5934_v60, 16  ;;  %v5192_v61 = vshll.u32 %v5934_v60, 16  ;;  %v4244_v18 = vmul.f32 %v8372_v45, %v4168_v49  ;;  %v4596_v50 = vmul.f32 %v9586_v28, %v4546_v7  ;;  %v9590_v60 = vld [vmem:[#allocation27_spill] sm:$0xff]  ;;  %v4088_v7 = vpop.f32.mrf.mxu0 }
 0x351   : > { %v5187_v15 = vsel %vm6482_vm2, %v5182_v4, %v5186_v54  ;;  %vm4383_vm8 = vcmp.gt.f32.partialorder %v4319_v6, 0.5  ;;  %v4320_v21 = vadd.f32 %v8370_v33, %v4243_v34  ;;  %v4169_v58 = vadd.f32 %v4078_v55, %v3803_v40  ;;  %v8982_v54 = vpop.f32.mrf.mxu1  ;;  %v6294_v40 = vld [vmem:[%s6446_s20 + $0x9c] sm:$0xf] }
 0x352   : > { %5383 = vst [vmem:[%s8580_s7 + $0x4c] sm:$0xf] %v5187_v15  ;;  %v5191_v46 = vrot.slane %v5189_v8, 4  ;;  %v5194_v39 = vrot.slane %v5192_v61, 5  ;;  %v4460_v57 = vsel %vm4383_vm8, %v8393_v3, 0.0  ;;  %v4321_v23 = vadd.f32 %v8384_v1, %v4244_v18 }
 0x353   : > { %v4502_v29 = vadd.f32 %v4460_v57, %v4459_v0  ;;  %vm4384_vm9 = vcmp.gt.f32.partialorder %v4320_v21, 0.5  ;;  %v4245_v53 = vmul.f32 %v8365_v26, %v4169_v58  ;;  %v4170_v63 = vadd.f32 %v4080_v56, %v3804_v5  ;;  %v3724_v20 = vpop.f32.mrf.mxu1  ;;  %v4090_v58 = vpop.f32.mrf.mxu0 }
 0x354   : > { %v5195_v42 = vor.u32 %v5194_v39, %v5191_v46  ;;  %v4461_v9 = vsel %vm4384_vm9, %v8382_v37, 0.0  ;;  %vm4385_vm10 = vcmp.gt.f32.partialorder %v4321_v23, 0.5  ;;  %v4547_v55 = vunpack.c.l.bf16 %v6292_v25 }
 0x355   : > { %v4675_v10 = vrot.slane %v4502_v29, 7  ;;  %v4462_v48 = vsel %vm4385_vm10, %v8393_v3, 0.0  ;;  %v4322_v27 = vadd.f32 %v8370_v33, %v4245_v53  ;;  %v4246_v0 = vmul.f32 %v8372_v45, %v4170_v63  ;;  %v3728_v15 = vpop.f32.mrf.mxu1 }
 0x356   : > { %v5196_v32 = vrot.slane %v5195_v42, 4  ;;  %v4503_v41 = vadd.f32 %v4462_v48, %v4461_v9  ;;  %v4548_v44 = vunpack.c.l.bf16 %v6293_v31  ;;  %v4597_v24 = vmul.f32 %v9586_v28, %v4547_v55 }
 0x357   : > { %v4676_v16 = vsel %vm4643_vm7, %v4674_v62, %v4675_v10  ;;  %v4772_v13 = vadd.f32 %v4675_v10, %v4595_v30  ;;  %vm4386_vm11 = vcmp.gt.f32.partialorder %v4322_v27, 0.5  ;;  %v4323_v14 = vadd.f32 %v8384_v1, %v4246_v0  ;;  %v3730_v10 = vpop.f32.mrf.mxu1  ;;  %v4094_v0 = vpop.f32.mrf.mxu0 }
 0x358   : > { %v4771_v38 = vadd.f32 %v4676_v16, %v4594_v11  ;;  %v4677_v47 = vrot.slane %v4503_v41, 7  ;;  %v4463_v17 = vsel %vm4386_vm11, %v8382_v37, 0.0  ;;  %v4598_v12 = vmul.f32 %v9586_v28, %v4548_v44 }
 0x359   : > { %v5936_v56 = vpack.c.bf16 %v4772_v13, %v4772_v13  ;;  %vm4387_vm12 = vcmp.gt.f32.partialorder %v4323_v14, 0.5  ;;  %v3805_v49 = vadd.f32 %v3718_v43, %v9590_v60  ;;  %v3806_v52 = vadd.f32 %v3720_v22, %v9591_v2  ;;  %v9592_v14 = vld [vmem:[#allocation32_spill] sm:$0xff] }
 0x35a   : > { %v5935_v62 = vpack.c.bf16 %v4771_v38, %v4771_v38  ;;  %v4773_v30 = vadd.f32 %v4677_v47, %v4596_v50  ;;  %v4464_v35 = vsel %vm4387_vm12, %v8393_v3, 0.0  ;;  %v4549_v4 = vunpack.c.l.bf16 %v6294_v40 }
 0x35b   : > { %v5208_v11 = vshll.u32 %v5936_v56, 16  ;;  %v4504_v6 = vadd.f32 %v4464_v35, %v4463_v17  ;;  %v4171_v34 = vadd.f32 %v4084_v19, %v3805_v49  ;;  %v4172_v59 = vadd.f32 %v4086_v51, %v3806_v52  ;;  %v9593_v17 = vld [vmem:[#allocation54_spill] sm:$0xff]  ;;  %v6295_v56 = vld [vmem:[%s6446_s20 + $0xa0] sm:$0xf]  ;;  %v3732_v49 = vpop.f32.mrf.mxu1  ;;  %v4096_v35 = vpop.f32.mrf.mxu0 }
 0x35c   : > { %v5198_v5 = vshll.u32 %v5935_v62, 16  ;;  %v5202_v8 = vshrl.u32 %v5935_v62, 16  ;;  %v5937_v61 = vpack.c.bf16 %v4773_v30, %v4773_v30  ;;  %v4599_v18 = vmul.f32 %v9586_v28, %v4549_v4 }
 0x35d   : > { %v5210_v43 = vrot.slane %v5208_v11, 5  ;;  %v4678_v21 = vrot.slane %v4504_v6, 7  ;;  %v4247_v22 = vmul.f32 %v8365_v26, %v4171_v34  ;;  %v4248_v50 = vmul.f32 %v8372_v45, %v4172_v59  ;;  %v6296_v11 = vld [vmem:[%s6446_s20 + $0xa4] sm:$0x1] }
 0x35e   : > { %v5200_v46 = vrot.slane %v5198_v5, 5  ;;  %v5204_v39 = vrot.slane %v5202_v8, 4  ;;  %v5213_v57 = vshrl.u32 %v5937_v61, 16  ;;  %v5216_v23 = vshll.u32 %v5937_v61, 16  ;;  %v9594_v5 = vld [vmem:[#allocation55_spill] sm:$0xff] }
 0x35f   : > { %v4679_v19 = vsel %vm4643_vm7, %v4677_v47, %v4678_v21  ;;  %v4775_v29 = vadd.f32 %v4678_v21, %v4598_v12  ;;  %v4324_v53 = vadd.f32 %v8370_v33, %v4247_v22  ;;  %v4325_v63 = vadd.f32 %v8384_v1, %v4248_v50  ;;  %v9595_v21 = vld [vmem:[#allocation56_spill] sm:$0xff]  ;;  %v3734_v50 = vpop.f32.mrf.mxu1 }
 0x360   : > { %v5201_v42 = vsel %vm6482_vm2, %v5196_v32, %v5200_v46  ;;  %v5205_v9 = vor.u32 %v5204_v39, %v5200_v46  ;;  %v5215_v25 = vrot.slane %v5213_v57, 4  ;;  %v5218_v55 = vrot.slane %v5216_v23, 5  ;;  %v4098_v23 = vpop.f32.mrf.mxu0 }
 0x361   : > { %5384 = vst [vmem:[%s8580_s7 + $0x50] sm:$0xf] %v5201_v42  ;;  %v4774_v48 = vadd.f32 %v4679_v19, %v4597_v24  ;;  %v5939_v27 = vpack.c.bf16 %v4775_v29, %v4775_v29  ;;  %vm4388_vm13 = vcmp.gt.f32.partialorder %v4324_v53, 0.5  ;;  %vm4389_vm14 = vcmp.gt.f32.partialorder %v4325_v63, 0.5  ;;  %v6297_v29 = vld [vmem:[%s6446_s20 + $0xa8] sm:$0xf] }
 0x362   : > { %v5206_v51 = vrot.slane %v5205_v9, 4  ;;  %v5219_v41 = vor.u32 %v5218_v55, %v5215_v25  ;;  %v4465_v31 = vsel %vm4388_vm13, %v8382_v37, 0.0  ;;  %v4466_v44 = vsel %vm4389_vm14, %v8393_v3, 0.0 }
 0x363   : > { %v5938_v16 = vpack.c.bf16 %v4774_v48, %v4774_v48  ;;  %v5232_v32 = vshll.u32 %v5939_v27, 16  ;;  %v9010_v13 = vadd.f32 %v4466_v44, %v4465_v31  ;;  %v3807_v24 = vadd.f32 %v8982_v54, %v9592_v14  ;;  %v3738_v48 = vpop.f32.mrf.mxu1  ;;  %v4100_v31 = vpop.f32.mrf.mxu0  ;;  %v9596_v14 = vld [vmem:[#allocation57_spill] sm:$0xff] }
 0x364   : > { %v5211_v38 = vsel %vm6482_vm2, %v5206_v51, %v5210_v43  ;;  %v5220_v47 = vrot.slane %v5219_v41, 4  ;;  %v3808_v12 = vadd.f32 %v3724_v20, %v9593_v17  ;;  %v4550_v60 = vunpack.c.l.bf16 %v6295_v56  ;;  %v9597_v17 = vld [vmem:[#allocation7_spill] sm:$0xff]  ;;  %v6298_v56 = vld [vmem:[%s6446_s20 + $0xac] sm:$0xf] }
 0x365   : > { %5385 = vst [vmem:[%s8580_s7 + $0x54] sm:$0xf] %v5211_v38  ;;  %v5222_v2 = vshll.u32 %v5938_v16, 16  ;;  %v5226_v52 = vshrl.u32 %v5938_v16, 16  ;;  %v5234_v62 = vrot.slane %v5232_v32, 5  ;;  %v4680_v30 = vrot.slane %v9010_v13, 7 }
 0x366   : > { %v4173_v40 = vadd.f32 %v4088_v7, %v3807_v24  ;;  %v4174_v4 = vadd.f32 %v4090_v58, %v3808_v12  ;;  %v4551_v54 = vunpack.c.l.bf16 %v6296_v11  ;;  %v9022_v6 = vmul.f32 %v9586_v28, %v4550_v60 }
 0x367   : > { %v5224_v34 = vrot.slane %v5222_v2, 5  ;;  %v5228_v20 = vrot.slane %v5226_v52, 4  ;;  %v4776_v59 = vadd.f32 %v4680_v30, %v4599_v18  ;;  %v3809_v8 = vadd.f32 %v3728_v15, %v9594_v5  ;;  %v6299_v52 = vld [vmem:[%s6446_s20 + $0xb0] sm:$0x1] }
 0x368   : > { %v4249_v61 = vmul.f32 %v8365_v26, %v4173_v40  ;;  %v4250_v43 = vmul.f32 %v8372_v45, %v4174_v4  ;;  %v4601_v7 = vmul.f32 %v9586_v28, %v4551_v54  ;;  %v3810_v22 = vadd.f32 %v3730_v10, %v9595_v21  ;;  %v9598_v21 = vld [vmem:[#allocation9_spill] sm:$0xff] }
 0x369   : > { %v5225_v58 = vsel %vm6482_vm2, %v5220_v47, %v5224_v34  ;;  %v5229_v46 = vor.u32 %v5228_v20, %v5224_v34  ;;  %v5940_v39 = vpack.c.bf16 %v4776_v59, %v4776_v59  ;;  %v4175_v57 = vadd.f32 %v4094_v0, %v3809_v8  ;;  %v4104_v34 = vpop.f32.mrf.mxu0 }
 0x36a   : > { %5386 = vst [vmem:[%s8580_s7 + $0x58] sm:$0xf] %v5225_v58  ;;  %v4326_v18 = vadd.f32 %v8370_v33, %v4249_v61  ;;  %v4327_v15 = vadd.f32 %v8384_v1, %v4250_v43  ;;  %v4176_v19 = vadd.f32 %v4096_v35, %v3810_v22  ;;  %v4552_v53 = vunpack.c.l.bf16 %v6297_v29  ;;  %v3740_v35 = vpop.f32.mrf.mxu1  ;;  %v6300_v29 = vld [vmem:[%s6446_s20 + $0xb4] sm:$0xf] }
 0x36b   : > { %v5230_v63 = vrot.slane %v5229_v46, 4  ;;  %v5237_v42 = vshrl.u32 %v5940_v39, 16  ;;  %v5240_v9 = vshll.u32 %v5940_v39, 16  ;;  %v4251_v25 = vmul.f32 %v8365_v26, %v4175_v57  ;;  %v4106_v13 = vpop.f32.mrf.mxu0 }
 0x36c   : > { %vm4390_vm15 = vcmp.gt.f32.partialorder %v4326_v18, 0.5  ;;  %vm4391_vm0 = vcmp.gt.f32.partialorder %v4327_v15, 0.5  ;;  %v4252_v55 = vmul.f32 %v8372_v45, %v4176_v19  ;;  %v4602_v10 = vmul.f32 %v9586_v28, %v4552_v53  ;;  %v3742_v57 = vpop.f32.mrf.mxu1  ;;  %v9599_v15 = vld [vmem:[#allocation11_spill] sm:$0xff] }
 0x36d   : > { %v5235_v27 = vsel %vm6482_vm2, %v5230_v63, %v5234_v62  ;;  %v5239_v0 = vrot.slane %v5237_v42, 4  ;;  %v5242_v51 = vrot.slane %v5240_v9, 5  ;;  %v4467_v41 = vsel %vm4390_vm15, %v8382_v37, 0.0 }
 0x36e   : > { %5387 = vst [vmem:[%s8580_s7 + $0x5c] sm:$0xf] %v5235_v27  ;;  %v4468_v44 = vsel %vm4391_vm0, %v8393_v3, 0.0  ;;  %v4328_v16 = vadd.f32 %v8370_v33, %v4251_v25  ;;  %v4329_v32 = vadd.f32 %v8384_v1, %v4252_v55  ;;  %v3811_v24 = vadd.f32 %v3732_v49, %v9596_v14 }
 0x36f   : > { %v5243_v38 = vor.u32 %v5242_v51, %v5239_v0  ;;  %v4506_v47 = vadd.f32 %v4468_v44, %v4467_v41  ;;  %v3812_v12 = vadd.f32 %v3734_v50, %v9597_v17  ;;  %v4553_v60 = vunpack.c.l.bf16 %v6298_v56  ;;  %v3744_v0 = vpop.f32.mrf.mxu1  ;;  %v4108_v44 = vpop.f32.mrf.mxu0 }
 0x370   : > { %vm4392_vm1 = vcmp.gt.f32.partialorder %v4328_v16, 0.5  ;;  %vm4393_vm3 = vcmp.gt.f32.partialorder %v4329_v32, 0.5  ;;  %v4177_v2 = vadd.f32 %v4098_v23, %v3811_v24  ;;  %v4554_v62 = vunpack.c.l.bf16 %v6299_v52 }
 0x371   : > { %v5244_v40 = vrot.slane %v5243_v38, 4  ;;  %v4681_v4 = vrot.slane %v4506_v47, 7  ;;  %v4469_v11 = vsel %vm4392_vm1, %v8382_v37, 0.0  ;;  %v4470_v54 = vsel %vm4393_vm3, %v8393_v3, 0.0  ;;  %v3748_v52 = vpop.f32.mrf.mxu1 }
 0x372   : > { %v4507_v49 = vadd.f32 %v4470_v54, %v4469_v11  ;;  %v4253_v20 = vmul.f32 %v8365_v26, %v4177_v2  ;;  %v4178_v59 = vadd.f32 %v4100_v31, %v3812_v12  ;;  %v9055_v5 = vmul.f32 %v9586_v28, %v4553_v60  ;;  %v4110_v54 = vpop.f32.mrf.mxu0 }
 0x373   : > { %v4682_v8 = vsel %vm4643_vm7, %v4680_v30, %v4681_v4  ;;  %v4778_v61 = vadd.f32 %v4681_v4, %v4601_v7  ;;  %v4604_v43 = vmul.f32 %v9586_v28, %v4554_v62  ;;  %v3813_v22 = vadd.f32 %v3738_v48, %v9598_v21  ;;  %v9600_v4 = vld [vmem:[#allocation58_spill] sm:$0xff] }
 0x374   : > { %v4777_v50 = vadd.f32 %v4682_v8, %v9022_v6  ;;  %v4683_v58 = vrot.slane %v4507_v49, 7  ;;  %v4330_v46 = vadd.f32 %v8370_v33, %v4253_v20  ;;  %v4254_v39 = vmul.f32 %v8372_v45, %v4178_v59  ;;  %v9601_v59 = vld [vmem:[#allocation59_spill] sm:$0xff] }
 0x375   : > { %v5942_v23 = vpack.c.bf16 %v4778_v61, %v4778_v61  ;;  %v4179_v18 = vadd.f32 %v4104_v34, %v3813_v22  ;;  %v3814_v19 = vadd.f32 %v3740_v35, %v9599_v15  ;;  %v4555_v30 = vunpack.c.l.bf16 %v6300_v29  ;;  %v4114_v29 = vpop.f32.mrf.mxu0 }
 0x376   : > { %v5941_v7 = vpack.c.bf16 %v4777_v50, %v4777_v50  ;;  %v4779_v53 = vadd.f32 %v4683_v58, %v4602_v10  ;;  %vm4394_vm4 = vcmp.gt.f32.partialorder %v4330_v46, 0.5  ;;  %v4331_v63 = vadd.f32 %v8384_v1, %v4254_v39 }
 0x377   : > { %v5256_v42 = vshll.u32 %v5942_v23, 16  ;;  %v4471_v6 = vsel %vm4394_vm4, %v8382_v37, 0.0  ;;  %v4255_v9 = vmul.f32 %v8365_v26, %v4179_v18  ;;  %v4180_v25 = vadd.f32 %v4106_v13, %v3814_v19  ;;  %v6301_v19 = vld [vmem:[%s6446_s20 + $0xb8] sm:$0xf] }
 0x378   : > { %v5246_v55 = vshll.u32 %v5941_v7, 16  ;;  %v5250_v48 = vshrl.u32 %v5941_v7, 16  ;;  %v5943_v27 = vpack.c.bf16 %v4779_v53, %v4779_v53  ;;  %vm4395_vm5 = vcmp.gt.f32.partialorder %v4331_v63, 0.5  ;;  %v9602_v53 = vld [vmem:[#allocation13_spill] sm:$0xff] }
 0x379   : > { %v5258_v51 = vrot.slane %v5256_v42, 5  ;;  %v4472_v41 = vsel %vm4395_vm5, %v8393_v3, 0.0  ;;  %v4332_v31 = vadd.f32 %v8370_v33, %v4255_v9  ;;  %v4256_v10 = vmul.f32 %v8372_v45, %v4180_v25 }
 0x37a   : > { %v5248_v16 = vrot.slane %v5246_v55, 5  ;;  %v5252_v32 = vrot.slane %v5250_v48, 4  ;;  %v5261_v14 = vshrl.u32 %v5943_v27, 16  ;;  %v5264_v24 = vshll.u32 %v5943_v27, 16 }
 0x37b   : > { %v4508_v38 = vadd.f32 %v4472_v41, %v4471_v6  ;;  %vm4396_vm6 = vcmp.gt.f32.partialorder %v4332_v31, 0.5  ;;  %v4333_v47 = vadd.f32 %v8384_v1, %v4256_v10  ;;  %v4605_v17 = vmul.f32 %v9586_v28, %v4555_v30  ;;  %v6302_v30 = vld [vmem:[%s6446_s20 + $0xbc] sm:$0x1]  ;;  %v4116_v10 = vpop.f32.mrf.mxu0 }
 0x37c   : > { %v5249_v12 = vsel %vm6482_vm2, %v5244_v40, %v5248_v16  ;;  %v5253_v56 = vor.u32 %v5252_v32, %v5248_v16  ;;  %v5263_v60 = vrot.slane %v5261_v14, 4  ;;  %v5266_v2 = vrot.slane %v5264_v24, 5 }
 0x37d   : > { %5388 = vst [vmem:[%s8580_s7 + $0x60] sm:$0xf] %v5249_v12  ;;  %v4684_v62 = vrot.slane %v4508_v38, 7  ;;  %v4473_v35 = vsel %vm4396_vm6, %v8382_v37, 0.0  ;;  %vm4397_vm8 = vcmp.gt.f32.partialorder %v4333_v47, 0.5  ;;  %v3815_v11 = vadd.f32 %v3742_v57, %v9600_v4  ;;  %v3750_v57 = vpop.f32.mrf.mxu1 }
 0x37e   : > { %v5254_v34 = vrot.slane %v5253_v56, 4  ;;  %v5267_v49 = vor.u32 %v5266_v2, %v5263_v60  ;;  %v4474_v20 = vsel %vm4397_vm8, %v8393_v3, 0.0  ;;  %v3816_v40 = vadd.f32 %v3744_v0, %v9601_v59  ;;  %v9603_v60 = vld [vmem:[#allocation37_spill] sm:$0xff]  ;;  %v9604_v59 = vld [vmem:[#allocation60_spill] sm:$0xff] }
 0x37f   : > { %v4685_v8 = vsel %vm4643_vm7, %v4683_v58, %v4684_v62  ;;  %v4781_v61 = vadd.f32 %v4684_v62, %v4604_v43  ;;  %v4509_v21 = vadd.f32 %v4474_v20, %v4473_v35  ;;  %v4181_v22 = vadd.f32 %v4108_v44, %v3815_v11  ;;  %v3752_v0 = vpop.f32.mrf.mxu1 }
 0x380   : > { %v5259_v50 = vsel %vm6482_vm2, %v5254_v34, %v5258_v51  ;;  %v4780_v46 = vadd.f32 %v4685_v8, %v9055_v5  ;;  %v4182_v39 = vadd.f32 %v4110_v54, %v3816_v40  ;;  %v4556_v13 = vunpack.c.l.bf16 %v6301_v19  ;;  %v4118_v54 = vpop.f32.mrf.mxu0  ;;  %v6303_v8 = vld [vmem:[%s6446_s20 + $0xc0] sm:$0xf] }
 0x381   : > { %5389 = vst [vmem:[%s8580_s7 + $0x64] sm:$0xf] %v5259_v50  ;;  %v5945_v23 = vpack.c.bf16 %v4781_v61, %v4781_v61  ;;  %v4686_v18 = vrot.slane %v4509_v21, 7  ;;  %v4257_v15 = vmul.f32 %v8365_v26, %v4181_v22  ;;  %v4557_v7 = vunpack.c.l.bf16 %v6302_v30  ;;  %v9605_v21 = vld [vmem:[#allocation61_spill] sm:$0xff] }
 0x382   : > { %v5944_v58 = vpack.c.bf16 %v4780_v46, %v4780_v46  ;;  %v4258_v43 = vmul.f32 %v8372_v45, %v4182_v39  ;;  %v3817_v63 = vadd.f32 %v3748_v52, %v9602_v53  ;;  %v5268_v42 = vrot.slane %v5267_v49, 4  ;;  %v3754_v52 = vpop.f32.mrf.mxu1 }
 0x383   : > { %v5280_v6 = vshll.u32 %v5945_v23, 16  ;;  %v4782_v5 = vadd.f32 %v4686_v18, %v4605_v17  ;;  %v4334_v9 = vadd.f32 %v8370_v33, %v4257_v15  ;;  %v4606_v27 = vmul.f32 %v9586_v28, %v4556_v13  ;;  %v4120_v13 = vpop.f32.mrf.mxu0 }
 0x384   : > { %v5270_v25 = vshll.u32 %v5944_v58, 16  ;;  %v5274_v55 = vshrl.u32 %v5944_v58, 16  ;;  %v4335_v48 = vadd.f32 %v8384_v1, %v4258_v43  ;;  %v4607_v41 = vmul.f32 %v9586_v28, %v4557_v7 }
 0x385   : > { %v5946_v51 = vpack.c.bf16 %v4782_v5, %v4782_v5  ;;  %vm4398_vm9 = vcmp.gt.f32.partialorder %v4334_v9, 0.5  ;;  %v4183_v31 = vadd.f32 %v4114_v29, %v3817_v63  ;;  %v3818_v2 = vadd.f32 %v3750_v57, %v9603_v60 }
 0x386   : > { %v5272_v44 = vrot.slane %v5270_v25, 5  ;;  %v5276_v16 = vrot.slane %v5274_v55, 4  ;;  %v4475_v32 = vsel %vm4398_vm9, %v8382_v37, 0.0  ;;  %vm4399_vm10 = vcmp.gt.f32.partialorder %v4335_v48, 0.5 }
 0x387   : > { %v5285_v14 = vshrl.u32 %v5946_v51, 16  ;;  %v5288_v24 = vshll.u32 %v5946_v51, 16  ;;  %v4476_v38 = vsel %vm4399_vm10, %v8393_v3, 0.0  ;;  %v4259_v47 = vmul.f32 %v8365_v26, %v4183_v31  ;;  %v6305_v51 = vld [vmem:[%s6446_s20 + $0xc8] sm:$0x1] }
 0x388   : > { %v5273_v17 = vsel %vm6482_vm2, %v5268_v42, %v5272_v44  ;;  %v5277_v12 = vor.u32 %v5276_v16, %v5272_v44  ;;  %v4510_v56 = vadd.f32 %v4476_v38, %v4475_v32  ;;  %v5282_v62 = vrot.slane %v5280_v6, 5  ;;  %v6304_v6 = vld [vmem:[%s6446_s20 + $0xc4] sm:$0xf] }
 0x389   : > { %5390 = vst [vmem:[%s8580_s7 + $0x68] sm:$0xf] %v5273_v17  ;;  %v5287_v35 = vrot.slane %v5285_v14, 4  ;;  %v5290_v4 = vrot.slane %v5288_v24, 5  ;;  %v4336_v11 = vadd.f32 %v8370_v33, %v4259_v47  ;;  %v4184_v20 = vadd.f32 %v4116_v10, %v3818_v2 }
 0x38a   : > { %v5278_v34 = vrot.slane %v5277_v12, 4  ;;  %v4687_v49 = vrot.slane %v4510_v56, 7  ;;  %v3819_v40 = vadd.f32 %v3752_v0, %v9604_v59  ;;  %v4558_v61 = vunpack.c.l.bf16 %v6303_v8 }
 0x38b   : > { %v3820_v22 = vadd.f32 %v3754_v52, %v9605_v21  ;;  %v5291_v46 = vor.u32 %v5290_v4, %v5287_v35  ;;  %vm4400_vm11 = vcmp.gt.f32.partialorder %v4336_v11, 0.5  ;;  %v4260_v15 = vmul.f32 %v8372_v45, %v4184_v20 }
 0x38c   : > { %v5283_v50 = vsel %vm6482_vm2, %v5278_v34, %v5282_v62  ;;  %v4688_v39 = vsel %vm4643_vm7, %v4686_v18, %v4687_v49  ;;  %v4784_v57 = vadd.f32 %v4687_v49, %v4607_v41  ;;  %v4185_v19 = vadd.f32 %v4118_v54, %v3819_v40 }
 0x38d   : > { %5391 = vst [vmem:[%s8580_s7 + $0x6c] sm:$0xf] %v5283_v50  ;;  %v4783_v23 = vadd.f32 %v4688_v39, %v4606_v27  ;;  %v4186_v58 = vadd.f32 %v4120_v13, %v3820_v22  ;;  %v4337_v30 = vadd.f32 %v8384_v1, %v4260_v15  ;;  %v4608_v7 = vmul.f32 %v9586_v28, %v4558_v61 }
 0x38e   : > { %v5948_v29 = vpack.c.bf16 %v4784_v57, %v4784_v57  ;;  %v4261_v53 = vmul.f32 %v8365_v26, %v4185_v19  ;;  %v5292_v18 = vrot.slane %v5291_v46, 4  ;;  %v4477_v63 = vsel %vm4400_vm11, %v8382_v37, 0.0 }
 0x38f   : > { %v5947_v43 = vpack.c.bf16 %v4783_v23, %v4783_v23  ;;  %v4262_v42 = vmul.f32 %v8372_v45, %v4186_v58  ;;  %v4559_v5 = vunpack.c.l.bf16 %v6304_v6  ;;  %vm4401_vm12 = vcmp.gt.f32.partialorder %v4337_v30, 0.5 }
 0x390   : > { %v4338_v55 = vadd.f32 %v8370_v33, %v4261_v53  ;;  %v5304_v48 = vshll.u32 %v5948_v29, 16  ;;  %v4478_v27 = vsel %vm4401_vm12, %v8393_v3, 0.0  ;;  %v4560_v26 = vunpack.c.l.bf16 %v6305_v51 }
 0x391   : > { %v5294_v9 = vshll.u32 %v5947_v43, 16  ;;  %v5298_v25 = vshrl.u32 %v5947_v43, 16  ;;  %v4339_v0 = vadd.f32 %v8384_v1, %v4262_v42  ;;  %v4511_v10 = vadd.f32 %v4478_v27, %v4477_v63 }
 0x392   : > { %vm4402_vm13 = vcmp.gt.f32.partialorder %v4338_v55, 0.5  ;;  %v4610_v1 = vmul.f32 %v9586_v28, %v4560_v26  ;;  %v5306_v38 = vrot.slane %v5304_v48, 5  ;;  %v4609_v17 = vmul.f32 %v9586_v28, %v4559_v5 }
 0x393   : > { %v5296_v41 = vrot.slane %v5294_v9, 5  ;;  %v5300_v31 = vrot.slane %v5298_v25, 4  ;;  %v4479_v45 = vsel %vm4402_vm13, %v8382_v37, 0.0  ;;  %vm4403_vm14 = vcmp.gt.f32.partialorder %v4339_v0, 0.5 }
 0x394   : > { %v4689_v16 = vrot.slane %v4511_v10, 7  ;;  %v4480_v32 = vsel %vm4403_vm14, %v8393_v3, 0.0 }
 0x395   : > { %v5297_v44 = vsel %vm6482_vm2, %v5292_v18, %v5296_v41  ;;  %v5301_v33 = vor.u32 %v5300_v31, %v5296_v41  ;;  %v4512_v14 = vadd.f32 %v4480_v32, %v4479_v45 }
 0x396   : > { %5392 = vst [vmem:[%s8580_s7 + $0x70] sm:$0xf] %v5297_v44  ;;  %v4785_v47 = vadd.f32 %v4689_v16, %v4608_v7 }
 0x397   : > { %v5302_v24 = vrot.slane %v5301_v33, 4  ;;  %v4690_v12 = vrot.slane %v4512_v14, 7 }
 0x398   : > { %v5949_v56 = vpack.c.bf16 %v4785_v47, %v4785_v47 }
 0x399   : > { %v5307_v37 = vsel %vm6482_vm2, %v5302_v24, %v5306_v38  ;;  %v4691_v60 = vsel %vm4643_vm7, %v4689_v16, %v4690_v12  ;;  %v4787_v2 = vadd.f32 %v4690_v12, %v4610_v1 }
 0x39a   : > { %5393 = vst [vmem:[%s8580_s7 + $0x74] sm:$0xf] %v5307_v37  ;;  %v5309_v52 = vshrl.u32 %v5949_v56, 16  ;;  %v5312_v3 = vshll.u32 %v5949_v56, 16  ;;  %v4786_v62 = vadd.f32 %v4691_v60, %v4609_v17 }
 0x39b   : > { %v5951_v54 = vpack.c.bf16 %v4787_v2, %v4787_v2 }
 0x39c   : > { %v5311_v35 = vrot.slane %v5309_v52, 4  ;;  %v5314_v4 = vrot.slane %v5312_v3, 5  ;;  %v5950_v11 = vpack.c.bf16 %v4786_v62, %v4786_v62 }
 0x39d   : > { %v5328_v8 = vshll.u32 %v5951_v54, 16 }
 0x39e   : > { %v5315_v34 = vor.u32 %v5314_v4, %v5311_v35  ;;  %v5318_v28 = vshll.u32 %v5950_v11, 16  ;;  %v5322_v49 = vshrl.u32 %v5950_v11, 16 }
 0x39f   : > { %v5330_v50 = vrot.slane %v5328_v8, 5 }
 0x3a0   : > { %v5316_v20 = vrot.slane %v5315_v34, 4  ;;  %v5320_v59 = vrot.slane %v5318_v28, 5  ;;  %v5324_v40 = vrot.slane %v5322_v49, 4 }
 0x3a2   : > { %v5321_v61 = vsel %vm6482_vm2, %v5316_v20, %v5320_v59  ;;  %v5325_v21 = vor.u32 %v5324_v40, %v5320_v59 }
 0x3a3   : > { %5394 = vst [vmem:[%s8580_s7 + $0x78] sm:$0xf] %v5321_v61 }
 0x3a4   : > { %v5326_v22 = vrot.slane %v5325_v21, 4 }
 0x3a6   : > { %v5331_v46 = vsel %vm6482_vm2, %v5326_v22, %v5330_v50 }
 0x3a7   : > { %5395 = vst [vmem:[%s8580_s7 + $0x7c] sm:$0xf] %v5331_v46 }
 0x3a8 PF: > { %s15_s17 = sadd.s32 1, %s6347_s17   ;;  %s9606_s15 = smov %s6343_s16 }
 0x3a9   : > { %p12_p2 = scmp.ge.s32.totalorder %s15_s17, 4   ;;  %s9607_s16 = smov %s9609_s19 }
 0x3ab   :  { %14 = sbr.rel (!%p12_p2) target bundleno = 2 (0x2), region = 82 }
 0x3b0   :  { %5428 = vsyncpa [#allocation3], 1 }
 0x3b1   :  { %5430 = vsyncpa [#allocation3 + $0x1], 1 }

</bundles_post_ra>
